<compile_context>
chip_gen: v7x
topology: tpu7x:2x2x1
jax: 0.10.0
libtpu: 0.0.40
codegen_flags: <defaults>
</compile_context>

<pallas_src>
import jax
import jax.numpy as jnp
from jax.experimental import pallas as pl
from jax.experimental.pallas import tpu as pltpu

# ----------------------------------------------------------------------------
# Model configuration (small, wav2vec2-style) -- toy sizes.
# ----------------------------------------------------------------------------
CONV_FEAT = 32      # conv feature-extractor channels
EMBED = 64          # transformer embed dim
HEADS = 4
HEAD_DIM = EMBED // HEADS
FFN = 128           # feed-forward dim
N_LAYERS = 2
POS_CONV_K = 3      # TODO(synk): fairseq uses a weight-normed grouped conv
                    # (kernel=128, groups=16); simplified to a dense k=3 conv.

_LN_EPS = 1e-5
_PARALLEL = pltpu.CompilerParams(dimension_semantics=("parallel",))


# ----------------------------------------------------------------------------
# small in-kernel helpers
# ----------------------------------------------------------------------------
def _ln(x, g, b):
    """Row-wise layer norm over the last axis (f32)."""
    mu = jnp.mean(x, axis=-1, keepdims=True)
    xc = x - mu
    var = jnp.mean(xc * xc, axis=-1, keepdims=True)
    return xc * jax.lax.rsqrt(var + _LN_EPS) * g + b


def _gelu(x):
    # TODO(synk): fairseq uses the exact erf-based GELU; tanh approximation is
    # used here (mul/add/tanh only) to guarantee a Mosaic lowering.
    c = 0.7978845608028654  # sqrt(2/pi)
    return 0.5 * x * (1.0 + jnp.tanh(c * (x + 0.044715 * (x * x * x))))


def _bdot(a, b):
    """bf16 MXU matmul with f32 accumulation."""
    return jnp.dot(a.astype(jnp.bfloat16), b.astype(jnp.bfloat16),
                   preferred_element_type=jnp.float32)


# BlockSpec helpers for the stem kernels (grid = (B,)).
def _bspec(shape):
    """Per-batch block: (1, *rest) at block index (b, 0, ...)."""
    nzero = len(shape) - 1
    return pl.BlockSpec((1,) + tuple(shape[1:]),
                        lambda b, _n=nzero: (b,) + (0,) * _n)


def _rspec(shape):
    """Replicated (weight) block: full array at block index (0, ...)."""
    n = len(shape)
    return pl.BlockSpec(tuple(shape), lambda b, _n=n: (0,) * _n)


# ----------------------------------------------------------------------------
# Stem kernel 1: conv0 (k=10, s=5) + GroupNorm(C, C) + GELU, fused.
# ----------------------------------------------------------------------------
def _conv0_gn_gelu_kernel(xb_ref, w0a_ref, w0b_ref, b0_ref, gg_ref, gb_ref,
                          o_ref):
    xb = xb_ref[0]                               # (T1 + 1, 5) f32
    t_out = xb.shape[0] - 1
    # conv0 window t = [block t, block t+1] -> two shifted matmuls (no im2col).
    co = (_bdot(xb[0:t_out], w0a_ref[...])
          + _bdot(xb[1:t_out + 1], w0b_ref[...])
          + b0_ref[...])                         # (T1, C)
    # GroupNorm(C, C): per-channel mean/var over time within the batch element.
    mu = jnp.mean(co, axis=0, keepdims=True)
    cc = co - mu
    var = jnp.mean(cc * cc, axis=0, keepdims=True)
    hn = cc * jax.lax.rsqrt(var + _LN_EPS) * gg_ref[...] + gb_ref[...]
    o_ref[...] = _gelu(hn)[None]


def conv0_gn_gelu(xb, kp):
    B, n_blk, _ = xb.shape
    t1 = n_blk - 1
    out_shape = (B, t1, CONV_FEAT)
    return pl.pallas_call(
        _conv0_gn_gelu_kernel,
        out_shape=jax.ShapeDtypeStruct(out_shape, jnp.float32),
        grid=(B,),
        in_specs=[_bspec(xb.shape), _rspec(kp["w0a"].shape),
                  _rspec(kp["w0b"].shape), _rspec(kp["b0"].shape),
                  _rspec(kp["gn_g"].shape), _rspec(kp["gn_b"].shape)],
        out_specs=_bspec(out_shape),
        compiler_params=_PARALLEL,
    )(xb, kp["w0a"], kp["w0b"], kp["b0"], kp["gn_g"], kp["gn_b"])


# ----------------------------------------------------------------------------
# Stem kernel 2: conv1 (k=3, s=2) + GELU + feature LN + post_extract_proj.
# The stride-2 row selection is prepared as tiny even/odd JAX slices; the
# kernel computes the conv as three shifted matmuls.
# ----------------------------------------------------------------------------
def _conv1_proj_kernel(ge_ref, go_ref, w1a_ref, w1b_ref, w1c_ref, bc_ref,
                       fg_ref, fb_ref, pw_ref, pb_ref, o_ref):
    e = ge_ref[0]                                # (T2 + 1, C) even frames
    od = go_ref[0]                               # (T2, C)     odd frames
    t2 = od.shape[0]
    c = (_bdot(e[0:t2], w1a_ref[...]) + _bdot(od, w1b_ref[...])
         + _bdot(e[1:t2 + 1], w1c_ref[...]) + bc_ref[...])     # (T2, C)
    c = _gelu(c)
    c = _ln(c, fg_ref[...], fb_ref[...])         # feature layer norm
    z = _bdot(c, pw_ref[...]) + pb_ref[...]      # post_extract_proj -> EMBED
    o_ref[...] = z[None]


def conv1_featln_proj(ge, go, kp):
    B, t2 = go.shape[0], go.shape[1]
    out_shape = (B, t2, EMBED)
    return pl.pallas_call(
        _conv1_proj_kernel,
        out_shape=jax.ShapeDtypeStruct(out_shape, jnp.float32),
        grid=(B,),
        in_specs=[_bspec(ge.shape), _bspec(go.shape),
                  _rspec(kp["w1t0"].shape), _rspec(kp["w1t1"].shape),
                  _rspec(kp["w1t2"].shape), _rspec(kp["bc1"].shape),
                  _rspec(kp["feat_g"].shape), _rspec(kp["feat_b"].shape),
                  _rspec(kp["proj_w"].shape), _rspec(kp["proj_b"].shape)],
        out_specs=_bspec(out_shape),
        compiler_params=_PARALLEL,
    )(ge, go, kp["w1t0"], kp["w1t1"], kp["w1t2"], kp["bc1"],
      kp["feat_g"], kp["feat_b"], kp["proj_w"], kp["proj_b"])


# ----------------------------------------------------------------------------
# Stem kernel 3: positional conv (k=3, s=1, pad=1) + GELU + residual + enc LN.
# ----------------------------------------------------------------------------
def _posconv_ln_kernel(hp_ref, res_ref, pw0_ref, pw1_ref, pw2_ref, pb_ref,
                       eg_ref, eb_ref, o_ref):
    hp = hp_ref[0]                               # (T + 2, D), zero padded
    res = res_ref[0]                             # (T, D)
    t = res.shape[0]
    pos = (_bdot(hp[0:t], pw0_ref[...]) + _bdot(hp[1:t + 1], pw1_ref[...])
           + _bdot(hp[2:t + 2], pw2_ref[...]) + pb_ref[...])
    pos = _gelu(pos)
    y = res + pos
    o_ref[...] = _ln(y, eg_ref[...], eb_ref[...])[None]


def posconv_add_ln(feats, kp):
    B, t, d = feats.shape
    hp = jnp.pad(feats, ((0, 0), (1, 1), (0, 0)))   # zero pad along time
    out_shape = (B, t, d)
    return pl.pallas_call(
        _posconv_ln_kernel,
        out_shape=jax.ShapeDtypeStruct(out_shape, jnp.float32),
        grid=(B,),
        in_specs=[_bspec(hp.shape), _bspec(feats.shape),
                  _rspec(kp["pos_w0"].shape), _rspec(kp["pos_w1"].shape),
                  _rspec(kp["pos_w2"].shape), _rspec(kp["pos_b"].shape),
                  _rspec(kp["enc_g"].shape), _rspec(kp["enc_b"].shape)],
        out_specs=_bspec(out_shape),
        compiler_params=_PARALLEL,
    )(hp, feats, kp["pos_w0"], kp["pos_w1"], kp["pos_w2"], kp["pos_b"],
      kp["enc_g"], kp["enc_b"])


# ----------------------------------------------------------------------------
# Transformer stack: ONE pallas_call over grid (B, L).
# Per grid step (b, l): QKV + per-head softmax attention + out-proj +
# residual + LN1 + FFN (w1/GELU/w2) + residual + LN2, all in VMEM.  The hidden
# state is carried across the layer axis in a VMEM scratch; layer l+1 weights
# are prefetched by the BlockSpec pipeline while layer l computes.  The fc2
# output (fairseq `layer_result`) of the last layer is the kernel output.
# ----------------------------------------------------------------------------
def _encoder_stack_kernel(x_ref,
                          wq_ref, wk_ref, wv_ref, bq_ref, bk_ref, bv_ref,
                          wo_ref, bo_ref, g1_ref, b1_ref,
                          w1_ref, fb1_ref, w2_ref, fb2_ref, g2_ref, gb2_ref,
                          lr_ref, x_s):
    l = pl.program_id(1)

    @pl.when(l == 0)
    def _():
        x_s[...] = x_ref[0]                      # load encoder input once

    x = x_s[...]                                 # (T, D) f32
    xb = x.astype(jnp.bfloat16)
    t, d = x.shape

    wq = wq_ref[0]; wk = wk_ref[0]; wv = wv_ref[0]; wo = wo_ref[0]
    bq = bq_ref[0]; bk = bk_ref[0]; bv = bv_ref[0]
    heads = wq.shape[0]

    # --- self-attention (q-scale pre-folded into wq/bq) ----------------------
    acc = jnp.zeros((t, d), jnp.float32)
    for h in range(heads):                       # static unroll; stays in VMEM
        q = jnp.dot(xb, wq[h], preferred_element_type=jnp.float32) + bq[h]
        k = jnp.dot(xb, wk[h], preferred_element_type=jnp.float32) + bk[h]
        v = jnp.dot(xb, wv[h], preferred_element_type=jnp.float32) + bv[h]
        s = jax.lax.dot_general(                 # q @ k^T without a transpose
            q.astype(jnp.bfloat16), k.astype(jnp.bfloat16),
            dimension_numbers=(((1,), (1,)), ((), ())),
            preferred_element_type=jnp.float32)  # (T, T)
        m = jnp.max(s, axis=-1, keepdims=True)
        p = jnp.exp(s - m)
        den = jnp.sum(p, axis=-1, keepdims=True)
        p = p * pl.reciprocal(den, approx=True)  # EUP reciprocal (free slot)
        ctx = jnp.dot(p.astype(jnp.bfloat16), v.astype(jnp.bfloat16),
                      preferred_element_type=jnp.float32)        # (T, dh)
        acc = acc + jnp.dot(ctx.astype(jnp.bfloat16), wo[h],
                            preferred_element_type=jnp.float32)  # (T, D)
    y = x + acc + bo_ref[0]                      # residual + out-proj bias
    y = _ln(y, g1_ref[0], b1_ref[0])             # post-norm LN1

    # --- feed-forward ---------------------------------------------------------
    h1 = _bdot(y, w1_ref[0]) + fb1_ref[0]        # (T, FFN), never leaves VMEM
    h1 = _gelu(h1)
    y2 = _bdot(h1, w2_ref[0]) + fb2_ref[0]       # (T, D) fc2 output
    lr_ref[...] = y2[None]                       # fairseq layer_result
    z = y + y2
    x_s[...] = _ln(z, g2_ref[0], gb2_ref[0])     # carried into next layer


_STACK_NAMES = ["wq_h", "wk_h", "wv_h", "bq_h", "bk_h", "bv_h", "wo_h", "bo",
                "ln1_g", "ln1_b", "w1", "b1", "w2", "b2", "ln2_g", "ln2_b"]


def _lspec(arr):
    """Per-layer block of a stacked weight: (1, *rest) at block index (l, 0..)."""
    nz = arr.ndim - 1
    return pl.BlockSpec((1,) + tuple(arr.shape[1:]),
                        lambda b, l, _n=nz: (l,) + (0,) * _n)


def encoder_stack(x, sp):
    B, t, d = x.shape
    n_layers = sp["wq_h"].shape[0]
    x_spec = pl.BlockSpec((1, t, d), lambda b, l: (b, 0, 0))
    out_spec = pl.BlockSpec((1, t, d), lambda b, l: (b, 0, 0))
    return pl.pallas_call(
        _encoder_stack_kernel,
        out_shape=jax.ShapeDtypeStruct((B, t, d), jnp.float32),
        grid=(B, n_layers),
        in_specs=[x_spec] + [_lspec(sp[n]) for n in _STACK_NAMES],
        out_specs=out_spec,
        scratch_shapes=[pltpu.VMEM((t, d), jnp.float32)],
        compiler_params=pltpu.CompilerParams(
            dimension_semantics=("parallel", "arbitrary")),
    )(x, *[sp[n] for n in _STACK_NAMES])


# ----------------------------------------------------------------------------
# Parameters: logical layout, then prepare_params() derives the kernel-ready
# layout (per-head splits, conv taps, folded q-scale, bf16 weights, (1, N)
# f32 biases, per-layer weights stacked along a leading L axis).
# ----------------------------------------------------------------------------
def init_params(key):
    keys = iter(jax.random.split(key, 64))

    def nrm(shape, scale=0.02):
        return (scale * jax.random.normal(next(keys), shape)).astype(jnp.float32)

    p = {}
    p["conv0_w"] = nrm((10 * 1, CONV_FEAT))
    p["conv0_b"] = nrm((CONV_FEAT,))
    p["gn_g"] = jnp.ones((CONV_FEAT,), jnp.float32)
    p["gn_b"] = jnp.zeros((CONV_FEAT,), jnp.float32)
    p["conv1_w"] = nrm((3 * CONV_FEAT, CONV_FEAT))
    p["conv1_b"] = nrm((CONV_FEAT,))
    p["feat_ln_g"] = jnp.ones((CONV_FEAT,), jnp.float32)
    p["feat_ln_b"] = jnp.zeros((CONV_FEAT,), jnp.float32)
    p["proj_w"] = nrm((CONV_FEAT, EMBED))
    p["proj_b"] = nrm((EMBED,))
    p["pos_w"] = nrm((POS_CONV_K * EMBED, EMBED))
    p["pos_b"] = nrm((EMBED,))
    p["enc_ln_g"] = jnp.ones((EMBED,), jnp.float32)
    p["enc_ln_b"] = jnp.zeros((EMBED,), jnp.float32)
    layers = []
    for _ in range(N_LAYERS):
        layers.append({
            "wq": nrm((EMBED, EMBED)), "bq": nrm((EMBED,)),
            "wk": nrm((EMBED, EMBED)), "bk": nrm((EMBED,)),
            "wv": nrm((EMBED, EMBED)), "bv": nrm((EMBED,)),
            "wo": nrm((EMBED, EMBED)), "bo": nrm((EMBED,)),
            "ln1_g": jnp.ones((EMBED,), jnp.float32),
            "ln1_b": jnp.zeros((EMBED,), jnp.float32),
            "w1": nrm((EMBED, FFN)), "b1": nrm((FFN,)),
            "w2": nrm((FFN, EMBED)), "b2": nrm((EMBED,)),
            "ln2_g": jnp.ones((EMBED,), jnp.float32),
            "ln2_b": jnp.zeros((EMBED,), jnp.float32),
        })
    p["layers"] = layers
    return p


def prepare_params(p):
    bf = lambda w: w.astype(jnp.bfloat16)
    row = lambda v: v.reshape(1, -1).astype(jnp.float32)
    kp = {}
    # conv0 split into its two 5-sample taps (small weights kept f32).
    kp["w0a"] = p["conv0_w"][:5]
    kp["w0b"] = p["conv0_w"][5:]
    kp["b0"] = row(p["conv0_b"])
    kp["gn_g"] = row(p["gn_g"])
    kp["gn_b"] = row(p["gn_b"])
    # conv1 split into its three taps (rows grouped [k, c_in] like the im2col).
    for k in range(3):
        kp[f"w1t{k}"] = bf(p["conv1_w"][k * CONV_FEAT:(k + 1) * CONV_FEAT])
    kp["bc1"] = row(p["conv1_b"])
    kp["feat_g"] = row(p["feat_ln_g"])
    kp["feat_b"] = row(p["feat_ln_b"])
    kp["proj_w"] = bf(p["proj_w"])
    kp["proj_b"] = row(p["proj_b"])
    for k in range(POS_CONV_K):
        kp[f"pos_w{k}"] = bf(p["pos_w"][k * EMBED:(k + 1) * EMBED])
    kp["pos_b"] = row(p["pos_b"])
    kp["enc_g"] = row(p["enc_ln_g"])
    kp["enc_b"] = row(p["enc_ln_b"])

    scale = HEAD_DIM ** -0.5
    split_cols = lambda w: w.reshape(EMBED, HEADS, HEAD_DIM).transpose(1, 0, 2)
    per_layer = []
    for lp in p["layers"]:
        per_layer.append({
            "wq_h": bf(split_cols(lp["wq"]) * scale),      # q-scale folded in
            "wk_h": bf(split_cols(lp["wk"])),
            "wv_h": bf(split_cols(lp["wv"])),
            "bq_h": (lp["bq"].reshape(HEADS, 1, HEAD_DIM) * scale
                     ).astype(jnp.float32),
            "bk_h": lp["bk"].reshape(HEADS, 1, HEAD_DIM).astype(jnp.float32),
            "bv_h": lp["bv"].reshape(HEADS, 1, HEAD_DIM).astype(jnp.float32),
            "wo_h": bf(lp["wo"].reshape(HEADS, HEAD_DIM, EMBED)),
            "bo": row(lp["bo"]),
            "ln1_g": row(lp["ln1_g"]), "ln1_b": row(lp["ln1_b"]),
            "w1": bf(lp["w1"]), "b1": row(lp["b1"]),
            "w2": bf(lp["w2"]), "b2": row(lp["b2"]),
            "ln2_g": row(lp["ln2_g"]), "ln2_b": row(lp["ln2_b"]),
        })
    # stack all per-layer weights along a leading L axis so a single
    # pallas_call can pipeline them across the layer grid axis.
    kp["stack"] = {k: jnp.stack([lp[k] for lp in per_layer], axis=0)
                   for k in per_layer[0]}
    return kp


# ----------------------------------------------------------------------------
# Forward pass
# ----------------------------------------------------------------------------
def wav2vec2_encoder_forward(x_raw, kp):
    """x_raw: (B, T_samples) float32.  Returns layer_results[-1][-1]: (T, B, D)."""
    B, t_raw = x_raw.shape

    # --- conv feature extractor ----------------------------------------------
    # conv0 (k=10, s=5): the free reshape below turns the signal into 5-sample
    # blocks; the kernel forms each window as two shifted matmuls (no im2col
    # tensor in HBM) and fuses GroupNorm + GELU.
    n_blk = t_raw // 5
    t1 = n_blk - 1                               # == (t_raw - 10) // 5 + 1
    xb = x_raw[:, :n_blk * 5].astype(jnp.float32).reshape(B, n_blk, 5)
    g = conv0_gn_gelu(xb, kp)                    # (B, T1, C)

    # conv1 (k=3, s=2): tiny even/odd de-interleave in JAX, then one fused
    # kernel for conv + GELU + feature LN + post_extract_proj.
    t2 = (t1 - 3) // 2 + 1
    ge = g[:, 0::2][:, :t2 + 1]                  # rows 0, 2, 4, ...
    go = g[:, 1::2][:, :t2]                      # rows 1, 3, 5, ...
    feats = conv1_featln_proj(ge, go, kp)        # (B, T2, EMBED)

    # --- positional conv embedding + encoder layer norm -----------------------
    x = posconv_add_ln(feats, kp)                # (B, T2, EMBED)

    # --- transformer stack (post-norm, layer_norm_first=False) ----------------
    layer_result = encoder_stack(x, kp["stack"])  # (B, T2, EMBED), last fc2 out

    # out['layer_results'][-1][-1] is the last layer's fc2 output in (T, B, D).
    return layer_result.transpose(1, 0, 2)


# ----------------------------------------------------------------------------
if __name__ == "__main__":
    key = jax.random.PRNGKey(0)
    k_param, k_x = jax.random.split(key)

    params = init_params(k_param)
    kparams = prepare_params(params)

    B = 2
    T_RAW = 170     # -> conv0: 33 frames -> conv1: 16 frames
    x = jax.random.normal(k_x, (B, T_RAW), dtype=jnp.float32)

    fwd = jax.jit(wav2vec2_encoder_forward)
    out = fwd(x, kparams)
    out = jax.block_until_ready(out)

    expected_T = ((T_RAW - 10) // 5 + 1 - 3) // 2 + 1    # 16
    assert out.shape == (expected_T, B, EMBED), out.shape
    assert bool(jnp.all(jnp.isfinite(out)))
    print("KERNEL_OK")
</pallas_src>

<mosaic_0001>
module attributes {stable_mosaic.version = 11 : i64} {
  func.func @_conv0_gn_gelu_kernel(%arg0: i32, %arg1: memref<1x34x5xf32, #tpu.memory_space<vmem>>, %arg2: memref<5x32xf32, #tpu.memory_space<vmem>>, %arg3: memref<5x32xf32, #tpu.memory_space<vmem>>, %arg4: memref<1x32xf32, #tpu.memory_space<vmem>>, %arg5: memref<1x32xf32, #tpu.memory_space<vmem>>, %arg6: memref<1x32xf32, #tpu.memory_space<vmem>>, %arg7: memref<1x33x32xf32, #tpu.memory_space<vmem>>) attributes {dimension_semantics = [#tpu.dimension_semantics<parallel>], iteration_bounds = array<i64: 2>, scalar_prefetch = 0 : i64, scratch_operands = 0 : i64, tpu.core_type = #tpu.core_type<tc>, window_params = [{transform_indices = @transform_0, window_bounds = array<i64: 1, 34, 5>}, {pipeline_mode = #tpu.pipeline_mode<synchronous>, transform_indices = @transform_1, window_bounds = array<i64: 5, 32>}, {pipeline_mode = #tpu.pipeline_mode<synchronous>, transform_indices = @transform_2, window_bounds = array<i64: 5, 32>}, {pipeline_mode = #tpu.pipeline_mode<synchronous>, transform_indices = @transform_3, window_bounds = array<i64: 1, 32>}, {pipeline_mode = #tpu.pipeline_mode<synchronous>, transform_indices = @transform_4, window_bounds = array<i64: 1, 32>}, {pipeline_mode = #tpu.pipeline_mode<synchronous>, transform_indices = @transform_5, window_bounds = array<i64: 1, 32>}, {transform_indices = @transform_6, window_bounds = array<i64: 1, 33, 32>}]} {
    %c0 = arith.constant 0 : index
    %c0_0 = arith.constant 0 : index
    %c0_1 = arith.constant 0 : index
    %0 = vector.load %arg1[%c0, %c0_0, %c0_1] : memref<1x34x5xf32, #tpu.memory_space<vmem>>, vector<1x34x5xf32>
    %1 = vector.shape_cast %0 : vector<1x34x5xf32> to vector<34x5xf32>
    %2 = vector.extract_strided_slice %1 {offsets = [0, 0], sizes = [33, 5], strides = [1, 1]} : vector<34x5xf32> to vector<33x5xf32>
    %c0_2 = arith.constant 0 : index
    %c0_3 = arith.constant 0 : index
    %3 = vector.load %arg2[%c0_2, %c0_3] : memref<5x32xf32, #tpu.memory_space<vmem>>, vector<5x32xf32>
    %4 = arith.truncf %2 : vector<33x5xf32> to vector<33x5xbf16>
    %5 = arith.truncf %3 : vector<5x32xf32> to vector<5x32xbf16>
    %cst = arith.constant dense<0.000000e+00> : vector<33x32xf32>
    %6 = tpu.matmul %4, %5, %cst {dimension_numbers = #tpu.dot_dimension_numbers<[1], [0], [0], [1], [0, 0, 1, 1], [], []>} : vector<33x5xbf16>, vector<5x32xbf16>, vector<33x32xf32> -> vector<33x32xf32>
    %7 = vector.extract_strided_slice %1 {offsets = [1, 0], sizes = [33, 5], strides = [1, 1]} : vector<34x5xf32> to vector<33x5xf32>
    %c0_4 = arith.constant 0 : index
    %c0_5 = arith.constant 0 : index
    %8 = vector.load %arg3[%c0_4, %c0_5] : memref<5x32xf32, #tpu.memory_space<vmem>>, vector<5x32xf32>
    %9 = arith.truncf %7 : vector<33x5xf32> to vector<33x5xbf16>
    %10 = arith.truncf %8 : vector<5x32xf32> to vector<5x32xbf16>
    %cst_6 = arith.constant dense<0.000000e+00> : vector<33x32xf32>
    %11 = tpu.matmul %9, %10, %cst_6 {dimension_numbers = #tpu.dot_dimension_numbers<[1], [0], [0], [1], [0, 0, 1, 1], [], []>} : vector<33x5xbf16>, vector<5x32xbf16>, vector<33x32xf32> -> vector<33x32xf32>
    %12 = arith.addf %6, %11 : vector<33x32xf32>
    %c0_7 = arith.constant 0 : index
    %c0_8 = arith.constant 0 : index
    %13 = vector.load %arg4[%c0_7, %c0_8] : memref<1x32xf32, #tpu.memory_space<vmem>>, vector<1x32xf32>
    %14 = vector.broadcast %13 : vector<1x32xf32> to vector<33x32xf32>
    %15 = arith.addf %12, %14 : vector<33x32xf32>
    %cst_9 = arith.constant dense<0.000000e+00> : vector<32xf32>
    %16 = vector.multi_reduction <add>, %15, %cst_9 [0] : vector<33x32xf32> to vector<32xf32>
    %17 = vector.shape_cast %16 : vector<32xf32> to vector<1x32xf32>
    %cst_10 = arith.constant 3.300000e+01 : f32
    %18 = vector.broadcast %cst_10 : f32 to vector<1x32xf32>
    %19 = arith.divf %17, %18 : vector<1x32xf32>
    %20 = vector.broadcast %19 : vector<1x32xf32> to vector<33x32xf32>
    %21 = arith.subf %15, %20 : vector<33x32xf32>
    %22 = arith.mulf %21, %21 : vector<33x32xf32>
    %cst_11 = arith.constant dense<0.000000e+00> : vector<32xf32>
    %23 = vector.multi_reduction <add>, %22, %cst_11 [0] : vector<33x32xf32> to vector<32xf32>
    %24 = vector.shape_cast %23 : vector<32xf32> to vector<1x32xf32>
    %cst_12 = arith.constant 3.300000e+01 : f32
    %25 = vector.broadcast %cst_12 : f32 to vector<1x32xf32>
    %26 = arith.divf %24, %25 : vector<1x32xf32>
    %cst_13 = arith.constant 9.99999974E-6 : f32
    %27 = vector.broadcast %cst_13 : f32 to vector<1x32xf32>
    %28 = arith.addf %26, %27 : vector<1x32xf32>
    %29 = math.rsqrt %28 : vector<1x32xf32>
    %30 = vector.broadcast %29 : vector<1x32xf32> to vector<33x32xf32>
    %31 = arith.mulf %21, %30 : vector<33x32xf32>
    %c0_14 = arith.constant 0 : index
    %c0_15 = arith.constant 0 : index
    %32 = vector.load %arg5[%c0_14, %c0_15] : memref<1x32xf32, #tpu.memory_space<vmem>>, vector<1x32xf32>
    %33 = vector.broadcast %32 : vector<1x32xf32> to vector<33x32xf32>
    %34 = arith.mulf %31, %33 : vector<33x32xf32>
    %c0_16 = arith.constant 0 : index
    %c0_17 = arith.constant 0 : index
    %35 = vector.load %arg6[%c0_16, %c0_17] : memref<1x32xf32, #tpu.memory_space<vmem>>, vector<1x32xf32>
    %36 = vector.broadcast %35 : vector<1x32xf32> to vector<33x32xf32>
    %37 = arith.addf %34, %36 : vector<33x32xf32>
    %cst_18 = arith.constant 5.000000e-01 : f32
    %38 = vector.broadcast %cst_18 : f32 to vector<33x32xf32>
    %39 = arith.mulf %38, %37 : vector<33x32xf32>
    %40 = arith.mulf %37, %37 : vector<33x32xf32>
    %41 = arith.mulf %40, %37 : vector<33x32xf32>
    %cst_19 = arith.constant 4.471500e-02 : f32
    %42 = vector.broadcast %cst_19 : f32 to vector<33x32xf32>
    %43 = arith.mulf %42, %41 : vector<33x32xf32>
    %44 = arith.addf %37, %43 : vector<33x32xf32>
    %cst_20 = arith.constant 0.797884583 : f32
    %45 = vector.broadcast %cst_20 : f32 to vector<33x32xf32>
    %46 = arith.mulf %45, %44 : vector<33x32xf32>
    %47 = math.tanh %46 : vector<33x32xf32>
    %cst_21 = arith.constant 1.000000e+00 : f32
    %48 = vector.broadcast %cst_21 : f32 to vector<33x32xf32>
    %49 = arith.addf %48, %47 : vector<33x32xf32>
    %50 = arith.mulf %39, %49 : vector<33x32xf32>
    %51 = vector.shape_cast %50 : vector<33x32xf32> to vector<1x33x32xf32>
    %c0_22 = arith.constant 0 : index
    %c0_23 = arith.constant 0 : index
    %c0_24 = arith.constant 0 : index
    %52 = vector.load %arg7[%c0_22, %c0_23, %c0_24] : memref<1x33x32xf32, #tpu.memory_space<vmem>>, vector<1x33x32xf32>
    tpu.vector_store %arg7[%c0_22, %c0_23, %c0_24], %51 {strides = array<i32>} : memref<1x33x32xf32, #tpu.memory_space<vmem>>, vector<1x33x32xf32>,
    return
  }
  func.func @transform_0(%arg0: i32) -> (i32, i32, i32) {
    %c0_i32 = arith.constant 0 : i32
    %c0_i32_0 = arith.constant 0 : i32
    %c0_i32_1 = arith.constant 0 : i32
    return %arg0, %c0_i32, %c0_i32_0 : i32, i32, i32
  }
  func.func @transform_1(%arg0: i32) -> (i32, i32) {
    %c0_i32 = arith.constant 0 : i32
    %c0_i32_0 = arith.constant 0 : i32
    %c0_i32_1 = arith.constant 0 : i32
    return %c0_i32, %c0_i32_0 : i32, i32
  }
  func.func @transform_2(%arg0: i32) -> (i32, i32) {
    %c0_i32 = arith.constant 0 : i32
    %c0_i32_0 = arith.constant 0 : i32
    %c0_i32_1 = arith.constant 0 : i32
    return %c0_i32, %c0_i32_0 : i32, i32
  }
  func.func @transform_3(%arg0: i32) -> (i32, i32) {
    %c0_i32 = arith.constant 0 : i32
    %c0_i32_0 = arith.constant 0 : i32
    %c0_i32_1 = arith.constant 0 : i32
    return %c0_i32, %c0_i32_0 : i32, i32
  }
  func.func @transform_4(%arg0: i32) -> (i32, i32) {
    %c0_i32 = arith.constant 0 : i32
    %c0_i32_0 = arith.constant 0 : i32
    %c0_i32_1 = arith.constant 0 : i32
    return %c0_i32, %c0_i32_0 : i32, i32
  }
  func.func @transform_5(%arg0: i32) -> (i32, i32) {
    %c0_i32 = arith.constant 0 : i32
    %c0_i32_0 = arith.constant 0 : i32
    %c0_i32_1 = arith.constant 0 : i32
    return %c0_i32, %c0_i32_0 : i32, i32
  }
  func.func @transform_6(%arg0: i32) -> (i32, i32, i32) {
    %c0_i32 = arith.constant 0 : i32
    %c0_i32_0 = arith.constant 0 : i32
    %c0_i32_1 = arith.constant 0 : i32
    return %arg0, %c0_i32, %c0_i32_0 : i32, i32, i32
  }
}

module attributes {stable_mosaic.version = 11 : i64} {
  func.func @_posconv_ln_kernel(%arg0: i32, %arg1: memref<1x18x64xf32, #tpu.memory_space<vmem>>, %arg2: memref<1x16x64xf32, #tpu.memory_space<vmem>>, %arg3: memref<64x64xbf16, #tpu.memory_space<vmem>>, %arg4: memref<64x64xbf16, #tpu.memory_space<vmem>>, %arg5: memref<64x64xbf16, #tpu.memory_space<vmem>>, %arg6: memref<1x64xf32, #tpu.memory_space<vmem>>, %arg7: memref<1x64xf32, #tpu.memory_space<vmem>>, %arg8: memref<1x64xf32, #tpu.memory_space<vmem>>, %arg9: memref<1x16x64xf32, #tpu.memory_space<vmem>>) attributes {dimension_semantics = [#tpu.dimension_semantics<parallel>], iteration_bounds = array<i64: 2>, scalar_prefetch = 0 : i64, scratch_operands = 0 : i64, tpu.core_type = #tpu.core_type<tc>, window_params = [{transform_indices = @transform_0, window_bounds = array<i64: 1, 18, 64>}, {transform_indices = @transform_1, window_bounds = array<i64: 1, 16, 64>}, {pipeline_mode = #tpu.pipeline_mode<synchronous>, transform_indices = @transform_2, window_bounds = array<i64: 64, 64>}, {pipeline_mode = #tpu.pipeline_mode<synchronous>, transform_indices = @transform_3, window_bounds = array<i64: 64, 64>}, {pipeline_mode = #tpu.pipeline_mode<synchronous>, transform_indices = @transform_4, window_bounds = array<i64: 64, 64>}, {pipeline_mode = #tpu.pipeline_mode<synchronous>, transform_indices = @transform_5, window_bounds = array<i64: 1, 64>}, {pipeline_mode = #tpu.pipeline_mode<synchronous>, transform_indices = @transform_6, window_bounds = array<i64: 1, 64>}, {pipeline_mode = #tpu.pipeline_mode<synchronous>, transform_indices = @transform_7, window_bounds = array<i64: 1, 64>}, {transform_indices = @transform_8, window_bounds = array<i64: 1, 16, 64>}]} {
    %c0 = arith.constant 0 : index
    %c0_0 = arith.constant 0 : index
    %c0_1 = arith.constant 0 : index
    %0 = vector.load %arg1[%c0, %c0_0, %c0_1] : memref<1x18x64xf32, #tpu.memory_space<vmem>>, vector<1x18x64xf32>
    %1 = vector.shape_cast %0 : vector<1x18x64xf32> to vector<18x64xf32>
    %c0_2 = arith.constant 0 : index
    %c0_3 = arith.constant 0 : index
    %c0_4 = arith.constant 0 : index
    %2 = vector.load %arg2[%c0_2, %c0_3, %c0_4] : memref<1x16x64xf32, #tpu.memory_space<vmem>>, vector<1x16x64xf32>
    %3 = vector.shape_cast %2 : vector<1x16x64xf32> to vector<16x64xf32>
    %4 = vector.extract_strided_slice %1 {offsets = [0, 0], sizes = [16, 64], strides = [1, 1]} : vector<18x64xf32> to vector<16x64xf32>
    %c0_5 = arith.constant 0 : index
    %c0_6 = arith.constant 0 : index
    %5 = vector.load %arg3[%c0_5, %c0_6] : memref<64x64xbf16, #tpu.memory_space<vmem>>, vector<64x64xbf16>
    %6 = arith.truncf %4 : vector<16x64xf32> to vector<16x64xbf16>
    %cst = arith.constant dense<0.000000e+00> : vector<16x64xf32>
    %7 = tpu.matmul %6, %5, %cst {dimension_numbers = #tpu.dot_dimension_numbers<[1], [0], [0], [1], [0, 0, 1, 1], [], []>} : vector<16x64xbf16>, vector<64x64xbf16>, vector<16x64xf32> -> vector<16x64xf32>
    %8 = vector.extract_strided_slice %1 {offsets = [1, 0], sizes = [16, 64], strides = [1, 1]} : vector<18x64xf32> to vector<16x64xf32>
    %c0_7 = arith.constant 0 : index
    %c0_8 = arith.constant 0 : index
    %9 = vector.load %arg4[%c0_7, %c0_8] : memref<64x64xbf16, #tpu.memory_space<vmem>>, vector<64x64xbf16>
    %10 = arith.truncf %8 : vector<16x64xf32> to vector<16x64xbf16>
    %cst_9 = arith.constant dense<0.000000e+00> : vector<16x64xf32>
    %11 = tpu.matmul %10, %9, %cst_9 {dimension_numbers = #tpu.dot_dimension_numbers<[1], [0], [0], [1], [0, 0, 1, 1], [], []>} : vector<16x64xbf16>, vector<64x64xbf16>, vector<16x64xf32> -> vector<16x64xf32>
    %12 = arith.addf %7, %11 : vector<16x64xf32>
    %13 = vector.extract_strided_slice %1 {offsets = [2, 0], sizes = [16, 64], strides = [1, 1]} : vector<18x64xf32> to vector<16x64xf32>
    %c0_10 = arith.constant 0 : index
    %c0_11 = arith.constant 0 : index
    %14 = vector.load %arg5[%c0_10, %c0_11] : memref<64x64xbf16, #tpu.memory_space<vmem>>, vector<64x64xbf16>
    %15 = arith.truncf %13 : vector<16x64xf32> to vector<16x64xbf16>
    %cst_12 = arith.constant dense<0.000000e+00> : vector<16x64xf32>
    %16 = tpu.matmul %15, %14, %cst_12 {dimension_numbers = #tpu.dot_dimension_numbers<[1], [0], [0], [1], [0, 0, 1, 1], [], []>} : vector<16x64xbf16>, vector<64x64xbf16>, vector<16x64xf32> -> vector<16x64xf32>
    %17 = arith.addf %12, %16 : vector<16x64xf32>
    %c0_13 = arith.constant 0 : index
    %c0_14 = arith.constant 0 : index
    %18 = vector.load %arg6[%c0_13, %c0_14] : memref<1x64xf32, #tpu.memory_space<vmem>>, vector<1x64xf32>
    %19 = vector.broadcast %18 : vector<1x64xf32> to vector<16x64xf32>
    %20 = arith.addf %17, %19 : vector<16x64xf32>
    %cst_15 = arith.constant 5.000000e-01 : f32
    %21 = vector.broadcast %cst_15 : f32 to vector<16x64xf32>
    %22 = arith.mulf %21, %20 : vector<16x64xf32>
    %23 = arith.mulf %20, %20 : vector<16x64xf32>
    %24 = arith.mulf %23, %20 : vector<16x64xf32>
    %cst_16 = arith.constant 4.471500e-02 : f32
    %25 = vector.broadcast %cst_16 : f32 to vector<16x64xf32>
    %26 = arith.mulf %25, %24 : vector<16x64xf32>
    %27 = arith.addf %20, %26 : vector<16x64xf32>
    %cst_17 = arith.constant 0.797884583 : f32
    %28 = vector.broadcast %cst_17 : f32 to vector<16x64xf32>
    %29 = arith.mulf %28, %27 : vector<16x64xf32>
    %30 = math.tanh %29 : vector<16x64xf32>
    %cst_18 = arith.constant 1.000000e+00 : f32
    %31 = vector.broadcast %cst_18 : f32 to vector<16x64xf32>
    %32 = arith.addf %31, %30 : vector<16x64xf32>
    %33 = arith.mulf %22, %32 : vector<16x64xf32>
    %34 = arith.addf %3, %33 : vector<16x64xf32>
    %c0_19 = arith.constant 0 : index
    %c0_20 = arith.constant 0 : index
    %35 = vector.load %arg7[%c0_19, %c0_20] : memref<1x64xf32, #tpu.memory_space<vmem>>, vector<1x64xf32>
    %c0_21 = arith.constant 0 : index
    %c0_22 = arith.constant 0 : index
    %36 = vector.load %arg8[%c0_21, %c0_22] : memref<1x64xf32, #tpu.memory_space<vmem>>, vector<1x64xf32>
    %cst_23 = arith.constant dense<0.000000e+00> : vector<16xf32>
    %37 = vector.multi_reduction <add>, %34, %cst_23 [1] : vector<16x64xf32> to vector<16xf32>
    %38 = vector.shape_cast %37 : vector<16xf32> to vector<16x1xf32>
    %cst_24 = arith.constant 6.400000e+01 : f32
    %39 = vector.broadcast %cst_24 : f32 to vector<16x1xf32>
    %40 = arith.divf %38, %39 : vector<16x1xf32>
    %41 = vector.broadcast %40 : vector<16x1xf32> to vector<16x64xf32>
    %42 = arith.subf %34, %41 : vector<16x64xf32>
    %43 = arith.mulf %42, %42 : vector<16x64xf32>
    %cst_25 = arith.constant dense<0.000000e+00> : vector<16xf32>
    %44 = vector.multi_reduction <add>, %43, %cst_25 [1] : vector<16x64xf32> to vector<16xf32>
    %45 = vector.shape_cast %44 : vector<16xf32> to vector<16x1xf32>
    %cst_26 = arith.constant 6.400000e+01 : f32
    %46 = vector.broadcast %cst_26 : f32 to vector<16x1xf32>
    %47 = arith.divf %45, %46 : vector<16x1xf32>
    %cst_27 = arith.constant 9.99999974E-6 : f32
    %48 = vector.broadcast %cst_27 : f32 to vector<16x1xf32>
    %49 = arith.addf %47, %48 : vector<16x1xf32>
    %50 = math.rsqrt %49 : vector<16x1xf32>
    %51 = vector.broadcast %50 : vector<16x1xf32> to vector<16x64xf32>
    %52 = arith.mulf %42, %51 : vector<16x64xf32>
    %53 = vector.broadcast %35 : vector<1x64xf32> to vector<16x64xf32>
    %54 = arith.mulf %52, %53 : vector<16x64xf32>
    %55 = vector.broadcast %36 : vector<1x64xf32> to vector<16x64xf32>
    %56 = arith.addf %54, %55 : vector<16x64xf32>
    %57 = vector.shape_cast %56 : vector<16x64xf32> to vector<1x16x64xf32>
    %c0_28 = arith.constant 0 : index
    %c0_29 = arith.constant 0 : index
    %c0_30 = arith.constant 0 : index
    %58 = vector.load %arg9[%c0_28, %c0_29, %c0_30] : memref<1x16x64xf32, #tpu.memory_space<vmem>>, vector<1x16x64xf32>
    tpu.vector_store %arg9[%c0_28, %c0_29, %c0_30], %57 {strides = array<i32>} : memref<1x16x64xf32, #tpu.memory_space<vmem>>, vector<1x16x64xf32>,
    return
  }
  func.func @transform_0(%arg0: i32) -> (i32, i32, i32) {
    %c0_i32 = arith.constant 0 : i32
    %c0_i32_0 = arith.constant 0 : i32
    %c0_i32_1 = arith.constant 0 : i32
    return %arg0, %c0_i32, %c0_i32_0 : i32, i32, i32
  }
  func.func @transform_1(%arg0: i32) -> (i32, i32, i32) {
    %c0_i32 = arith.constant 0 : i32
    %c0_i32_0 = arith.constant 0 : i32
    %c0_i32_1 = arith.constant 0 : i32
    return %arg0, %c0_i32, %c0_i32_0 : i32, i32, i32
  }
  func.func @transform_2(%arg0: i32) -> (i32, i32) {
    %c0_i32 = arith.constant 0 : i32
    %c0_i32_0 = arith.constant 0 : i32
    %c0_i32_1 = arith.constant 0 : i32
    return %c0_i32, %c0_i32_0 : i32, i32
  }
  func.func @transform_3(%arg0: i32) -> (i32, i32) {
    %c0_i32 = arith.constant 0 : i32
    %c0_i32_0 = arith.constant 0 : i32
    %c0_i32_1 = arith.constant 0 : i32
    return %c0_i32, %c0_i32_0 : i32, i32
  }
  func.func @transform_4(%arg0: i32) -> (i32, i32) {
    %c0_i32 = arith.constant 0 : i32
    %c0_i32_0 = arith.constant 0 : i32
    %c0_i32_1 = arith.constant 0 : i32
    return %c0_i32, %c0_i32_0 : i32, i32
  }
  func.func @transform_5(%arg0: i32) -> (i32, i32) {
    %c0_i32 = arith.constant 0 : i32
    %c0_i32_0 = arith.constant 0 : i32
    %c0_i32_1 = arith.constant 0 : i32
    return %c0_i32, %c0_i32_0 : i32, i32
  }
  func.func @transform_6(%arg0: i32) -> (i32, i32) {
    %c0_i32 = arith.constant 0 : i32
    %c0_i32_0 = arith.constant 0 : i32
    %c0_i32_1 = arith.constant 0 : i32
    return %c0_i32, %c0_i32_0 : i32, i32
  }
  func.func @transform_7(%arg0: i32) -> (i32, i32) {
    %c0_i32 = arith.constant 0 : i32
    %c0_i32_0 = arith.constant 0 : i32
    %c0_i32_1 = arith.constant 0 : i32
    return %c0_i32, %c0_i32_0 : i32, i32
  }
  func.func @transform_8(%arg0: i32) -> (i32, i32, i32) {
    %c0_i32 = arith.constant 0 : i32
    %c0_i32_0 = arith.constant 0 : i32
    %c0_i32_1 = arith.constant 0 : i32
    return %arg0, %c0_i32, %c0_i32_0 : i32, i32, i32
  }
}

module attributes {stable_mosaic.version = 11 : i64} {
  func.func @_conv1_proj_kernel(%arg0: i32, %arg1: memref<1x17x32xf32, #tpu.memory_space<vmem>>, %arg2: memref<1x16x32xf32, #tpu.memory_space<vmem>>, %arg3: memref<32x32xbf16, #tpu.memory_space<vmem>>, %arg4: memref<32x32xbf16, #tpu.memory_space<vmem>>, %arg5: memref<32x32xbf16, #tpu.memory_space<vmem>>, %arg6: memref<1x32xf32, #tpu.memory_space<vmem>>, %arg7: memref<1x32xf32, #tpu.memory_space<vmem>>, %arg8: memref<1x32xf32, #tpu.memory_space<vmem>>, %arg9: memref<32x64xbf16, #tpu.memory_space<vmem>>, %arg10: memref<1x64xf32, #tpu.memory_space<vmem>>, %arg11: memref<1x16x64xf32, #tpu.memory_space<vmem>>) attributes {dimension_semantics = [#tpu.dimension_semantics<parallel>], iteration_bounds = array<i64: 2>, scalar_prefetch = 0 : i64, scratch_operands = 0 : i64, tpu.core_type = #tpu.core_type<tc>, window_params = [{transform_indices = @transform_0, window_bounds = array<i64: 1, 17, 32>}, {transform_indices = @transform_1, window_bounds = array<i64: 1, 16, 32>}, {pipeline_mode = #tpu.pipeline_mode<synchronous>, transform_indices = @transform_2, window_bounds = array<i64: 32, 32>}, {pipeline_mode = #tpu.pipeline_mode<synchronous>, transform_indices = @transform_3, window_bounds = array<i64: 32, 32>}, {pipeline_mode = #tpu.pipeline_mode<synchronous>, transform_indices = @transform_4, window_bounds = array<i64: 32, 32>}, {pipeline_mode = #tpu.pipeline_mode<synchronous>, transform_indices = @transform_5, window_bounds = array<i64: 1, 32>}, {pipeline_mode = #tpu.pipeline_mode<synchronous>, transform_indices = @transform_6, window_bounds = array<i64: 1, 32>}, {pipeline_mode = #tpu.pipeline_mode<synchronous>, transform_indices = @transform_7, window_bounds = array<i64: 1, 32>}, {pipeline_mode = #tpu.pipeline_mode<synchronous>, transform_indices = @transform_8, window_bounds = array<i64: 32, 64>}, {pipeline_mode = #tpu.pipeline_mode<synchronous>, transform_indices = @transform_9, window_bounds = array<i64: 1, 64>}, {transform_indices = @transform_10, window_bounds = array<i64: 1, 16, 64>}]} {
    %c0 = arith.constant 0 : index
    %c0_0 = arith.constant 0 : index
    %c0_1 = arith.constant 0 : index
    %0 = vector.load %arg1[%c0, %c0_0, %c0_1] : memref<1x17x32xf32, #tpu.memory_space<vmem>>, vector<1x17x32xf32>
    %1 = vector.shape_cast %0 : vector<1x17x32xf32> to vector<17x32xf32>
    %c0_2 = arith.constant 0 : index
    %c0_3 = arith.constant 0 : index
    %c0_4 = arith.constant 0 : index
    %2 = vector.load %arg2[%c0_2, %c0_3, %c0_4] : memref<1x16x32xf32, #tpu.memory_space<vmem>>, vector<1x16x32xf32>
    %3 = vector.shape_cast %2 : vector<1x16x32xf32> to vector<16x32xf32>
    %4 = vector.extract_strided_slice %1 {offsets = [0, 0], sizes = [16, 32], strides = [1, 1]} : vector<17x32xf32> to vector<16x32xf32>
    %c0_5 = arith.constant 0 : index
    %c0_6 = arith.constant 0 : index
    %5 = vector.load %arg3[%c0_5, %c0_6] : memref<32x32xbf16, #tpu.memory_space<vmem>>, vector<32x32xbf16>
    %6 = arith.truncf %4 : vector<16x32xf32> to vector<16x32xbf16>
    %cst = arith.constant dense<0.000000e+00> : vector<16x32xf32>
    %7 = tpu.matmul %6, %5, %cst {dimension_numbers = #tpu.dot_dimension_numbers<[1], [0], [0], [1], [0, 0, 1, 1], [], []>} : vector<16x32xbf16>, vector<32x32xbf16>, vector<16x32xf32> -> vector<16x32xf32>
    %c0_7 = arith.constant 0 : index
    %c0_8 = arith.constant 0 : index
    %8 = vector.load %arg4[%c0_7, %c0_8] : memref<32x32xbf16, #tpu.memory_space<vmem>>, vector<32x32xbf16>
    %9 = arith.truncf %3 : vector<16x32xf32> to vector<16x32xbf16>
    %cst_9 = arith.constant dense<0.000000e+00> : vector<16x32xf32>
    %10 = tpu.matmul %9, %8, %cst_9 {dimension_numbers = #tpu.dot_dimension_numbers<[1], [0], [0], [1], [0, 0, 1, 1], [], []>} : vector<16x32xbf16>, vector<32x32xbf16>, vector<16x32xf32> -> vector<16x32xf32>
    %11 = arith.addf %7, %10 : vector<16x32xf32>
    %12 = vector.extract_strided_slice %1 {offsets = [1, 0], sizes = [16, 32], strides = [1, 1]} : vector<17x32xf32> to vector<16x32xf32>
    %c0_10 = arith.constant 0 : index
    %c0_11 = arith.constant 0 : index
    %13 = vector.load %arg5[%c0_10, %c0_11] : memref<32x32xbf16, #tpu.memory_space<vmem>>, vector<32x32xbf16>
    %14 = arith.truncf %12 : vector<16x32xf32> to vector<16x32xbf16>
    %cst_12 = arith.constant dense<0.000000e+00> : vector<16x32xf32>
    %15 = tpu.matmul %14, %13, %cst_12 {dimension_numbers = #tpu.dot_dimension_numbers<[1], [0], [0], [1], [0, 0, 1, 1], [], []>} : vector<16x32xbf16>, vector<32x32xbf16>, vector<16x32xf32> -> vector<16x32xf32>
    %16 = arith.addf %11, %15 : vector<16x32xf32>
    %c0_13 = arith.constant 0 : index
    %c0_14 = arith.constant 0 : index
    %17 = vector.load %arg6[%c0_13, %c0_14] : memref<1x32xf32, #tpu.memory_space<vmem>>, vector<1x32xf32>
    %18 = vector.broadcast %17 : vector<1x32xf32> to vector<16x32xf32>
    %19 = arith.addf %16, %18 : vector<16x32xf32>
    %cst_15 = arith.constant 5.000000e-01 : f32
    %20 = vector.broadcast %cst_15 : f32 to vector<16x32xf32>
    %21 = arith.mulf %20, %19 : vector<16x32xf32>
    %22 = arith.mulf %19, %19 : vector<16x32xf32>
    %23 = arith.mulf %22, %19 : vector<16x32xf32>
    %cst_16 = arith.constant 4.471500e-02 : f32
    %24 = vector.broadcast %cst_16 : f32 to vector<16x32xf32>
    %25 = arith.mulf %24, %23 : vector<16x32xf32>
    %26 = arith.addf %19, %25 : vector<16x32xf32>
    %cst_17 = arith.constant 0.797884583 : f32
    %27 = vector.broadcast %cst_17 : f32 to vector<16x32xf32>
    %28 = arith.mulf %27, %26 : vector<16x32xf32>
    %29 = math.tanh %28 : vector<16x32xf32>
    %cst_18 = arith.constant 1.000000e+00 : f32
    %30 = vector.broadcast %cst_18 : f32 to vector<16x32xf32>
    %31 = arith.addf %30, %29 : vector<16x32xf32>
    %32 = arith.mulf %21, %31 : vector<16x32xf32>
    %c0_19 = arith.constant 0 : index
    %c0_20 = arith.constant 0 : index
    %33 = vector.load %arg7[%c0_19, %c0_20] : memref<1x32xf32, #tpu.memory_space<vmem>>, vector<1x32xf32>
    %c0_21 = arith.constant 0 : index
    %c0_22 = arith.constant 0 : index
    %34 = vector.load %arg8[%c0_21, %c0_22] : memref<1x32xf32, #tpu.memory_space<vmem>>, vector<1x32xf32>
    %cst_23 = arith.constant dense<0.000000e+00> : vector<16xf32>
    %35 = vector.multi_reduction <add>, %32, %cst_23 [1] : vector<16x32xf32> to vector<16xf32>
    %36 = vector.shape_cast %35 : vector<16xf32> to vector<16x1xf32>
    %cst_24 = arith.constant 3.200000e+01 : f32
    %37 = vector.broadcast %cst_24 : f32 to vector<16x1xf32>
    %38 = arith.divf %36, %37 : vector<16x1xf32>
    %39 = vector.broadcast %38 : vector<16x1xf32> to vector<16x32xf32>
    %40 = arith.subf %32, %39 : vector<16x32xf32>
    %41 = arith.mulf %40, %40 : vector<16x32xf32>
    %cst_25 = arith.constant dense<0.000000e+00> : vector<16xf32>
    %42 = vector.multi_reduction <add>, %41, %cst_25 [1] : vector<16x32xf32> to vector<16xf32>
    %43 = vector.shape_cast %42 : vector<16xf32> to vector<16x1xf32>
    %cst_26 = arith.constant 3.200000e+01 : f32
    %44 = vector.broadcast %cst_26 : f32 to vector<16x1xf32>
    %45 = arith.divf %43, %44 : vector<16x1xf32>
    %cst_27 = arith.constant 9.99999974E-6 : f32
    %46 = vector.broadcast %cst_27 : f32 to vector<16x1xf32>
    %47 = arith.addf %45, %46 : vector<16x1xf32>
    %48 = math.rsqrt %47 : vector<16x1xf32>
    %49 = vector.broadcast %48 : vector<16x1xf32> to vector<16x32xf32>
    %50 = arith.mulf %40, %49 : vector<16x32xf32>
    %51 = vector.broadcast %33 : vector<1x32xf32> to vector<16x32xf32>
    %52 = arith.mulf %50, %51 : vector<16x32xf32>
    %53 = vector.broadcast %34 : vector<1x32xf32> to vector<16x32xf32>
    %54 = arith.addf %52, %53 : vector<16x32xf32>
    %c0_28 = arith.constant 0 : index
    %c0_29 = arith.constant 0 : index
    %55 = vector.load %arg9[%c0_28, %c0_29] : memref<32x64xbf16, #tpu.memory_space<vmem>>, vector<32x64xbf16>
    %56 = arith.truncf %54 : vector<16x32xf32> to vector<16x32xbf16>
    %cst_30 = arith.constant dense<0.000000e+00> : vector<16x64xf32>
    %57 = tpu.matmul %56, %55, %cst_30 {dimension_numbers = #tpu.dot_dimension_numbers<[1], [0], [0], [1], [0, 0, 1, 1], [], []>} : vector<16x32xbf16>, vector<32x64xbf16>, vector<16x64xf32> -> vector<16x64xf32>
    %c0_31 = arith.constant 0 : index
    %c0_32 = arith.constant 0 : index
    %58 = vector.load %arg10[%c0_31, %c0_32] : memref<1x64xf32, #tpu.memory_space<vmem>>, vector<1x64xf32>
    %59 = vector.broadcast %58 : vector<1x64xf32> to vector<16x64xf32>
    %60 = arith.addf %57, %59 : vector<16x64xf32>
    %61 = vector.shape_cast %60 : vector<16x64xf32> to vector<1x16x64xf32>
    %c0_33 = arith.constant 0 : index
    %c0_34 = arith.constant 0 : index
    %c0_35 = arith.constant 0 : index
    %62 = vector.load %arg11[%c0_33, %c0_34, %c0_35] : memref<1x16x64xf32, #tpu.memory_space<vmem>>, vector<1x16x64xf32>
    tpu.vector_store %arg11[%c0_33, %c0_34, %c0_35], %61 {strides = array<i32>} : memref<1x16x64xf32, #tpu.memory_space<vmem>>, vector<1x16x64xf32>,
    return
  }
  func.func @transform_0(%arg0: i32) -> (i32, i32, i32) {
    %c0_i32 = arith.constant 0 : i32
    %c0_i32_0 = arith.constant 0 : i32
    %c0_i32_1 = arith.constant 0 : i32
    return %arg0, %c0_i32, %c0_i32_0 : i32, i32, i32
  }
  func.func @transform_1(%arg0: i32) -> (i32, i32, i32) {
    %c0_i32 = arith.constant 0 : i32
    %c0_i32_0 = arith.constant 0 : i32
    %c0_i32_1 = arith.constant 0 : i32
    return %arg0, %c0_i32, %c0_i32_0 : i32, i32, i32
  }
  func.func @transform_2(%arg0: i32) -> (i32, i32) {
    %c0_i32 = arith.constant 0 : i32
    %c0_i32_0 = arith.constant 0 : i32
    %c0_i32_1 = arith.constant 0 : i32
    return %c0_i32, %c0_i32_0 : i32, i32
  }
  func.func @transform_3(%arg0: i32) -> (i32, i32) {
    %c0_i32 = arith.constant 0 : i32
    %c0_i32_0 = arith.constant 0 : i32
    %c0_i32_1 = arith.constant 0 : i32
    return %c0_i32, %c0_i32_0 : i32, i32
  }
  func.func @transform_4(%arg0: i32) -> (i32, i32) {
    %c0_i32 = arith.constant 0 : i32
    %c0_i32_0 = arith.constant 0 : i32
    %c0_i32_1 = arith.constant 0 : i32
    return %c0_i32, %c0_i32_0 : i32, i32
  }
  func.func @transform_5(%arg0: i32) -> (i32, i32) {
    %c0_i32 = arith.constant 0 : i32
    %c0_i32_0 = arith.constant 0 : i32
    %c0_i32_1 = arith.constant 0 : i32
    return %c0_i32, %c0_i32_0 : i32, i32
  }
  func.func @transform_6(%arg0: i32) -> (i32, i32) {
    %c0_i32 = arith.constant 0 : i32
    %c0_i32_0 = arith.constant 0 : i32
    %c0_i32_1 = arith.constant 0 : i32
    return %c0_i32, %c0_i32_0 : i32, i32
  }
  func.func @transform_7(%arg0: i32) -> (i32, i32) {
    %c0_i32 = arith.constant 0 : i32
    %c0_i32_0 = arith.constant 0 : i32
    %c0_i32_1 = arith.constant 0 : i32
    return %c0_i32, %c0_i32_0 : i32, i32
  }
  func.func @transform_8(%arg0: i32) -> (i32, i32) {
    %c0_i32 = arith.constant 0 : i32
    %c0_i32_0 = arith.constant 0 : i32
    %c0_i32_1 = arith.constant 0 : i32
    return %c0_i32, %c0_i32_0 : i32, i32
  }
  func.func @transform_9(%arg0: i32) -> (i32, i32) {
    %c0_i32 = arith.constant 0 : i32
    %c0_i32_0 = arith.constant 0 : i32
    %c0_i32_1 = arith.constant 0 : i32
    return %c0_i32, %c0_i32_0 : i32, i32
  }
  func.func @transform_10(%arg0: i32) -> (i32, i32, i32) {
    %c0_i32 = arith.constant 0 : i32
    %c0_i32_0 = arith.constant 0 : i32
    %c0_i32_1 = arith.constant 0 : i32
    return %arg0, %c0_i32, %c0_i32_0 : i32, i32, i32
  }
}

module attributes {stable_mosaic.version = 11 : i64} {
  func.func @_encoder_stack_kernel(%arg0: i32, %arg1: i32, %arg2: memref<1x16x64xf32, #tpu.memory_space<vmem>>, %arg3: memref<1x4x64x16xbf16, #tpu.memory_space<vmem>>, %arg4: memref<1x4x64x16xbf16, #tpu.memory_space<vmem>>, %arg5: memref<1x4x64x16xbf16, #tpu.memory_space<vmem>>, %arg6: memref<1x4x1x16xf32, #tpu.memory_space<vmem>>, %arg7: memref<1x4x1x16xf32, #tpu.memory_space<vmem>>, %arg8: memref<1x4x1x16xf32, #tpu.memory_space<vmem>>, %arg9: memref<1x4x16x64xbf16, #tpu.memory_space<vmem>>, %arg10: memref<1x1x64xf32, #tpu.memory_space<vmem>>, %arg11: memref<1x1x64xf32, #tpu.memory_space<vmem>>, %arg12: memref<1x1x64xf32, #tpu.memory_space<vmem>>, %arg13: memref<1x64x128xbf16, #tpu.memory_space<vmem>>, %arg14: memref<1x1x128xf32, #tpu.memory_space<vmem>>, %arg15: memref<1x128x64xbf16, #tpu.memory_space<vmem>>, %arg16: memref<1x1x64xf32, #tpu.memory_space<vmem>>, %arg17: memref<1x1x64xf32, #tpu.memory_space<vmem>>, %arg18: memref<1x1x64xf32, #tpu.memory_space<vmem>>, %arg19: memref<1x16x64xf32, #tpu.memory_space<vmem>>, %arg20: memref<16x64xf32, #tpu.memory_space<vmem>>) attributes {dimension_semantics = [#tpu.dimension_semantics<parallel>, #tpu.dimension_semantics<arbitrary>], iteration_bounds = array<i64: 2, 2>, scalar_prefetch = 0 : i64, scratch_operands = 1 : i64, tpu.core_type = #tpu.core_type<tc>, window_params = [{transform_indices = @transform_0, window_bounds = array<i64: 1, 16, 64>}, {transform_indices = @transform_1, window_bounds = array<i64: 1, 4, 64, 16>}, {transform_indices = @transform_2, window_bounds = array<i64: 1, 4, 64, 16>}, {transform_indices = @transform_3, window_bounds = array<i64: 1, 4, 64, 16>}, {transform_indices = @transform_4, window_bounds = array<i64: 1, 4, 1, 16>}, {transform_indices = @transform_5, window_bounds = array<i64: 1, 4, 1, 16>}, {transform_indices = @transform_6, window_bounds = array<i64: 1, 4, 1, 16>}, {transform_indices = @transform_7, window_bounds = array<i64: 1, 4, 16, 64>}, {transform_indices = @transform_8, window_bounds = array<i64: 1, 1, 64>}, {transform_indices = @transform_9, window_bounds = array<i64: 1, 1, 64>}, {transform_indices = @transform_10, window_bounds = array<i64: 1, 1, 64>}, {transform_indices = @transform_11, window_bounds = array<i64: 1, 64, 128>}, {transform_indices = @transform_12, window_bounds = array<i64: 1, 1, 128>}, {transform_indices = @transform_13, window_bounds = array<i64: 1, 128, 64>}, {transform_indices = @transform_14, window_bounds = array<i64: 1, 1, 64>}, {transform_indices = @transform_15, window_bounds = array<i64: 1, 1, 64>}, {transform_indices = @transform_16, window_bounds = array<i64: 1, 1, 64>}, {transform_indices = @transform_17, window_bounds = array<i64: 1, 16, 64>}]} {
    %c0_i32 = arith.constant 0 : i32
    %0 = arith.cmpi eq, %arg1, %c0_i32 : i32
    %1 = arith.extui %0 : i1 to i32
    %c0_i32_0 = arith.constant 0 : i32
    %2 = arith.cmpi ne, %1, %c0_i32_0 : i32
    scf.if %2 {
      %c0_110 = arith.constant 0 : index
      %c0_111 = arith.constant 0 : index
      %c0_112 = arith.constant 0 : index
      %274 = vector.load %arg2[%c0_110, %c0_111, %c0_112] : memref<1x16x64xf32, #tpu.memory_space<vmem>>, vector<1x16x64xf32>
      %275 = vector.shape_cast %274 : vector<1x16x64xf32> to vector<16x64xf32>
      %c0_113 = arith.constant 0 : index
      %c0_114 = arith.constant 0 : index
      %276 = vector.load %arg20[%c0_113, %c0_114] : memref<16x64xf32, #tpu.memory_space<vmem>>, vector<16x64xf32>
      tpu.vector_store %arg20[%c0_113, %c0_114], %275 {strides = array<i32>} : memref<16x64xf32, #tpu.memory_space<vmem>>, vector<16x64xf32>,
    } else {
    }
    %c0 = arith.constant 0 : index
    %c0_1 = arith.constant 0 : index
    %3 = vector.load %arg20[%c0, %c0_1] : memref<16x64xf32, #tpu.memory_space<vmem>>, vector<16x64xf32>
    %4 = arith.truncf %3 : vector<16x64xf32> to vector<16x64xbf16>
    %c0_2 = arith.constant 0 : index
    %c0_3 = arith.constant 0 : index
    %c0_4 = arith.constant 0 : index
    %c0_5 = arith.constant 0 : index
    %5 = vector.load %arg3[%c0_2, %c0_3, %c0_4, %c0_5] : memref<1x4x64x16xbf16, #tpu.memory_space<vmem>>, vector<1x4x64x16xbf16>
    %6 = vector.shape_cast %5 : vector<1x4x64x16xbf16> to vector<4x64x16xbf16>
    %c0_6 = arith.constant 0 : index
    %c0_7 = arith.constant 0 : index
    %c0_8 = arith.constant 0 : index
    %c0_9 = arith.constant 0 : index
    %7 = vector.load %arg4[%c0_6, %c0_7, %c0_8, %c0_9] : memref<1x4x64x16xbf16, #tpu.memory_space<vmem>>, vector<1x4x64x16xbf16>
    %8 = vector.shape_cast %7 : vector<1x4x64x16xbf16> to vector<4x64x16xbf16>
    %c0_10 = arith.constant 0 : index
    %c0_11 = arith.constant 0 : index
    %c0_12 = arith.constant 0 : index
    %c0_13 = arith.constant 0 : index
    %9 = vector.load %arg5[%c0_10, %c0_11, %c0_12, %c0_13] : memref<1x4x64x16xbf16, #tpu.memory_space<vmem>>, vector<1x4x64x16xbf16>
    %10 = vector.shape_cast %9 : vector<1x4x64x16xbf16> to vector<4x64x16xbf16>
    %c0_14 = arith.constant 0 : index
    %c0_15 = arith.constant 0 : index
    %c0_16 = arith.constant 0 : index
    %c0_17 = arith.constant 0 : index
    %11 = vector.load %arg9[%c0_14, %c0_15, %c0_16, %c0_17] : memref<1x4x16x64xbf16, #tpu.memory_space<vmem>>, vector<1x4x16x64xbf16>
    %12 = vector.shape_cast %11 : vector<1x4x16x64xbf16> to vector<4x16x64xbf16>
    %c0_18 = arith.constant 0 : index
    %c0_19 = arith.constant 0 : index
    %c0_20 = arith.constant 0 : index
    %c0_21 = arith.constant 0 : index
    %13 = vector.load %arg6[%c0_18, %c0_19, %c0_20, %c0_21] : memref<1x4x1x16xf32, #tpu.memory_space<vmem>>, vector<1x4x1x16xf32>
    %14 = vector.shape_cast %13 : vector<1x4x1x16xf32> to vector<4x1x16xf32>
    %c0_22 = arith.constant 0 : index
    %c0_23 = arith.constant 0 : index
    %c0_24 = arith.constant 0 : index
    %c0_25 = arith.constant 0 : index
    %15 = vector.load %arg7[%c0_22, %c0_23, %c0_24, %c0_25] : memref<1x4x1x16xf32, #tpu.memory_space<vmem>>, vector<1x4x1x16xf32>
    %16 = vector.shape_cast %15 : vector<1x4x1x16xf32> to vector<4x1x16xf32>
    %c0_26 = arith.constant 0 : index
    %c0_27 = arith.constant 0 : index
    %c0_28 = arith.constant 0 : index
    %c0_29 = arith.constant 0 : index
    %17 = vector.load %arg8[%c0_26, %c0_27, %c0_28, %c0_29] : memref<1x4x1x16xf32, #tpu.memory_space<vmem>>, vector<1x4x1x16xf32>
    %18 = vector.shape_cast %17 : vector<1x4x1x16xf32> to vector<4x1x16xf32>
    %cst = arith.constant 0.000000e+00 : f32
    %19 = vector.broadcast %cst : f32 to vector<16x64xf32>
    %20 = vector.extract_strided_slice %6 {offsets = [0, 0, 0], sizes = [1, 64, 16], strides = [1, 1, 1]} : vector<4x64x16xbf16> to vector<1x64x16xbf16>
    %21 = vector.shape_cast %20 : vector<1x64x16xbf16> to vector<64x16xbf16>
    %cst_30 = arith.constant dense<0.000000e+00> : vector<16x16xf32>
    %22 = tpu.matmul %4, %21, %cst_30 {dimension_numbers = #tpu.dot_dimension_numbers<[1], [0], [0], [1], [0, 0, 1, 1], [], []>} : vector<16x64xbf16>, vector<64x16xbf16>, vector<16x16xf32> -> vector<16x16xf32>
    %23 = vector.extract_strided_slice %14 {offsets = [0, 0, 0], sizes = [1, 1, 16], strides = [1, 1, 1]} : vector<4x1x16xf32> to vector<1x1x16xf32>
    %24 = vector.shape_cast %23 : vector<1x1x16xf32> to vector<1x16xf32>
    %25 = vector.broadcast %24 : vector<1x16xf32> to vector<16x16xf32>
    %26 = arith.addf %22, %25 : vector<16x16xf32>
    %27 = vector.extract_strided_slice %8 {offsets = [0, 0, 0], sizes = [1, 64, 16], strides = [1, 1, 1]} : vector<4x64x16xbf16> to vector<1x64x16xbf16>
    %28 = vector.shape_cast %27 : vector<1x64x16xbf16> to vector<64x16xbf16>
    %cst_31 = arith.constant dense<0.000000e+00> : vector<16x16xf32>
    %29 = tpu.matmul %4, %28, %cst_31 {dimension_numbers = #tpu.dot_dimension_numbers<[1], [0], [0], [1], [0, 0, 1, 1], [], []>} : vector<16x64xbf16>, vector<64x16xbf16>, vector<16x16xf32> -> vector<16x16xf32>
    %30 = vector.extract_strided_slice %16 {offsets = [0, 0, 0], sizes = [1, 1, 16], strides = [1, 1, 1]} : vector<4x1x16xf32> to vector<1x1x16xf32>
    %31 = vector.shape_cast %30 : vector<1x1x16xf32> to vector<1x16xf32>
    %32 = vector.broadcast %31 : vector<1x16xf32> to vector<16x16xf32>
    %33 = arith.addf %29, %32 : vector<16x16xf32>
    %34 = vector.extract_strided_slice %10 {offsets = [0, 0, 0], sizes = [1, 64, 16], strides = [1, 1, 1]} : vector<4x64x16xbf16> to vector<1x64x16xbf16>
    %35 = vector.shape_cast %34 : vector<1x64x16xbf16> to vector<64x16xbf16>
    %cst_32 = arith.constant dense<0.000000e+00> : vector<16x16xf32>
    %36 = tpu.matmul %4, %35, %cst_32 {dimension_numbers = #tpu.dot_dimension_numbers<[1], [0], [0], [1], [0, 0, 1, 1], [], []>} : vector<16x64xbf16>, vector<64x16xbf16>, vector<16x16xf32> -> vector<16x16xf32>
    %37 = vector.extract_strided_slice %18 {offsets = [0, 0, 0], sizes = [1, 1, 16], strides = [1, 1, 1]} : vector<4x1x16xf32> to vector<1x1x16xf32>
    %38 = vector.shape_cast %37 : vector<1x1x16xf32> to vector<1x16xf32>
    %39 = vector.broadcast %38 : vector<1x16xf32> to vector<16x16xf32>
    %40 = arith.addf %36, %39 : vector<16x16xf32>
    %41 = arith.truncf %26 : vector<16x16xf32> to vector<16x16xbf16>
    %42 = arith.truncf %33 : vector<16x16xf32> to vector<16x16xbf16>
    %cst_33 = arith.constant dense<0.000000e+00> : vector<16x16xf32>
    %43 = tpu.matmul %41, %42, %cst_33 {dimension_numbers = #tpu.dot_dimension_numbers<[1], [1], [0], [0], [0, 0, 1, 0], [], []>} : vector<16x16xbf16>, vector<16x16xbf16>, vector<16x16xf32> -> vector<16x16xf32>
    %cst_34 = arith.constant dense<0xFF800000> : vector<16xf32>
    %44 = vector.multi_reduction <maximumf>, %43, %cst_34 [1] : vector<16x16xf32> to vector<16xf32>
    %45 = vector.shape_cast %44 : vector<16xf32> to vector<16x1xf32>
    %46 = vector.broadcast %45 : vector<16x1xf32> to vector<16x16xf32>
    %47 = arith.subf %43, %46 : vector<16x16xf32>
    %48 = math.exp %47 : vector<16x16xf32>
    %cst_35 = arith.constant dense<0.000000e+00> : vector<16xf32>
    %49 = vector.multi_reduction <add>, %48, %cst_35 [1] : vector<16x16xf32> to vector<16xf32>
    %50 = vector.shape_cast %49 : vector<16xf32> to vector<16x1xf32>
    %51 = tpu.reciprocal %50 {approx = true} : vector<16x1xf32> -> vector<16x1xf32>
    %52 = vector.broadcast %51 : vector<16x1xf32> to vector<16x16xf32>
    %53 = arith.mulf %48, %52 : vector<16x16xf32>
    %54 = arith.truncf %53 : vector<16x16xf32> to vector<16x16xbf16>
    %55 = arith.truncf %40 : vector<16x16xf32> to vector<16x16xbf16>
    %cst_36 = arith.constant dense<0.000000e+00> : vector<16x16xf32>
    %56 = tpu.matmul %54, %55, %cst_36 {dimension_numbers = #tpu.dot_dimension_numbers<[1], [0], [0], [1], [0, 0, 1, 1], [], []>} : vector<16x16xbf16>, vector<16x16xbf16>, vector<16x16xf32> -> vector<16x16xf32>
    %57 = arith.truncf %56 : vector<16x16xf32> to vector<16x16xbf16>
    %58 = vector.extract_strided_slice %12 {offsets = [0, 0, 0], sizes = [1, 16, 64], strides = [1, 1, 1]} : vector<4x16x64xbf16> to vector<1x16x64xbf16>
    %59 = vector.shape_cast %58 : vector<1x16x64xbf16> to vector<16x64xbf16>
    %cst_37 = arith.constant dense<0.000000e+00> : vector<16x64xf32>
    %60 = tpu.matmul %57, %59, %cst_37 {dimension_numbers = #tpu.dot_dimension_numbers<[1], [0], [0], [1], [0, 0, 1, 1], [], []>} : vector<16x16xbf16>, vector<16x64xbf16>, vector<16x64xf32> -> vector<16x64xf32>
    %61 = arith.addf %19, %60 : vector<16x64xf32>
    %62 = vector.extract_strided_slice %6 {offsets = [1, 0, 0], sizes = [1, 64, 16], strides = [1, 1, 1]} : vector<4x64x16xbf16> to vector<1x64x16xbf16>
    %63 = vector.shape_cast %62 : vector<1x64x16xbf16> to vector<64x16xbf16>
    %cst_38 = arith.constant dense<0.000000e+00> : vector<16x16xf32>
    %64 = tpu.matmul %4, %63, %cst_38 {dimension_numbers = #tpu.dot_dimension_numbers<[1], [0], [0], [1], [0, 0, 1, 1], [], []>} : vector<16x64xbf16>, vector<64x16xbf16>, vector<16x16xf32> -> vector<16x16xf32>
    %65 = vector.extract_strided_slice %14 {offsets = [1, 0, 0], sizes = [1, 1, 16], strides = [1, 1, 1]} : vector<4x1x16xf32> to vector<1x1x16xf32>
    %66 = vector.shape_cast %65 : vector<1x1x16xf32> to vector<1x16xf32>
    %67 = vector.broadcast %66 : vector<1x16xf32> to vector<16x16xf32>
    %68 = arith.addf %64, %67 : vector<16x16xf32>
    %69 = vector.extract_strided_slice %8 {offsets = [1, 0, 0], sizes = [1, 64, 16], strides = [1, 1, 1]} : vector<4x64x16xbf16> to vector<1x64x16xbf16>
    %70 = vector.shape_cast %69 : vector<1x64x16xbf16> to vector<64x16xbf16>
    %cst_39 = arith.constant dense<0.000000e+00> : vector<16x16xf32>
    %71 = tpu.matmul %4, %70, %cst_39 {dimension_numbers = #tpu.dot_dimension_numbers<[1], [0], [0], [1], [0, 0, 1, 1], [], []>} : vector<16x64xbf16>, vector<64x16xbf16>, vector<16x16xf32> -> vector<16x16xf32>
    %72 = vector.extract_strided_slice %16 {offsets = [1, 0, 0], sizes = [1, 1, 16], strides = [1, 1, 1]} : vector<4x1x16xf32> to vector<1x1x16xf32>
    %73 = vector.shape_cast %72 : vector<1x1x16xf32> to vector<1x16xf32>
    %74 = vector.broadcast %73 : vector<1x16xf32> to vector<16x16xf32>
    %75 = arith.addf %71, %74 : vector<16x16xf32>
    %76 = vector.extract_strided_slice %10 {offsets = [1, 0, 0], sizes = [1, 64, 16], strides = [1, 1, 1]} : vector<4x64x16xbf16> to vector<1x64x16xbf16>
    %77 = vector.shape_cast %76 : vector<1x64x16xbf16> to vector<64x16xbf16>
    %cst_40 = arith.constant dense<0.000000e+00> : vector<16x16xf32>
    %78 = tpu.matmul %4, %77, %cst_40 {dimension_numbers = #tpu.dot_dimension_numbers<[1], [0], [0], [1], [0, 0, 1, 1], [], []>} : vector<16x64xbf16>, vector<64x16xbf16>, vector<16x16xf32> -> vector<16x16xf32>
    %79 = vector.extract_strided_slice %18 {offsets = [1, 0, 0], sizes = [1, 1, 16], strides = [1, 1, 1]} : vector<4x1x16xf32> to vector<1x1x16xf32>
    %80 = vector.shape_cast %79 : vector<1x1x16xf32> to vector<1x16xf32>
    %81 = vector.broadcast %80 : vector<1x16xf32> to vector<16x16xf32>
    %82 = arith.addf %78, %81 : vector<16x16xf32>
    %83 = arith.truncf %68 : vector<16x16xf32> to vector<16x16xbf16>
    %84 = arith.truncf %75 : vector<16x16xf32> to vector<16x16xbf16>
    %cst_41 = arith.constant dense<0.000000e+00> : vector<16x16xf32>
    %85 = tpu.matmul %83, %84, %cst_41 {dimension_numbers = #tpu.dot_dimension_numbers<[1], [1], [0], [0], [0, 0, 1, 0], [], []>} : vector<16x16xbf16>, vector<16x16xbf16>, vector<16x16xf32> -> vector<16x16xf32>
    %cst_42 = arith.constant dense<0xFF800000> : vector<16xf32>
    %86 = vector.multi_reduction <maximumf>, %85, %cst_42 [1] : vector<16x16xf32> to vector<16xf32>
    %87 = vector.shape_cast %86 : vector<16xf32> to vector<16x1xf32>
    %88 = vector.broadcast %87 : vector<16x1xf32> to vector<16x16xf32>
    %89 = arith.subf %85, %88 : vector<16x16xf32>
    %90 = math.exp %89 : vector<16x16xf32>
    %cst_43 = arith.constant dense<0.000000e+00> : vector<16xf32>
    %91 = vector.multi_reduction <add>, %90, %cst_43 [1] : vector<16x16xf32> to vector<16xf32>
    %92 = vector.shape_cast %91 : vector<16xf32> to vector<16x1xf32>
    %93 = tpu.reciprocal %92 {approx = true} : vector<16x1xf32> -> vector<16x1xf32>
    %94 = vector.broadcast %93 : vector<16x1xf32> to vector<16x16xf32>
    %95 = arith.mulf %90, %94 : vector<16x16xf32>
    %96 = arith.truncf %95 : vector<16x16xf32> to vector<16x16xbf16>
    %97 = arith.truncf %82 : vector<16x16xf32> to vector<16x16xbf16>
    %cst_44 = arith.constant dense<0.000000e+00> : vector<16x16xf32>
    %98 = tpu.matmul %96, %97, %cst_44 {dimension_numbers = #tpu.dot_dimension_numbers<[1], [0], [0], [1], [0, 0, 1, 1], [], []>} : vector<16x16xbf16>, vector<16x16xbf16>, vector<16x16xf32> -> vector<16x16xf32>
    %99 = arith.truncf %98 : vector<16x16xf32> to vector<16x16xbf16>
    %100 = vector.extract_strided_slice %12 {offsets = [1, 0, 0], sizes = [1, 16, 64], strides = [1, 1, 1]} : vector<4x16x64xbf16> to vector<1x16x64xbf16>
    %101 = vector.shape_cast %100 : vector<1x16x64xbf16> to vector<16x64xbf16>
    %cst_45 = arith.constant dense<0.000000e+00> : vector<16x64xf32>
    %102 = tpu.matmul %99, %101, %cst_45 {dimension_numbers = #tpu.dot_dimension_numbers<[1], [0], [0], [1], [0, 0, 1, 1], [], []>} : vector<16x16xbf16>, vector<16x64xbf16>, vector<16x64xf32> -> vector<16x64xf32>
    %103 = arith.addf %61, %102 : vector<16x64xf32>
    %104 = vector.extract_strided_slice %6 {offsets = [2, 0, 0], sizes = [1, 64, 16], strides = [1, 1, 1]} : vector<4x64x16xbf16> to vector<1x64x16xbf16>
    %105 = vector.shape_cast %104 : vector<1x64x16xbf16> to vector<64x16xbf16>
    %cst_46 = arith.constant dense<0.000000e+00> : vector<16x16xf32>
    %106 = tpu.matmul %4, %105, %cst_46 {dimension_numbers = #tpu.dot_dimension_numbers<[1], [0], [0], [1], [0, 0, 1, 1], [], []>} : vector<16x64xbf16>, vector<64x16xbf16>, vector<16x16xf32> -> vector<16x16xf32>
    %107 = vector.extract_strided_slice %14 {offsets = [2, 0, 0], sizes = [1, 1, 16], strides = [1, 1, 1]} : vector<4x1x16xf32> to vector<1x1x16xf32>
    %108 = vector.shape_cast %107 : vector<1x1x16xf32> to vector<1x16xf32>
    %109 = vector.broadcast %108 : vector<1x16xf32> to vector<16x16xf32>
    %110 = arith.addf %106, %109 : vector<16x16xf32>
    %111 = vector.extract_strided_slice %8 {offsets = [2, 0, 0], sizes = [1, 64, 16], strides = [1, 1, 1]} : vector<4x64x16xbf16> to vector<1x64x16xbf16>
    %112 = vector.shape_cast %111 : vector<1x64x16xbf16> to vector<64x16xbf16>
    %cst_47 = arith.constant dense<0.000000e+00> : vector<16x16xf32>
    %113 = tpu.matmul %4, %112, %cst_47 {dimension_numbers = #tpu.dot_dimension_numbers<[1], [0], [0], [1], [0, 0, 1, 1], [], []>} : vector<16x64xbf16>, vector<64x16xbf16>, vector<16x16xf32> -> vector<16x16xf32>
    %114 = vector.extract_strided_slice %16 {offsets = [2, 0, 0], sizes = [1, 1, 16], strides = [1, 1, 1]} : vector<4x1x16xf32> to vector<1x1x16xf32>
    %115 = vector.shape_cast %114 : vector<1x1x16xf32> to vector<1x16xf32>
    %116 = vector.broadcast %115 : vector<1x16xf32> to vector<16x16xf32>
    %117 = arith.addf %113, %116 : vector<16x16xf32>
    %118 = vector.extract_strided_slice %10 {offsets = [2, 0, 0], sizes = [1, 64, 16], strides = [1, 1, 1]} : vector<4x64x16xbf16> to vector<1x64x16xbf16>
    %119 = vector.shape_cast %118 : vector<1x64x16xbf16> to vector<64x16xbf16>
    %cst_48 = arith.constant dense<0.000000e+00> : vector<16x16xf32>
    %120 = tpu.matmul %4, %119, %cst_48 {dimension_numbers = #tpu.dot_dimension_numbers<[1], [0], [0], [1], [0, 0, 1, 1], [], []>} : vector<16x64xbf16>, vector<64x16xbf16>, vector<16x16xf32> -> vector<16x16xf32>
    %121 = vector.extract_strided_slice %18 {offsets = [2, 0, 0], sizes = [1, 1, 16], strides = [1, 1, 1]} : vector<4x1x16xf32> to vector<1x1x16xf32>
    %122 = vector.shape_cast %121 : vector<1x1x16xf32> to vector<1x16xf32>
    %123 = vector.broadcast %122 : vector<1x16xf32> to vector<16x16xf32>
    %124 = arith.addf %120, %123 : vector<16x16xf32>
    %125 = arith.truncf %110 : vector<16x16xf32> to vector<16x16xbf16>
    %126 = arith.truncf %117 : vector<16x16xf32> to vector<16x16xbf16>
    %cst_49 = arith.constant dense<0.000000e+00> : vector<16x16xf32>
    %127 = tpu.matmul %125, %126, %cst_49 {dimension_numbers = #tpu.dot_dimension_numbers<[1], [1], [0], [0], [0, 0, 1, 0], [], []>} : vector<16x16xbf16>, vector<16x16xbf16>, vector<16x16xf32> -> vector<16x16xf32>
    %cst_50 = arith.constant dense<0xFF800000> : vector<16xf32>
    %128 = vector.multi_reduction <maximumf>, %127, %cst_50 [1] : vector<16x16xf32> to vector<16xf32>
    %129 = vector.shape_cast %128 : vector<16xf32> to vector<16x1xf32>
    %130 = vector.broadcast %129 : vector<16x1xf32> to vector<16x16xf32>
    %131 = arith.subf %127, %130 : vector<16x16xf32>
    %132 = math.exp %131 : vector<16x16xf32>
    %cst_51 = arith.constant dense<0.000000e+00> : vector<16xf32>
    %133 = vector.multi_reduction <add>, %132, %cst_51 [1] : vector<16x16xf32> to vector<16xf32>
    %134 = vector.shape_cast %133 : vector<16xf32> to vector<16x1xf32>
    %135 = tpu.reciprocal %134 {approx = true} : vector<16x1xf32> -> vector<16x1xf32>
    %136 = vector.broadcast %135 : vector<16x1xf32> to vector<16x16xf32>
    %137 = arith.mulf %132, %136 : vector<16x16xf32>
    %138 = arith.truncf %137 : vector<16x16xf32> to vector<16x16xbf16>
    %139 = arith.truncf %124 : vector<16x16xf32> to vector<16x16xbf16>
    %cst_52 = arith.constant dense<0.000000e+00> : vector<16x16xf32>
    %140 = tpu.matmul %138, %139, %cst_52 {dimension_numbers = #tpu.dot_dimension_numbers<[1], [0], [0], [1], [0, 0, 1, 1], [], []>} : vector<16x16xbf16>, vector<16x16xbf16>, vector<16x16xf32> -> vector<16x16xf32>
    %141 = arith.truncf %140 : vector<16x16xf32> to vector<16x16xbf16>
    %142 = vector.extract_strided_slice %12 {offsets = [2, 0, 0], sizes = [1, 16, 64], strides = [1, 1, 1]} : vector<4x16x64xbf16> to vector<1x16x64xbf16>
    %143 = vector.shape_cast %142 : vector<1x16x64xbf16> to vector<16x64xbf16>
    %cst_53 = arith.constant dense<0.000000e+00> : vector<16x64xf32>
    %144 = tpu.matmul %141, %143, %cst_53 {dimension_numbers = #tpu.dot_dimension_numbers<[1], [0], [0], [1], [0, 0, 1, 1], [], []>} : vector<16x16xbf16>, vector<16x64xbf16>, vector<16x64xf32> -> vector<16x64xf32>
    %145 = arith.addf %103, %144 : vector<16x64xf32>
    %146 = vector.extract_strided_slice %6 {offsets = [3, 0, 0], sizes = [1, 64, 16], strides = [1, 1, 1]} : vector<4x64x16xbf16> to vector<1x64x16xbf16>
    %147 = vector.shape_cast %146 : vector<1x64x16xbf16> to vector<64x16xbf16>
    %cst_54 = arith.constant dense<0.000000e+00> : vector<16x16xf32>
    %148 = tpu.matmul %4, %147, %cst_54 {dimension_numbers = #tpu.dot_dimension_numbers<[1], [0], [0], [1], [0, 0, 1, 1], [], []>} : vector<16x64xbf16>, vector<64x16xbf16>, vector<16x16xf32> -> vector<16x16xf32>
    %149 = vector.extract_strided_slice %14 {offsets = [3, 0, 0], sizes = [1, 1, 16], strides = [1, 1, 1]} : vector<4x1x16xf32> to vector<1x1x16xf32>
    %150 = vector.shape_cast %149 : vector<1x1x16xf32> to vector<1x16xf32>
    %151 = vector.broadcast %150 : vector<1x16xf32> to vector<16x16xf32>
    %152 = arith.addf %148, %151 : vector<16x16xf32>
    %153 = vector.extract_strided_slice %8 {offsets = [3, 0, 0], sizes = [1, 64, 16], strides = [1, 1, 1]} : vector<4x64x16xbf16> to vector<1x64x16xbf16>
    %154 = vector.shape_cast %153 : vector<1x64x16xbf16> to vector<64x16xbf16>
    %cst_55 = arith.constant dense<0.000000e+00> : vector<16x16xf32>
    %155 = tpu.matmul %4, %154, %cst_55 {dimension_numbers = #tpu.dot_dimension_numbers<[1], [0], [0], [1], [0, 0, 1, 1], [], []>} : vector<16x64xbf16>, vector<64x16xbf16>, vector<16x16xf32> -> vector<16x16xf32>
    %156 = vector.extract_strided_slice %16 {offsets = [3, 0, 0], sizes = [1, 1, 16], strides = [1, 1, 1]} : vector<4x1x16xf32> to vector<1x1x16xf32>
    %157 = vector.shape_cast %156 : vector<1x1x16xf32> to vector<1x16xf32>
    %158 = vector.broadcast %157 : vector<1x16xf32> to vector<16x16xf32>
    %159 = arith.addf %155, %158 : vector<16x16xf32>
    %160 = vector.extract_strided_slice %10 {offsets = [3, 0, 0], sizes = [1, 64, 16], strides = [1, 1, 1]} : vector<4x64x16xbf16> to vector<1x64x16xbf16>
    %161 = vector.shape_cast %160 : vector<1x64x16xbf16> to vector<64x16xbf16>
    %cst_56 = arith.constant dense<0.000000e+00> : vector<16x16xf32>
    %162 = tpu.matmul %4, %161, %cst_56 {dimension_numbers = #tpu.dot_dimension_numbers<[1], [0], [0], [1], [0, 0, 1, 1], [], []>} : vector<16x64xbf16>, vector<64x16xbf16>, vector<16x16xf32> -> vector<16x16xf32>
    %163 = vector.extract_strided_slice %18 {offsets = [3, 0, 0], sizes = [1, 1, 16], strides = [1, 1, 1]} : vector<4x1x16xf32> to vector<1x1x16xf32>
    %164 = vector.shape_cast %163 : vector<1x1x16xf32> to vector<1x16xf32>
    %165 = vector.broadcast %164 : vector<1x16xf32> to vector<16x16xf32>
    %166 = arith.addf %162, %165 : vector<16x16xf32>
    %167 = arith.truncf %152 : vector<16x16xf32> to vector<16x16xbf16>
    %168 = arith.truncf %159 : vector<16x16xf32> to vector<16x16xbf16>
    %cst_57 = arith.constant dense<0.000000e+00> : vector<16x16xf32>
    %169 = tpu.matmul %167, %168, %cst_57 {dimension_numbers = #tpu.dot_dimension_numbers<[1], [1], [0], [0], [0, 0, 1, 0], [], []>} : vector<16x16xbf16>, vector<16x16xbf16>, vector<16x16xf32> -> vector<16x16xf32>
    %cst_58 = arith.constant dense<0xFF800000> : vector<16xf32>
    %170 = vector.multi_reduction <maximumf>, %169, %cst_58 [1] : vector<16x16xf32> to vector<16xf32>
    %171 = vector.shape_cast %170 : vector<16xf32> to vector<16x1xf32>
    %172 = vector.broadcast %171 : vector<16x1xf32> to vector<16x16xf32>
    %173 = arith.subf %169, %172 : vector<16x16xf32>
    %174 = math.exp %173 : vector<16x16xf32>
    %cst_59 = arith.constant dense<0.000000e+00> : vector<16xf32>
    %175 = vector.multi_reduction <add>, %174, %cst_59 [1] : vector<16x16xf32> to vector<16xf32>
    %176 = vector.shape_cast %175 : vector<16xf32> to vector<16x1xf32>
    %177 = tpu.reciprocal %176 {approx = true} : vector<16x1xf32> -> vector<16x1xf32>
    %178 = vector.broadcast %177 : vector<16x1xf32> to vector<16x16xf32>
    %179 = arith.mulf %174, %178 : vector<16x16xf32>
    %180 = arith.truncf %179 : vector<16x16xf32> to vector<16x16xbf16>
    %181 = arith.truncf %166 : vector<16x16xf32> to vector<16x16xbf16>
    %cst_60 = arith.constant dense<0.000000e+00> : vector<16x16xf32>
    %182 = tpu.matmul %180, %181, %cst_60 {dimension_numbers = #tpu.dot_dimension_numbers<[1], [0], [0], [1], [0, 0, 1, 1], [], []>} : vector<16x16xbf16>, vector<16x16xbf16>, vector<16x16xf32> -> vector<16x16xf32>
    %183 = arith.truncf %182 : vector<16x16xf32> to vector<16x16xbf16>
    %184 = vector.extract_strided_slice %12 {offsets = [3, 0, 0], sizes = [1, 16, 64], strides = [1, 1, 1]} : vector<4x16x64xbf16> to vector<1x16x64xbf16>
    %185 = vector.shape_cast %184 : vector<1x16x64xbf16> to vector<16x64xbf16>
    %cst_61 = arith.constant dense<0.000000e+00> : vector<16x64xf32>
    %186 = tpu.matmul %183, %185, %cst_61 {dimension_numbers = #tpu.dot_dimension_numbers<[1], [0], [0], [1], [0, 0, 1, 1], [], []>} : vector<16x16xbf16>, vector<16x64xbf16>, vector<16x64xf32> -> vector<16x64xf32>
    %187 = arith.addf %145, %186 : vector<16x64xf32>
    %188 = arith.addf %3, %187 : vector<16x64xf32>
    %c0_62 = arith.constant 0 : index
    %c0_63 = arith.constant 0 : index
    %c0_64 = arith.constant 0 : index
    %189 = vector.load %arg10[%c0_62, %c0_63, %c0_64] : memref<1x1x64xf32, #tpu.memory_space<vmem>>, vector<1x1x64xf32>
    %190 = vector.shape_cast %189 : vector<1x1x64xf32> to vector<1x64xf32>
    %191 = vector.broadcast %190 : vector<1x64xf32> to vector<16x64xf32>
    %192 = arith.addf %188, %191 : vector<16x64xf32>
    %c0_65 = arith.constant 0 : index
    %c0_66 = arith.constant 0 : index
    %c0_67 = arith.constant 0 : index
    %193 = vector.load %arg11[%c0_65, %c0_66, %c0_67] : memref<1x1x64xf32, #tpu.memory_space<vmem>>, vector<1x1x64xf32>
    %194 = vector.shape_cast %193 : vector<1x1x64xf32> to vector<1x64xf32>
    %c0_68 = arith.constant 0 : index
    %c0_69 = arith.constant 0 : index
    %c0_70 = arith.constant 0 : index
    %195 = vector.load %arg12[%c0_68, %c0_69, %c0_70] : memref<1x1x64xf32, #tpu.memory_space<vmem>>, vector<1x1x64xf32>
    %196 = vector.shape_cast %195 : vector<1x1x64xf32> to vector<1x64xf32>
    %cst_71 = arith.constant dense<0.000000e+00> : vector<16xf32>
    %197 = vector.multi_reduction <add>, %192, %cst_71 [1] : vector<16x64xf32> to vector<16xf32>
    %198 = vector.shape_cast %197 : vector<16xf32> to vector<16x1xf32>
    %cst_72 = arith.constant 6.400000e+01 : f32
    %199 = vector.broadcast %cst_72 : f32 to vector<16x1xf32>
    %200 = arith.divf %198, %199 : vector<16x1xf32>
    %201 = vector.broadcast %200 : vector<16x1xf32> to vector<16x64xf32>
    %202 = arith.subf %192, %201 : vector<16x64xf32>
    %203 = arith.mulf %202, %202 : vector<16x64xf32>
    %cst_73 = arith.constant dense<0.000000e+00> : vector<16xf32>
    %204 = vector.multi_reduction <add>, %203, %cst_73 [1] : vector<16x64xf32> to vector<16xf32>
    %205 = vector.shape_cast %204 : vector<16xf32> to vector<16x1xf32>
    %cst_74 = arith.constant 6.400000e+01 : f32
    %206 = vector.broadcast %cst_74 : f32 to vector<16x1xf32>
    %207 = arith.divf %205, %206 : vector<16x1xf32>
    %cst_75 = arith.constant 9.99999974E-6 : f32
    %208 = vector.broadcast %cst_75 : f32 to vector<16x1xf32>
    %209 = arith.addf %207, %208 : vector<16x1xf32>
    %210 = math.rsqrt %209 : vector<16x1xf32>
    %211 = vector.broadcast %210 : vector<16x1xf32> to vector<16x64xf32>
    %212 = arith.mulf %202, %211 : vector<16x64xf32>
    %213 = vector.broadcast %194 : vector<1x64xf32> to vector<16x64xf32>
    %214 = arith.mulf %212, %213 : vector<16x64xf32>
    %215 = vector.broadcast %196 : vector<1x64xf32> to vector<16x64xf32>
    %216 = arith.addf %214, %215 : vector<16x64xf32>
    %c0_76 = arith.constant 0 : index
    %c0_77 = arith.constant 0 : index
    %c0_78 = arith.constant 0 : index
    %217 = vector.load %arg13[%c0_76, %c0_77, %c0_78] : memref<1x64x128xbf16, #tpu.memory_space<vmem>>, vector<1x64x128xbf16>
    %218 = vector.shape_cast %217 : vector<1x64x128xbf16> to vector<64x128xbf16>
    %219 = arith.truncf %216 : vector<16x64xf32> to vector<16x64xbf16>
    %cst_79 = arith.constant dense<0.000000e+00> : vector<16x128xf32>
    %220 = tpu.matmul %219, %218, %cst_79 {dimension_numbers = #tpu.dot_dimension_numbers<[1], [0], [0], [1], [0, 0, 1, 1], [], []>} : vector<16x64xbf16>, vector<64x128xbf16>, vector<16x128xf32> -> vector<16x128xf32>
    %c0_80 = arith.constant 0 : index
    %c0_81 = arith.constant 0 : index
    %c0_82 = arith.constant 0 : index
    %221 = vector.load %arg14[%c0_80, %c0_81, %c0_82] : memref<1x1x128xf32, #tpu.memory_space<vmem>>, vector<1x1x128xf32>
    %222 = vector.shape_cast %221 : vector<1x1x128xf32> to vector<1x128xf32>
    %223 = vector.broadcast %222 : vector<1x128xf32> to vector<16x128xf32>
    %224 = arith.addf %220, %223 : vector<16x128xf32>
    %cst_83 = arith.constant 5.000000e-01 : f32
    %225 = vector.broadcast %cst_83 : f32 to vector<16x128xf32>
    %226 = arith.mulf %225, %224 : vector<16x128xf32>
    %227 = arith.mulf %224, %224 : vector<16x128xf32>
    %228 = arith.mulf %227, %224 : vector<16x128xf32>
    %cst_84 = arith.constant 4.471500e-02 : f32
    %229 = vector.broadcast %cst_84 : f32 to vector<16x128xf32>
    %230 = arith.mulf %229, %228 : vector<16x128xf32>
    %231 = arith.addf %224, %230 : vector<16x128xf32>
    %cst_85 = arith.constant 0.797884583 : f32
    %232 = vector.broadcast %cst_85 : f32 to vector<16x128xf32>
    %233 = arith.mulf %232, %231 : vector<16x128xf32>
    %234 = math.tanh %233 : vector<16x128xf32>
    %cst_86 = arith.constant 1.000000e+00 : f32
    %235 = vector.broadcast %cst_86 : f32 to vector<16x128xf32>
    %236 = arith.addf %235, %234 : vector<16x128xf32>
    %237 = arith.mulf %226, %236 : vector<16x128xf32>
    %c0_87 = arith.constant 0 : index
    %c0_88 = arith.constant 0 : index
    %c0_89 = arith.constant 0 : index
    %238 = vector.load %arg15[%c0_87, %c0_88, %c0_89] : memref<1x128x64xbf16, #tpu.memory_space<vmem>>, vector<1x128x64xbf16>
    %239 = vector.shape_cast %238 : vector<1x128x64xbf16> to vector<128x64xbf16>
    %240 = arith.truncf %237 : vector<16x128xf32> to vector<16x128xbf16>
    %cst_90 = arith.constant dense<0.000000e+00> : vector<16x64xf32>
    %241 = tpu.matmul %240, %239, %cst_90 {dimension_numbers = #tpu.dot_dimension_numbers<[1], [0], [0], [1], [0, 0, 1, 1], [], []>} : vector<16x128xbf16>, vector<128x64xbf16>, vector<16x64xf32> -> vector<16x64xf32>
    %c0_91 = arith.constant 0 : index
    %c0_92 = arith.constant 0 : index
    %c0_93 = arith.constant 0 : index
    %242 = vector.load %arg16[%c0_91, %c0_92, %c0_93] : memref<1x1x64xf32, #tpu.memory_space<vmem>>, vector<1x1x64xf32>
    %243 = vector.shape_cast %242 : vector<1x1x64xf32> to vector<1x64xf32>
    %244 = vector.broadcast %243 : vector<1x64xf32> to vector<16x64xf32>
    %245 = arith.addf %241, %244 : vector<16x64xf32>
    %246 = vector.shape_cast %245 : vector<16x64xf32> to vector<1x16x64xf32>
    %c0_94 = arith.constant 0 : index
    %c0_95 = arith.constant 0 : index
    %c0_96 = arith.constant 0 : index
    %247 = vector.load %arg19[%c0_94, %c0_95, %c0_96] : memref<1x16x64xf32, #tpu.memory_space<vmem>>, vector<1x16x64xf32>
    tpu.vector_store %arg19[%c0_94, %c0_95, %c0_96], %246 {strides = array<i32>} : memref<1x16x64xf32, #tpu.memory_space<vmem>>, vector<1x16x64xf32>,
    %248 = arith.addf %216, %245 : vector<16x64xf32>
    %c0_97 = arith.constant 0 : index
    %c0_98 = arith.constant 0 : index
    %c0_99 = arith.constant 0 : index
    %249 = vector.load %arg17[%c0_97, %c0_98, %c0_99] : memref<1x1x64xf32, #tpu.memory_space<vmem>>, vector<1x1x64xf32>
    %250 = vector.shape_cast %249 : vector<1x1x64xf32> to vector<1x64xf32>
    %c0_100 = arith.constant 0 : index
    %c0_101 = arith.constant 0 : index
    %c0_102 = arith.constant 0 : index
    %251 = vector.load %arg18[%c0_100, %c0_101, %c0_102] : memref<1x1x64xf32, #tpu.memory_space<vmem>>, vector<1x1x64xf32>
    %252 = vector.shape_cast %251 : vector<1x1x64xf32> to vector<1x64xf32>
    %cst_103 = arith.constant dense<0.000000e+00> : vector<16xf32>
    %253 = vector.multi_reduction <add>, %248, %cst_103 [1] : vector<16x64xf32> to vector<16xf32>
    %254 = vector.shape_cast %253 : vector<16xf32> to vector<16x1xf32>
    %cst_104 = arith.constant 6.400000e+01 : f32
    %255 = vector.broadcast %cst_104 : f32 to vector<16x1xf32>
    %256 = arith.divf %254, %255 : vector<16x1xf32>
    %257 = vector.broadcast %256 : vector<16x1xf32> to vector<16x64xf32>
    %258 = arith.subf %248, %257 : vector<16x64xf32>
    %259 = arith.mulf %258, %258 : vector<16x64xf32>
    %cst_105 = arith.constant dense<0.000000e+00> : vector<16xf32>
    %260 = vector.multi_reduction <add>, %259, %cst_105 [1] : vector<16x64xf32> to vector<16xf32>
    %261 = vector.shape_cast %260 : vector<16xf32> to vector<16x1xf32>
    %cst_106 = arith.constant 6.400000e+01 : f32
    %262 = vector.broadcast %cst_106 : f32 to vector<16x1xf32>
    %263 = arith.divf %261, %262 : vector<16x1xf32>
    %cst_107 = arith.constant 9.99999974E-6 : f32
    %264 = vector.broadcast %cst_107 : f32 to vector<16x1xf32>
    %265 = arith.addf %263, %264 : vector<16x1xf32>
    %266 = math.rsqrt %265 : vector<16x1xf32>
    %267 = vector.broadcast %266 : vector<16x1xf32> to vector<16x64xf32>
    %268 = arith.mulf %258, %267 : vector<16x64xf32>
    %269 = vector.broadcast %250 : vector<1x64xf32> to vector<16x64xf32>
    %270 = arith.mulf %268, %269 : vector<16x64xf32>
    %271 = vector.broadcast %252 : vector<1x64xf32> to vector<16x64xf32>
    %272 = arith.addf %270, %271 : vector<16x64xf32>
    %c0_108 = arith.constant 0 : index
    %c0_109 = arith.constant 0 : index
    %273 = vector.load %arg20[%c0_108, %c0_109] : memref<16x64xf32, #tpu.memory_space<vmem>>, vector<16x64xf32>
    tpu.vector_store %arg20[%c0_108, %c0_109], %272 {strides = array<i32>} : memref<16x64xf32, #tpu.memory_space<vmem>>, vector<16x64xf32>,
    return
  }
  func.func @transform_0(%arg0: i32, %arg1: i32) -> (i32, i32, i32) {
    %c0_i32 = arith.constant 0 : i32
    %c0_i32_0 = arith.constant 0 : i32
    %c0_i32_1 = arith.constant 0 : i32
    return %arg0, %c0_i32, %c0_i32_0 : i32, i32, i32
  }
  func.func @transform_1(%arg0: i32, %arg1: i32) -> (i32, i32, i32, i32) {
    %c0_i32 = arith.constant 0 : i32
    %c0_i32_0 = arith.constant 0 : i32
    %c0_i32_1 = arith.constant 0 : i32
    %c0_i32_2 = arith.constant 0 : i32
    return %arg1, %c0_i32, %c0_i32_0, %c0_i32_1 : i32, i32, i32, i32
  }
  func.func @transform_2(%arg0: i32, %arg1: i32) -> (i32, i32, i32, i32) {
    %c0_i32 = arith.constant 0 : i32
    %c0_i32_0 = arith.constant 0 : i32
    %c0_i32_1 = arith.constant 0 : i32
    %c0_i32_2 = arith.constant 0 : i32
    return %arg1, %c0_i32, %c0_i32_0, %c0_i32_1 : i32, i32, i32, i32
  }
  func.func @transform_3(%arg0: i32, %arg1: i32) -> (i32, i32, i32, i32) {
    %c0_i32 = arith.constant 0 : i32
    %c0_i32_0 = arith.constant 0 : i32
    %c0_i32_1 = arith.constant 0 : i32
    %c0_i32_2 = arith.constant 0 : i32
    return %arg1, %c0_i32, %c0_i32_0, %c0_i32_1 : i32, i32, i32, i32
  }
  func.func @transform_4(%arg0: i32, %arg1: i32) -> (i32, i32, i32, i32) {
    %c0_i32 = arith.constant 0 : i32
    %c0_i32_0 = arith.constant 0 : i32
    %c0_i32_1 = arith.constant 0 : i32
    %c0_i32_2 = arith.constant 0 : i32
    return %arg1, %c0_i32, %c0_i32_0, %c0_i32_1 : i32, i32, i32, i32
  }
  func.func @transform_5(%arg0: i32, %arg1: i32) -> (i32, i32, i32, i32) {
    %c0_i32 = arith.constant 0 : i32
    %c0_i32_0 = arith.constant 0 : i32
    %c0_i32_1 = arith.constant 0 : i32
    %c0_i32_2 = arith.constant 0 : i32
    return %arg1, %c0_i32, %c0_i32_0, %c0_i32_1 : i32, i32, i32, i32
  }
  func.func @transform_6(%arg0: i32, %arg1: i32) -> (i32, i32, i32, i32) {
    %c0_i32 = arith.constant 0 : i32
    %c0_i32_0 = arith.constant 0 : i32
    %c0_i32_1 = arith.constant 0 : i32
    %c0_i32_2 = arith.constant 0 : i32
    return %arg1, %c0_i32, %c0_i32_0, %c0_i32_1 : i32, i32, i32, i32
  }
  func.func @transform_7(%arg0: i32, %arg1: i32) -> (i32, i32, i32, i32) {
    %c0_i32 = arith.constant 0 : i32
    %c0_i32_0 = arith.constant 0 : i32
    %c0_i32_1 = arith.constant 0 : i32
    %c0_i32_2 = arith.constant 0 : i32
    return %arg1, %c0_i32, %c0_i32_0, %c0_i32_1 : i32, i32, i32, i32
  }
  func.func @transform_8(%arg0: i32, %arg1: i32) -> (i32, i32, i32) {
    %c0_i32 = arith.constant 0 : i32
    %c0_i32_0 = arith.constant 0 : i32
    %c0_i32_1 = arith.constant 0 : i32
    return %arg1, %c0_i32, %c0_i32_0 : i32, i32, i32
  }
  func.func @transform_9(%arg0: i32, %arg1: i32) -> (i32, i32, i32) {
    %c0_i32 = arith.constant 0 : i32
    %c0_i32_0 = arith.constant 0 : i32
    %c0_i32_1 = arith.constant 0 : i32
    return %arg1, %c0_i32, %c0_i32_0 : i32, i32, i32
  }
  func.func @transform_10(%arg0: i32, %arg1: i32) -> (i32, i32, i32) {
    %c0_i32 = arith.constant 0 : i32
    %c0_i32_0 = arith.constant 0 : i32
    %c0_i32_1 = arith.constant 0 : i32
    return %arg1, %c0_i32, %c0_i32_0 : i32, i32, i32
  }
  func.func @transform_11(%arg0: i32, %arg1: i32) -> (i32, i32, i32) {
    %c0_i32 = arith.constant 0 : i32
    %c0_i32_0 = arith.constant 0 : i32
    %c0_i32_1 = arith.constant 0 : i32
    return %arg1, %c0_i32, %c0_i32_0 : i32, i32, i32
  }
  func.func @transform_12(%arg0: i32, %arg1: i32) -> (i32, i32, i32) {
    %c0_i32 = arith.constant 0 : i32
    %c0_i32_0 = arith.constant 0 : i32
    %c0_i32_1 = arith.constant 0 : i32
    return %arg1, %c0_i32, %c0_i32_0 : i32, i32, i32
  }
  func.func @transform_13(%arg0: i32, %arg1: i32) -> (i32, i32, i32) {
    %c0_i32 = arith.constant 0 : i32
    %c0_i32_0 = arith.constant 0 : i32
    %c0_i32_1 = arith.constant 0 : i32
    return %arg1, %c0_i32, %c0_i32_0 : i32, i32, i32
  }
  func.func @transform_14(%arg0: i32, %arg1: i32) -> (i32, i32, i32) {
    %c0_i32 = arith.constant 0 : i32
    %c0_i32_0 = arith.constant 0 : i32
    %c0_i32_1 = arith.constant 0 : i32
    return %arg1, %c0_i32, %c0_i32_0 : i32, i32, i32
  }
  func.func @transform_15(%arg0: i32, %arg1: i32) -> (i32, i32, i32) {
    %c0_i32 = arith.constant 0 : i32
    %c0_i32_0 = arith.constant 0 : i32
    %c0_i32_1 = arith.constant 0 : i32
    return %arg1, %c0_i32, %c0_i32_0 : i32, i32, i32
  }
  func.func @transform_16(%arg0: i32, %arg1: i32) -> (i32, i32, i32) {
    %c0_i32 = arith.constant 0 : i32
    %c0_i32_0 = arith.constant 0 : i32
    %c0_i32_1 = arith.constant 0 : i32
    return %arg1, %c0_i32, %c0_i32_0 : i32, i32, i32
  }
  func.func @transform_17(%arg0: i32, %arg1: i32) -> (i32, i32, i32) {
    %c0_i32 = arith.constant 0 : i32
    %c0_i32_0 = arith.constant 0 : i32
    %c0_i32_1 = arith.constant 0 : i32
    return %arg0, %c0_i32, %c0_i32_0 : i32, i32, i32
  }
}

</mosaic_0001>

<bundles_post_ra>
// kernel: wav2vec2_encoder_forward.4
= control target key start
LH: loop header
LB: loop body
LE: loop exit
PB: predicated region body
PF: predicated region fallthrough
CT: control target
= control target key end

     0   :  { %s743_s21 = smov 0   ;;  %s809_s0 = inlined_call_operand.vmem [shape: f32[2,34,5], index: 0, kind: input, shape index: {}]   ;;  %s810_s1 = inlined_call_operand.vmem [shape: f32[5,32], index: 1, kind: input, shape index: {}]   ;;  %s811_s2 = inlined_call_operand.vmem [shape: f32[5,32], index: 2, kind: input, shape index: {}]   ;;  %s812_s3 = inlined_call_operand.vmem [shape: f32[1,32], index: 3, kind: input, shape index: {}]   ;;  %s813_s4 = inlined_call_operand.vmem [shape: f32[1,32], index: 4, kind: input, shape index: {}]   ;;  %s814_s5 = inlined_call_operand.vmem [shape: f32[1,32], index: 5, kind: input, shape index: {}]   ;;  %s815_s6 = inlined_call_operand.vmem [shape: f32[2,33,32], index: 6, kind: output, shape index: {}]  }
   0x1 LB: > { %s619_s22 = sadd.s32 4294967295, %s703_s21   ;;  %p623_p0 = scmp.ge.s32.totalorder %s703_s21, 1  ;;  %s703_s21 = sphi %s743_s21, %s16_s21  }
   0x2   : > { %p212_p1 = scmp.lt.s32.totalorder %s703_s21, 3 }
   0x4   : > { %p213_p2 = pnand %p623_p0, %p212_p1 }
   0x5   : > { %v258_v0 = vld [vmem:[%s810_s1] sm:$0x1f] (!%p213_p2)  ;;  %vm298_vm0 = vcmask (!%p213_p2), 1041408   ;;  %vm299_vm1 = vcmask (!%p213_p2), 1042432   ;;  %v705_v1 = vmov (!%p213_p2), 0.0   ;;  %v706_v3 = vmov (!%p213_p2), 65535  }
   0x6   : > { %216 = sbr.rel (%p213_p2) target bundleno = 352 (0x160), region = 44  ;;  %659 = vmatprep.subr.bf16.mxu1 (!%p213_p2), %v705_v1  ;;  %v262_v2 = vpack.c.bf16 (!%p213_p2), %v258_v0, %v258_v0  ;;  %v300_v4 = vsel (!%p213_p2), %vm298_vm0, 4294967295, %v706_v3  ;;  %645 = vmatprep.subr.bf16.mxu0 (!%p213_p2), %v705_v1  ;;  %v263_v5 = vld [vmem:[%s811_s2] sm:$0x1f] (!%p213_p2)  ;;  %p242_p3 = scmp.lt.s32.totalorder (!%p213_p2), %s619_s22, 1  ;;  %vm707_vm2 = vmmov (!%p213_p2), 0  }
   0x7   : > { %v301_v6 = vsel (!%p213_p2), %vm299_vm1, %v300_v4, 0  ;;  %661 = vmatprep.mubr.msk.bf16.mxu1 (!%p213_p2), %vm707_vm2, %v705_v1  ;;  %v264_v7 = vpack.c.bf16 (!%p213_p2), %v263_v5, %v263_v5  ;;  %647 = vmatprep.mubr.msk.bf16.mxu0 (!%p213_p2), %vm707_vm2, %v705_v1  ;;  %vm288_vm3 = vcmask (!%p213_p2), 39936   ;;  %vm265_vm4 = vsmask.f32 (!%p213_p2), 7424  ;;  %v632_v36 = vld [vmem:[%s812_s3] ss:$0 sm:$0xff] (!%p213_p2) }
   0x8   : > { %v368_v8 = vand.u32 (!%p213_p2), %v301_v6, %v262_v2  ;;  %vm438_vm5 = vcmask (!%p213_p2), 261120   ;;  %vm446_vm6 = vcmask (!%p213_p2), 253952  }
   0x9   : > { %v303_v9 = vand.u32 (!%p213_p2), %v301_v6, %v264_v7 }
   0xa   : > { %660 = vmatpush3.bf16.msra.mxu1 (!%p213_p2), %v368_v8 }
   0xb   : > { %646 = vmatpush3.bf16.msra.mxu0 (!%p213_p2), %v303_v9 }
   0xd   : > { %s817_s22 = smov (!%p242_p3, %s619_s22), 1 }
   0xe   : > { %s673_s27 = smul.u32 40, %s817_s22 }
  0x10   : > { %s246_s30 = scalar_lea.vmem %s809_s0, %s673_s27  ;;  %s251_s15 = scalar_lea.vmem %s815_s6, %s673_s27 }
  0x11   : > { %v253_v10 = vld [vmem:[%s246_s30] sm:$0xff]  ;;  %v254_v11 = vld [vmem:[%s246_s30 + $0x8] sm:$0xff]  ;;  %v255_v12 = vld [vmem:[%s246_s30 + $0x10] sm:$0xff] }
  0x12   : > { %v259_v13 = vpack.c.bf16 %v254_v11, %v253_v10  ;;  %v256_v14 = vld [vmem:[%s246_s30 + $0x18] sm:$0xff]  ;;  %v257_v15 = vld [vmem:[%s246_s30 + $0x20] sm:$0x3] }
  0x13   : > { %v260_v16 = vpack.c.bf16 %v256_v14, %v255_v12  ;;  %v261_v19 = vpack.c.bf16 %v257_v15, %v257_v15 }
  0x14   : > { %662 = vmatmul.mubr.msk.bf16.vlgmr.msra.gmra.mrb[0].mxu1 %vm288_vm3, %v259_v13  ;;  %v267_v17 = vshrl.u32 %v259_v13, 16  ;;  %v269_v18 = vshll.u32 %v259_v13, 16 }
  0x15   : > { %v274_v20 = vshll.u32 %v260_v16, 16  ;;  %665 = vmatprep.mubr.msk.bf16.mxu1 %vm707_vm2, %v705_v1  ;;  %v278_v24 = vshrl.u32 %v260_v16, 16  ;;  %v282_v25 = vshll.u32 %v261_v19, 16  ;;  %v286_v30 = vshrl.u32 %v261_v19, 16 }
  0x16   : > { %v271_v21 = vrot.slane %v269_v18, 1 }
  0x17   : > { %v276_v22 = vrot.slane %v274_v20, 1  ;;  %v284_v28 = vrot.slane %v282_v25, 1 }
  0x18   : > { %v272_v23 = vor.u32 %v271_v21, %v267_v17 }
  0x19   : > { %v280_v27 = vor.u32 %v278_v24, %v276_v22 }
  0x1a   : > { %v277_v26 = vsel %vm265_vm4, %v272_v23, %v276_v22 }
  0x1b   : > { %648 = vmatmul.mubr.msk.bf16.vlgmr.msra.gmra.mrb[0].mxu0 %vm288_vm3, %v277_v26  ;;  %v285_v29 = vsel %vm265_vm4, %v280_v27, %v284_v28 }
  0x1c   : > { %666 = vmatmul.mubr.msk.bf16.gmra.mrb[4].mxu1 %vm288_vm3, %v260_v16  ;;  %651 = vmatprep.mubr.msk.bf16.mxu0 %vm707_vm2, %v705_v1 }
  0x1d   : > { %669 = vmatprep.mubr.msk.bf16.mxu1 %vm707_vm2, %v705_v1 }
  0x23   : > { %652 = vmatmul.mubr.msk.bf16.gmra.mrb[4].mxu0 %vm288_vm3, %v285_v29 }
  0x24   : > { %670 = vmatmul.mubr.msk.bf16.gmra.mrb[8].mxu1 %vm288_vm3, %v261_v19  ;;  %655 = vmatprep.mubr.msk.bf16.mxu0 %vm707_vm2, %v705_v1 }
  0x2b   : > { %656 = vmatmul.mubr.msk.bf16.gmra.mrb[8].mxu0 %vm288_vm3, %v286_v30 }
  0xe7   : > { %v404_v31 = vpop.f32.mrb[0].mxu1 }
  0xe8   : > { %v663_v32 = vpop.f32.mrb[1].mxu1 }
  0xe9   : > { %v407_v33 = vpop.f32.mrb[2].mxu1 }
  0xea   : > { %v664_v34 = vpop.f32.mrb[3].mxu1 }
  0xee   : > { %v339_v35 = vpop.f32.mrb[0].mxu0 }
  0xef   : > { %v405_v37 = vadd.f32 %v404_v31, %v339_v35  ;;  %v649_v38 = vpop.f32.mrb[1].mxu0  ;;  %v412_v39 = vpop.f32.mrb[4].mxu1 }
  0xf0   : > { %v342_v40 = vpop.f32.mrb[2].mxu0  ;;  %v667_v41 = vpop.f32.mrb[5].mxu1 }
  0xf1   : > { %v433_v42 = vadd.f32 %v632_v36, %v405_v37  ;;  %v408_v43 = vadd.f32 %v407_v33, %v342_v40  ;;  %v650_v44 = vpop.f32.mrb[3].mxu0  ;;  %v415_v45 = vpop.f32.mrb[6].mxu1 }
  0xf2   : > { %v668_v46 = vpop.f32.mrb[7].mxu1 }
  0xf3   : > { %v434_v47 = vadd.f32 %v632_v36, %v408_v43  ;;  %v439_v48 = vsel %vm438_vm5, %v433_v42, 0.0  ;;  %v633_v46 = vld [vmem:[%s813_s4] ss:$0 sm:$0xff] }
  0xf5   : > { %v440_v49 = vsel %vm438_vm5, %v434_v47, 0.0 }
  0xf6   : > { %v441_v50 = vadd.f32 %v440_v49, %v439_v48  ;;  %v347_v51 = vpop.f32.mrb[4].mxu0 }
  0xf7   : > { %v413_v52 = vadd.f32 %v412_v39, %v347_v51  ;;  %v653_v53 = vpop.f32.mrb[5].mxu0  ;;  %v420_v54 = vpop.f32.mrb[8].mxu1 }
  0xf8   : > { %v350_v55 = vpop.f32.mrb[6].mxu0  ;;  %v671_v56 = vpop.f32.mrb[9].mxu1 }
  0xf9   : > { %v435_v57 = vadd.f32 %v632_v36, %v413_v52  ;;  %v416_v58 = vadd.f32 %v415_v45, %v350_v55  ;;  %v654_v59 = vpop.f32.mrb[7].mxu0  ;;  %v423_v60 = vpop.f32.mrb[10].mxu1  ;;  %v634_v52 = vld [vmem:[%s814_s5] ss:$0 sm:$0xff] }
  0xfa   : > { %v672_v61 = vpop.f32.mrb[11].mxu1 }
  0xfb   : > { %v442_v62 = vsel %vm438_vm5, %v435_v57, 0.0  ;;  %v436_v63 = vadd.f32 %v632_v36, %v416_v58 }
  0xfc   : > { %v443_v0 = vadd.f32 %v442_v62, %v441_v50 }
  0xfd   : > { %v444_v1 = vsel %vm438_vm5, %v436_v63, 0.0 }
  0xfe   : > { %v445_v2 = vadd.f32 %v444_v1, %v443_v0  ;;  %v355_v3 = vpop.f32.mrb[8].mxu0 }
  0xff   : > { %v421_v4 = vadd.f32 %v420_v54, %v355_v3  ;;  %v657_v5 = vpop.f32.mrb[9].mxu0 }
 0x100   : > { %v358_v6 = vpop.f32.mrb[10].mxu0 }
 0x101   : > { %v437_v7 = vadd.f32 %v632_v36, %v421_v4  ;;  %v658_v8 = vpop.f32.mrb[11].mxu0 }
 0x103   : > { %v447_v9 = vsel %vm446_vm6, %v437_v7, 0.0 }
 0x104   : > { %v448_v10 = vadd.f32 %v447_v9, %v445_v2 }
 0x106   : > { %v449_v11 = vrot.slane %v448_v10, 4 }
 0x108   : > { %v450_v12 = vadd.f32 %v449_v11, %v448_v10 }
 0x10a   : > { %v451_v13 = vrot.slane %v450_v12, 2 }
 0x10c   : > { %v452_v14 = vadd.f32 %v451_v13, %v450_v12 }
 0x10e   : > { %v453_v15 = vrot.slane %v452_v14, 1 }
 0x110   : > { %v454_v16 = vadd.f32 %v453_v15, %v452_v14 }
 0x112   : > { %v456_v17 = vmul.f32 0.030303031, %v454_v16 }
 0x114   : > { %v457_v18 = vsub.f32 %v433_v42, %v456_v17  ;;  %v458_v19 = vsub.f32 %v434_v47, %v456_v17  ;;  %v459_v20 = vsub.f32 %v435_v57, %v456_v17  ;;  %v460_v21 = vsub.f32 %v436_v63, %v456_v17 }
 0x115   : > { %v461_v22 = vsub.f32 %v437_v7, %v456_v17 }
 0x116   : > { %v462_v23 = vmul.f32 %v457_v18, %v457_v18  ;;  %v463_v24 = vmul.f32 %v458_v19, %v458_v19  ;;  %v464_v25 = vmul.f32 %v459_v20, %v459_v20  ;;  %v465_v26 = vmul.f32 %v460_v21, %v460_v21 }
 0x117   : > { %v466_v30 = vmul.f32 %v461_v22, %v461_v22 }
 0x118   : > { %v467_v27 = vsel %vm438_vm5, %v462_v23, 0.0  ;;  %v468_v28 = vsel %vm438_vm5, %v463_v24, 0.0  ;;  %v470_v31 = vsel %vm438_vm5, %v464_v25, 0.0  ;;  %v472_v33 = vsel %vm438_vm5, %v465_v26, 0.0 }
 0x119   : > { %v469_v29 = vadd.f32 %v468_v28, %v467_v27  ;;  %v474_v35 = vsel %vm446_vm6, %v466_v30, 0.0 }
 0x11b   : > { %v471_v32 = vadd.f32 %v470_v31, %v469_v29 }
 0x11d   : > { %v473_v34 = vadd.f32 %v472_v33, %v471_v32 }
 0x11f   : > { %v475_v36 = vadd.f32 %v474_v35, %v473_v34 }
 0x121   : > { %v476_v37 = vrot.slane %v475_v36, 4 }
 0x123   : > { %v477_v38 = vadd.f32 %v476_v37, %v475_v36 }
 0x125   : > { %v478_v39 = vrot.slane %v477_v38, 2 }
 0x127   : > { %v479_v40 = vadd.f32 %v478_v39, %v477_v38 }
 0x129   : > { %v480_v41 = vrot.slane %v479_v40, 1 }
 0x12b   : > { %v481_v42 = vadd.f32 %v480_v41, %v479_v40 }
 0x12d   : > { %v482_v43 = vmul.f32 0.030303031, %v481_v42 }
 0x12f   : > { %v483_v44 = vadd.f32 1e-05, %v482_v43 }
 0x131   : > { %685 = vrsqrt.f32 %v483_v44 }
 0x13b   : > { %v686_v45 = vpop.eup %685 }
 0x13c   : > { %v485_v47 = vmul.f32 %v686_v45, %v457_v18  ;;  %v486_v48 = vmul.f32 %v686_v45, %v458_v19  ;;  %v487_v49 = vmul.f32 %v686_v45, %v459_v20  ;;  %v488_v50 = vmul.f32 %v686_v45, %v460_v21 }
 0x13d   : > { %v489_v51 = vmul.f32 %v686_v45, %v461_v22 }
 0x13e   : > { %v497_v53 = vmul.f32 %v633_v46, %v485_v47  ;;  %v498_v54 = vmul.f32 %v633_v46, %v486_v48  ;;  %v499_v55 = vmul.f32 %v633_v46, %v487_v49  ;;  %v500_v56 = vmul.f32 %v633_v46, %v488_v50 }
 0x13f   : > { %v501_v57 = vmul.f32 %v633_v46, %v489_v51 }
 0x140   : > { %v509_v58 = vadd.f32 %v634_v52, %v497_v53  ;;  %v510_v59 = vadd.f32 %v634_v52, %v498_v54  ;;  %v511_v60 = vadd.f32 %v634_v52, %v499_v55  ;;  %v512_v61 = vadd.f32 %v634_v52, %v500_v56 }
 0x141   : > { %v513_v62 = vadd.f32 %v634_v52, %v501_v57 }
 0x142   : > { %v519_v63 = vmul.f32 %v509_v58, %v509_v58  ;;  %v520_v0 = vmul.f32 %v510_v59, %v510_v59  ;;  %v521_v1 = vmul.f32 %v511_v60, %v511_v60  ;;  %v522_v2 = vmul.f32 %v512_v61, %v512_v61 }
 0x143   : > { %v523_v3 = vmul.f32 %v513_v62, %v513_v62  ;;  %v514_v26 = vmul.f32 0.5, %v509_v58  ;;  %v515_v29 = vmul.f32 0.5, %v510_v59  ;;  %v516_v32 = vmul.f32 0.5, %v511_v60 }
 0x144   : > { %v524_v4 = vmul.f32 %v519_v63, %v509_v58  ;;  %v525_v5 = vmul.f32 %v520_v0, %v510_v59  ;;  %v526_v6 = vmul.f32 %v521_v1, %v511_v60  ;;  %v527_v7 = vmul.f32 %v522_v2, %v512_v61 }
 0x145   : > { %v528_v8 = vmul.f32 %v523_v3, %v513_v62  ;;  %v517_v36 = vmul.f32 0.5, %v512_v61  ;;  %v518_v39 = vmul.f32 0.5, %v513_v62 }
 0x146   : > { %v529_v9 = vmul.f32 0.044715, %v524_v4  ;;  %v530_v10 = vmul.f32 0.044715, %v525_v5  ;;  %v531_v11 = vmul.f32 0.044715, %v526_v6 }
 0x147   : > { %v532_v12 = vmul.f32 0.044715, %v527_v7  ;;  %v533_v13 = vmul.f32 0.044715, %v528_v8 }
 0x148   : > { %v534_v14 = vadd.f32 %v529_v9, %v509_v58  ;;  %v535_v15 = vadd.f32 %v530_v10, %v510_v59  ;;  %v536_v16 = vadd.f32 %v531_v11, %v511_v60 }
 0x149   : > { %v537_v17 = vadd.f32 %v532_v12, %v512_v61  ;;  %v538_v18 = vadd.f32 %v533_v13, %v513_v62 }
 0x14a   : > { %v539_v19 = vmul.f32 0.7978846, %v534_v14  ;;  %v540_v20 = vmul.f32 0.7978846, %v535_v15  ;;  %v541_v21 = vmul.f32 0.7978846, %v536_v16 }
 0x14b   : > { %v542_v22 = vmul.f32 0.7978846, %v537_v17  ;;  %v543_v23 = vmul.f32 0.7978846, %v538_v18 }
 0x14c   : > { %687 = vtanh.f32 %v539_v19 }
 0x14d   : > { %689 = vtanh.f32 %v540_v20 }
 0x14e   : > { %691 = vtanh.f32 %v541_v21 }
 0x14f   : > { %693 = vtanh.f32 %v542_v22 }
 0x150   : > { %695 = vtanh.f32 %v543_v23 }
 0x156   : > { %v688_v24 = vpop.eup %687 }
 0x157   : > { %v690_v25 = vpop.eup %689  ;;  %v549_v27 = vadd.f32 1.0, %v688_v24 }
 0x158   : > { %v692_v28 = vpop.eup %691  ;;  %v550_v30 = vadd.f32 1.0, %v690_v25 }
 0x159   : > { %v694_v31 = vpop.eup %693  ;;  %v551_v33 = vadd.f32 1.0, %v692_v28  ;;  %v554_v34 = vmul.f32 %v549_v27, %v514_v26 }
 0x15a   : > { %v696_v35 = vpop.eup %695  ;;  %v552_v37 = vadd.f32 1.0, %v694_v31  ;;  %v555_v38 = vmul.f32 %v550_v30, %v515_v29 }
 0x15b   : > { %v553_v40 = vadd.f32 1.0, %v696_v35  ;;  %v556_v41 = vmul.f32 %v551_v33, %v516_v32  ;;  %559 = vst.msk [vmem:[%s251_s15] sm:$0xff] %vm438_vm5, %v554_v34 }
 0x15c   : > { %v557_v42 = vmul.f32 %v552_v37, %v517_v36  ;;  %560 = vst.msk [vmem:[%s251_s15 + $0x8] sm:$0xff] %vm438_vm5, %v555_v38 }
 0x15d   : > { %v558_v43 = vmul.f32 %v553_v40, %v518_v39  ;;  %561 = vst.msk [vmem:[%s251_s15 + $0x10] sm:$0xff] %vm438_vm5, %v556_v41 }
 0x15e   : > { %562 = vst.msk [vmem:[%s251_s15 + $0x18] sm:$0xff] %vm438_vm5, %v557_v42 }
 0x15f   : > { %563 = vst.msk [vmem:[%s251_s15 + $0x20] sm:$0x1] %vm446_vm6, %v558_v43 }
 0x160 PF: > { %s16_s21 = sadd.s32 1, %s703_s21  }
 0x161   : > { %p13_p4 = scmp.ge.s32.totalorder %s16_s21, 4  }
 0x163   :  { %15 = sbr.rel (!%p13_p4) target bundleno = 1 (0x1), region = 74 }

// kernel: wav2vec2_encoder_forward.6
= control target key start
LH: loop header
LB: loop body
LE: loop exit
PB: predicated region body
PF: predicated region fallthrough
CT: control target
= control target key end

     0   :  { %s895_s27 = smov 0   ;;  %s980_s0 = inlined_call_operand.vmem [shape: f32[2,18,64], index: 0, kind: input, shape index: {}]   ;;  %s981_s1 = inlined_call_operand.vmem [shape: f32[2,16,64], index: 1, kind: input, shape index: {}]   ;;  %s982_s2 = inlined_call_operand.vmem [shape: bf16[64,64], index: 2, kind: input, shape index: {}]   ;;  %s983_s3 = inlined_call_operand.vmem [shape: bf16[64,64], index: 3, kind: input, shape index: {}]   ;;  %s984_s4 = inlined_call_operand.vmem [shape: bf16[64,64], index: 4, kind: input, shape index: {}]   ;;  %s985_s5 = inlined_call_operand.vmem [shape: f32[1,64], index: 5, kind: input, shape index: {}]   ;;  %s986_s6 = inlined_call_operand.vmem [shape: f32[1,64], index: 6, kind: input, shape index: {}]   ;;  %s987_s7 = inlined_call_operand.vmem [shape: f32[1,64], index: 7, kind: input, shape index: {}]   ;;  %s988_s8 = inlined_call_operand.vmem [shape: f32[2,16,64], index: 8, kind: output, shape index: {}]  }
   0x1 LB: > { %s726_s28 = sadd.s32 4294967295, %s846_s27   ;;  %p730_p0 = scmp.ge.s32.totalorder %s846_s27, 1  ;;  %s846_s27 = sphi %s895_s27, %s18_s27  }
   0x2   : > { %p272_p1 = scmp.lt.s32.totalorder %s846_s27, 3 }
   0x4   : > { %p273_p2 = pnand %p730_p0, %p272_p1 }
   0x5   : > { %v820_v0 = vld [vmem:[%s983_s3] sm:$0xff] (!%p273_p2)   ;;  %v848_v1 = vmov (!%p273_p2), 0.0   ;;  %v822_v3 = vld [vmem:[%s983_s3 + $0x8] sm:$0xff] (!%p273_p2)   ;;  %vm849_vm0 = vmmov (!%p273_p2), 0   ;;  %p311_p3 = scmp.lt.s32.totalorder (!%p273_p2), %s726_s28, 1  ;;  %v824_v5 = vld [vmem:[%s983_s3 + $0x10] sm:$0xff] (!%p273_p2)  }
   0x6   : > { %276 = sbr.rel (%p273_p2) target bundleno = 604 (0x25c), region = 52  ;;  %773 = vmatprep.subr.bf16.mxu0 (!%p273_p2), %v848_v1  ;;  %785 = vmatprep.subr.bf16.mxu1 (!%p273_p2), %v848_v1  ;;  %v821_v2 = vld [vmem:[%s982_s2] sm:$0xff] (!%p273_p2)   ;;  %v823_v4 = vld [vmem:[%s982_s2 + $0x8] sm:$0xff] (!%p273_p2)   ;;  %v825_v6 = vld [vmem:[%s982_s2 + $0x10] sm:$0xff] (!%p273_p2)   ;;  %vm350_vm1 = vsmask.f32 (!%p273_p2), 7424 }
   0x7   : > { %774 = vmatpush3.bf16.msra.mxu0 (!%p273_p2), %v820_v0  ;;  %781 = vmatprep.mubr.msk.bf16.mxu0 (!%p273_p2), %vm849_vm0, %v848_v1  ;;  %v826_v10 = vld [vmem:[%s983_s3 + $0x18] sm:$0xff] (!%p273_p2)   ;;  %vm387_vm2 = vcmask (!%p273_p2), 523264   ;;  %v828_v20 = vld [vmem:[%s984_s4] sm:$0xff] (!%p273_p2)   ;;  %v829_v22 = vld [vmem:[%s984_s4 + $0x8] sm:$0xff] (!%p273_p2)   ;;  %vm509_vm3 = vcmask (!%p273_p2), 1046528  }
   0x8   : > { %786 = vmatpush3.bf16.msra.mxu1 (!%p273_p2), %v821_v2  ;;  %775 = vmatprep.subr.bf16.mxu0 (!%p273_p2), %v848_v1  ;;  %v827_v13 = vld [vmem:[%s982_s2 + $0x18] sm:$0xff] (!%p273_p2)   ;;  %v830_v23 = vld [vmem:[%s984_s4 + $0x10] sm:$0xff] (!%p273_p2)   ;;  %v751_v39 = vld [vmem:[%s985_s5] ss:$0 sm:$0xff] (!%p273_p2) }
   0x9   : > { %787 = vmatprep.subr.bf16.mxu1 (!%p273_p2), %v848_v1  ;;  %793 = vmatprep.mubr.msk.bf16.mxu1 (!%p273_p2), %vm849_vm0, %v848_v1  ;;  %v831_v24 = vld [vmem:[%s984_s4 + $0x18] sm:$0xff] (!%p273_p2)  }
   0xb   : > { %776 = vmatpush3.bf16.msra.mxu0 (!%p273_p2), %v822_v3 }
   0xc   : > { %788 = vmatpush3.bf16.msra.mxu1 (!%p273_p2), %v823_v4  ;;  %777 = vmatprep.subr.bf16.mxu0 (!%p273_p2), %v848_v1 }
   0xd   : > { %s990_s28 = smov (!%p311_p3, %s726_s28), 1  ;;  %789 = vmatprep.subr.bf16.mxu1 %v848_v1 }
   0xe   : > { %s809_s17 = smul.u32 24, %s990_s28 }
   0xf   : > { %778 = vmatpush3.bf16.msra.mxu0 %v824_v5 }
  0x10   : > { %s315_s22 = scalar_lea.vmem %s980_s0, %s809_s17  ;;  %790 = vmatpush3.bf16.msra.mxu1 %v825_v6  ;;  %779 = vmatprep.subr.bf16.mxu0 %v848_v1  ;;  %s756_s17 = sshll.u32 %s990_s28, 4 }
  0x11   : > { %v327_v7 = vld [vmem:[%s315_s22] sm:$0xff]  ;;  %v328_v8 = vld [vmem:[%s315_s22 + $0x8] sm:$0xff]  ;;  %v329_v9 = vld [vmem:[%s315_s22 + $0x10] sm:$0x3]  ;;  %791 = vmatprep.subr.bf16.mxu1 %v848_v1  ;;  %s320_s20 = scalar_lea.vmem %s981_s1, %s756_s17  ;;  %s325_s29 = scalar_lea.vmem %s988_s8, %s756_s17 }
  0x12   : > { %v340_v11 = vpack.c.bf16 %v328_v8, %v327_v7  ;;  %v349_v12 = vpack.c.bf16 %v329_v9, %v329_v9  ;;  %v330_v61 = vld [vmem:[%s320_s20] sm:$0xff] }
  0x13   : > { %780 = vmatpush3.bf16.msra.mxu0 %v826_v10 }
  0x14   : > { %v352_v14 = vshrl.u32 %v340_v11, 16  ;;  %v354_v15 = vshll.u32 %v340_v11, 16  ;;  %v359_v16 = vshll.u32 %v349_v12, 16  ;;  %792 = vmatpush3.bf16.msra.mxu1 %v827_v13  ;;  %797 = vmatprep.subr.bf16.mxu0 %v848_v1  ;;  %v510_v25 = vrot.slane %v340_v11, 1 }
  0x15   : > { %v511_v26 = vrot.slane %v349_v12, 1 }
  0x16   : > { %v356_v17 = vrot.slane %v354_v15, 1  ;;  %v361_v18 = vrot.slane %v359_v16, 1 }
  0x17   : > { %794 = vmatmul.mubr.msk.bf16.vlgmr.msra.gmra.mrb[0].mxu1 %vm387_vm2, %v340_v11  ;;  %v512_v27 = vsel %vm509_vm3, %v510_v25, %v511_v26  ;;  %v753_v26 = vld [vmem:[%s987_s7] ss:$0 sm:$0xff] }
  0x18   : > { %v357_v19 = vor.u32 %v356_v17, %v352_v14 }
  0x1a   : > { %v362_v21 = vsel %vm350_vm1, %v357_v19, %v361_v18 }
  0x1b   : > { %782 = vmatmul.mubr.msk.bf16.vlgmr.msra.gmra.mrb[0].mxu0 %vm387_vm2, %v362_v21 }
  0x1c   : > { %798 = vmatpush3.bf16.msra.mxu0 %v828_v20  ;;  %805 = vmatprep.mubr.msk.bf16.mxu0 %vm849_vm0, %v848_v1 }
  0x1d   : > { %799 = vmatprep.subr.bf16.mxu0 %v848_v1 }
  0x20   : > { %800 = vmatpush3.bf16.msra.mxu0 %v829_v22 }
  0x21   : > { %801 = vmatprep.subr.bf16.mxu0 %v848_v1 }
  0x24   : > { %802 = vmatpush3.bf16.msra.mxu0 %v830_v23 }
  0x25   : > { %803 = vmatprep.subr.bf16.mxu0 %v848_v1  ;;  %v331_v1 = vld [vmem:[%s320_s20 + $0x8] sm:$0xff] }
  0x28   : > { %804 = vmatpush3.bf16.msra.mxu0 %v831_v24  ;;  %v752_v24 = vld [vmem:[%s986_s6] ss:$0 sm:$0xff] }
  0x2b   : > { %806 = vmatmul.mubr.msk.bf16.vlgmr.msra.gmra.mrb[4].mxu0 %vm387_vm2, %v512_v27 }
  0xea   : > { %v492_v28 = vpop.f32.mrb[0].mxu1 }
  0xeb   : > { %v795_v30 = vpop.f32.mrb[1].mxu1 }
  0xec   : > { %v495_v33 = vpop.f32.mrb[2].mxu1 }
  0xed   : > { %v796_v35 = vpop.f32.mrb[3].mxu1 }
  0xee   : > { %v425_v29 = vpop.f32.mrb[0].mxu0 }
  0xef   : > { %v493_v31 = vadd.f32 %v492_v28, %v425_v29  ;;  %v783_v32 = vpop.f32.mrb[1].mxu0 }
  0xf0   : > { %v428_v34 = vpop.f32.mrb[2].mxu0 }
  0xf1   : > { %v496_v36 = vadd.f32 %v495_v33, %v428_v34  ;;  %v784_v37 = vpop.f32.mrb[3].mxu0 }
  0xfe   : > { %v574_v38 = vpop.f32.mrb[4].mxu0 }
  0xff   : > { %v581_v40 = vadd.f32 %v574_v38, %v493_v31  ;;  %v807_v41 = vpop.f32.mrb[5].mxu0 }
 0x100   : > { %v577_v42 = vpop.f32.mrb[6].mxu0 }
 0x101   : > { %v590_v43 = vadd.f32 %v751_v39, %v581_v40  ;;  %v582_v44 = vadd.f32 %v577_v42, %v496_v36  ;;  %v808_v45 = vpop.f32.mrb[7].mxu0 }
 0x103   : > { %v594_v46 = vmul.f32 %v590_v43, %v590_v43  ;;  %v591_v47 = vadd.f32 %v751_v39, %v582_v44  ;;  %v592_v58 = vmul.f32 0.5, %v590_v43 }
 0x105   : > { %v596_v48 = vmul.f32 %v594_v46, %v590_v43  ;;  %v595_v49 = vmul.f32 %v591_v47, %v591_v47  ;;  %v593_v63 = vmul.f32 0.5, %v591_v47 }
 0x107   : > { %v598_v50 = vmul.f32 0.044715, %v596_v48  ;;  %v597_v51 = vmul.f32 %v595_v49, %v591_v47 }
 0x109   : > { %v599_v52 = vmul.f32 0.044715, %v597_v51  ;;  %v600_v53 = vadd.f32 %v598_v50, %v590_v43 }
 0x10b   : > { %v602_v54 = vmul.f32 0.7978846, %v600_v53  ;;  %v601_v55 = vadd.f32 %v599_v52, %v591_v47 }
 0x10d   : > { %832 = vtanh.f32 %v602_v54  ;;  %v603_v56 = vmul.f32 0.7978846, %v601_v55 }
 0x10f   : > { %834 = vtanh.f32 %v603_v56 }
 0x117   : > { %v833_v57 = vpop.eup %832 }
 0x118   : > { %v606_v59 = vadd.f32 1.0, %v833_v57 }
 0x119   : > { %v835_v60 = vpop.eup %834 }
 0x11a   : > { %v608_v62 = vmul.f32 %v606_v59, %v592_v58  ;;  %v607_v0 = vadd.f32 1.0, %v835_v60 }
 0x11c   : > { %v610_v2 = vadd.f32 %v608_v62, %v330_v61  ;;  %v609_v3 = vmul.f32 %v607_v0, %v593_v63 }
 0x11e   : > { %v614_v4 = vsel %vm387_vm2, %v610_v2, 0.0  ;;  %v611_v5 = vadd.f32 %v609_v3, %v331_v1 }
 0x11f   : > { %615 = vadd.xlane.f32.xlu0 %v614_v4 }
 0x120   : > { %v617_v6 = vsel %vm387_vm2, %v611_v5, 0.0 }
 0x123   : > { %618 = vadd.xlane.f32.xlu0 %v617_v6 }
 0x1ac   : > { %v616_v7 = vpop.xlane.xlu0 %615 }
 0x1ad   : > { %v621_v8 = vmul.f32 0.015625, %v616_v7 }
 0x1af   : > { %v623_v9 = vsub.f32 %v610_v2, %v621_v8 }
 0x1b0   : > { %v619_v10 = vpop.xlane.xlu0 %618 }
 0x1b1   : > { %v622_v11 = vmul.f32 0.015625, %v619_v10  ;;  %v625_v12 = vmul.f32 %v623_v9, %v623_v9 }
 0x1b3   : > { %v624_v13 = vsub.f32 %v611_v5, %v622_v11  ;;  %v627_v14 = vsel %vm387_vm2, %v625_v12, 0.0 }
 0x1b4   : > { %628 = vadd.xlane.f32.xlu1 %v627_v14 }
 0x1b5   : > { %v626_v15 = vmul.f32 %v624_v13, %v624_v13 }
 0x1b7   : > { %v630_v16 = vsel %vm387_vm2, %v626_v15, 0.0 }
 0x1b8   : > { %631 = vadd.xlane.f32.xlu1 %v630_v16 }
 0x241   : > { %v629_v17 = vpop.xlane.xlu1 %628 }
 0x242   : > { %v633_v18 = vmul.f32 0.015625, %v629_v17 }
 0x244   : > { %v635_v19 = vadd.f32 1e-05, %v633_v18 }
 0x245   : > { %v632_v20 = vpop.xlane.xlu1 %631 }
 0x246   : > { %836 = vrsqrt.f32 %v635_v19  ;;  %v634_v21 = vmul.f32 0.015625, %v632_v20 }
 0x248   : > { %v636_v22 = vadd.f32 1e-05, %v634_v21 }
 0x24a   : > { %838 = vrsqrt.f32 %v636_v22 }
 0x250   : > { %v837_v23 = vpop.eup %836 }
 0x251   : > { %v639_v25 = vmul.f32 %v837_v23, %v623_v9 }
 0x253   : > { %v647_v27 = vmul.f32 %v752_v24, %v639_v25 }
 0x254   : > { %v839_v28 = vpop.eup %838 }
 0x255   : > { %v655_v29 = vadd.f32 %v753_v26, %v647_v27  ;;  %v640_v30 = vmul.f32 %v839_v28, %v624_v13 }
 0x257   : > { %657 = vst.msk [vmem:[%s325_s29] sm:$0xff] %vm387_vm2, %v655_v29  ;;  %v648_v31 = vmul.f32 %v752_v24, %v640_v30 }
 0x259   : > { %v656_v32 = vadd.f32 %v753_v26, %v648_v31 }
 0x25b   : > { %658 = vst.msk [vmem:[%s325_s29 + $0x8] sm:$0xff] %vm387_vm2, %v656_v32 }
 0x25c PF: > { %s18_s27 = sadd.s32 1, %s846_s27  }
 0x25d   : > { %p15_p4 = scmp.ge.s32.totalorder %s18_s27, 4  }
 0x25f   :  { %17 = sbr.rel (!%p15_p4) target bundleno = 1 (0x1), region = 85 }

// kernel: wav2vec2_encoder_forward.5
= control target key start
LH: loop header
LB: loop body
LE: loop exit
PB: predicated region body
PF: predicated region fallthrough
CT: control target
= control target key end

     0   :  { %s960_s13 = smov 0   ;;  %s1048_s0 = inlined_call_operand.vmem [shape: f32[2,17,32], index: 0, kind: input, shape index: {}]   ;;  %s1049_s1 = inlined_call_operand.vmem [shape: f32[2,16,32], index: 1, kind: input, shape index: {}]   ;;  %s1050_s2 = inlined_call_operand.vmem [shape: bf16[32,32], index: 2, kind: input, shape index: {}]   ;;  %s1051_s3 = inlined_call_operand.vmem [shape: bf16[32,32], index: 3, kind: input, shape index: {}]   ;;  %s1052_s4 = inlined_call_operand.vmem [shape: bf16[32,32], index: 4, kind: input, shape index: {}]   ;;  %s1053_s5 = inlined_call_operand.vmem [shape: f32[1,32], index: 5, kind: input, shape index: {}]   ;;  %s1054_s6 = inlined_call_operand.vmem [shape: f32[1,32], index: 6, kind: input, shape index: {}]   ;;  %s1055_s7 = inlined_call_operand.vmem [shape: f32[1,32], index: 7, kind: input, shape index: {}]   ;;  %s1056_s8 = inlined_call_operand.vmem [shape: bf16[32,64], index: 8, kind: input, shape index: {}]   ;;  %s1057_s9 = inlined_call_operand.vmem [shape: f32[1,64], index: 9, kind: input, shape index: {}]   ;;  %s1058_s10 = inlined_call_operand.vmem [shape: f32[2,16,64], index: 10, kind: output, shape index: {}]  }
   0x1 LB: > { %s794_s14 = sadd.s32 4294967295, %s901_s13   ;;  %p798_p0 = scmp.ge.s32.totalorder %s901_s13, 1  ;;  %s901_s13 = sphi %s960_s13, %s20_s13  }
   0x2   : > { %p322_p1 = scmp.lt.s32.totalorder %s901_s13, 3 }
   0x4   : > { %p323_p2 = pnand %p798_p0, %p322_p1 }
   0x5   : > { %v879_v0 = vld [vmem:[%s1051_s3] sm:$0xff] (!%p323_p2)   ;;  %v903_v1 = vmov (!%p323_p2), 0.0   ;;  %v881_v3 = vld [vmem:[%s1051_s3 + $0x8] sm:$0xff] (!%p323_p2)   ;;  %vm904_vm0 = vmmov (!%p323_p2), 0   ;;  %p365_p3 = scmp.lt.s32.totalorder (!%p323_p2), %s794_s14, 1  ;;  %vm408_vm1 = vcmask (!%p323_p2), 261120  }
   0x6   : > { %326 = sbr.rel (%p323_p2) target bundleno = 804 (0x324), region = 60  ;;  %836 = vmatprep.subr.bf16.mxu0 (!%p323_p2), %v903_v1  ;;  %844 = vmatprep.subr.bf16.mxu1 (!%p323_p2), %v903_v1  ;;  %v880_v2 = vld [vmem:[%s1050_s2] sm:$0xff] (!%p323_p2)   ;;  %v882_v4 = vld [vmem:[%s1050_s2 + $0x8] sm:$0xff] (!%p323_p2)   ;;  %vm514_vm2 = vsmask.f32 (!%p323_p2), 7424  ;;  %vm724_vm3 = vcmask (!%p323_p2), 523264  }
   0x7   : > { %837 = vmatpush3.bf16.msra.mxu0 (!%p323_p2), %v879_v0  ;;  %840 = vmatprep.mubr.msk.bf16.mxu0 (!%p323_p2), %vm904_vm0, %v903_v1  ;;  %v883_v7 = vld [vmem:[%s1052_s4] sm:$0xff] (!%p323_p2)   ;;  %v884_v16 = vld [vmem:[%s1052_s4 + $0x8] sm:$0xff] (!%p323_p2)  }
   0x8   : > { %845 = vmatpush3.bf16.msra.mxu1 (!%p323_p2), %v880_v2  ;;  %838 = vmatprep.subr.bf16.mxu0 (!%p323_p2), %v903_v1  ;;  %v813_v33 = vld [vmem:[%s1053_s5] ss:$0 sm:$0xff] (!%p323_p2) }
   0x9   : > { %846 = vmatprep.subr.bf16.mxu1 (!%p323_p2), %v903_v1  ;;  %848 = vmatprep.mubr.msk.bf16.mxu1 (!%p323_p2), %vm904_vm0, %v903_v1 }
   0xb   : > { %839 = vmatpush3.bf16.msra.mxu0 (!%p323_p2), %v881_v3 }
   0xc   : > { %847 = vmatpush3.bf16.msra.mxu1 (!%p323_p2), %v882_v4  ;;  %852 = vmatprep.subr.bf16.mxu0 (!%p323_p2), %v903_v1 }
   0xd   : > { %s1060_s14 = smov (!%p365_p3, %s794_s14), 1  ;;  %860 = vmatprep.subr.bf16.mxu1 %v903_v1 }
   0xe   : > { %s822_s23 = sshll.u32 %s1060_s14, 4  ;;  %s868_s24 = smul.u32 24, %s1060_s14 }
   0xf   : > { %s374_s27 = scalar_lea.vmem %s1049_s1, %s822_s23  ;;  %s379_s12 = scalar_lea.vmem %s1058_s10, %s822_s23 }
  0x10   : > { %v384_v5 = vld [vmem:[%s374_s27] sm:$0xff]  ;;  %v385_v6 = vld [vmem:[%s374_s27 + $0x8] sm:$0xff]  ;;  %s369_s30 = scalar_lea.vmem %s1048_s0, %s868_s24 }
  0x11   : > { %v395_v8 = vpack.c.bf16 %v385_v6, %v384_v5  ;;  %v381_v9 = vld [vmem:[%s369_s30] sm:$0xff]  ;;  %v382_v10 = vld [vmem:[%s369_s30 + $0x8] sm:$0xff]  ;;  %v383_v11 = vld [vmem:[%s369_s30 + $0x10] sm:$0x1] }
  0x12   : > { %v390_v12 = vpack.c.bf16 %v382_v10, %v381_v9  ;;  %v513_v13 = vpack.c.bf16 %v383_v11, %v383_v11  ;;  %v886_v9 = vld [vmem:[%s1056_s8 + $0x8] sm:$0xff]  }
  0x13   : > { %841 = vmatmul.mubr.msk.bf16.vlgmr.msra.gmra.mrb[0].mxu0 %vm408_vm1, %v395_v8  ;;  %v885_v8 = vld [vmem:[%s1056_s8] sm:$0xff]  }
  0x14   : > { %849 = vmatmul.mubr.msk.bf16.vlgmr.msra.gmra.mrb[0].mxu1 %vm408_vm1, %v390_v12  ;;  %v515_v14 = vshrl.u32 %v390_v12, 16  ;;  %v517_v15 = vshll.u32 %v390_v12, 16  ;;  %853 = vmatpush3.bf16.msra.mxu0 %v883_v7  ;;  %v522_v17 = vshll.u32 %v513_v13, 16 }
  0x15   : > { %854 = vmatprep.subr.bf16.mxu0 %v903_v1  ;;  %856 = vmatprep.mubr.msk.bf16.mxu0 %vm904_vm0, %v903_v1 }
  0x16   : > { %v519_v18 = vrot.slane %v517_v15, 1  ;;  %v524_v19 = vrot.slane %v522_v17, 1  ;;  %864 = vmatprep.mubr.msk.bf16.mxu1 %vm904_vm0, %v903_v1  ;;  %861 = vmatpush3.bf16.msra.mxu1 %v885_v8 }
  0x17   : > { %862 = vmatprep.subr.bf16.mxu1 %v903_v1  ;;  %v814_v1 = vld [vmem:[%s1054_s6] ss:$0 sm:$0xff] }
  0x18   : > { %855 = vmatpush3.bf16.msra.mxu0 %v884_v16  ;;  %v520_v20 = vor.u32 %v519_v18, %v515_v14 }
  0x1a   : > { %v525_v21 = vsel %vm514_vm2, %v520_v20, %v524_v19  ;;  %863 = vmatpush3.bf16.msra.mxu1 %v886_v9 }
  0x1b   : > { %857 = vmatmul.mubr.msk.bf16.vlgmr.msra.gmra.mrb[4].mxu0 %vm408_vm1, %v525_v21  ;;  %v815_v21 = vld [vmem:[%s1055_s7] ss:$0 sm:$0xff] }
  0xe6   : > { %v446_v22 = vpop.f32.mrb[0].mxu0 }
  0xe7   : > { %v502_v23 = vpop.f32.mrb[0].mxu1  ;;  %v842_v24 = vpop.f32.mrb[1].mxu0 }
  0xe8   : > { %v503_v25 = vadd.f32 %v502_v23, %v446_v22  ;;  %v850_v26 = vpop.f32.mrb[1].mxu1  ;;  %v449_v27 = vpop.f32.mrb[2].mxu0 }
  0xe9   : > { %v505_v28 = vpop.f32.mrb[2].mxu1  ;;  %v843_v29 = vpop.f32.mrb[3].mxu0  ;;  %v816_v26 = vld [vmem:[%s1057_s9] ss:$0 sm:$0xff] }
  0xea   : > { %v506_v30 = vadd.f32 %v505_v28, %v449_v27  ;;  %v851_v31 = vpop.f32.mrb[3].mxu1 }
  0xee   : > { %v575_v32 = vpop.f32.mrb[4].mxu0 }
  0xef   : > { %v582_v34 = vadd.f32 %v575_v32, %v503_v25  ;;  %v858_v35 = vpop.f32.mrb[5].mxu0 }
  0xf0   : > { %v578_v36 = vpop.f32.mrb[6].mxu0 }
  0xf1   : > { %v591_v37 = vadd.f32 %v813_v33, %v582_v34  ;;  %v583_v38 = vadd.f32 %v578_v36, %v506_v30  ;;  %v859_v39 = vpop.f32.mrb[7].mxu0 }
  0xf3   : > { %v595_v40 = vmul.f32 %v591_v37, %v591_v37  ;;  %v592_v41 = vadd.f32 %v813_v33, %v583_v38  ;;  %v593_v52 = vmul.f32 0.5, %v591_v37 }
  0xf5   : > { %v596_v42 = vmul.f32 %v592_v41, %v592_v41  ;;  %v597_v43 = vmul.f32 %v595_v40, %v591_v37  ;;  %v594_v56 = vmul.f32 0.5, %v592_v41 }
  0xf7   : > { %v598_v44 = vmul.f32 %v596_v42, %v592_v41  ;;  %v599_v45 = vmul.f32 0.044715, %v597_v43 }
  0xf9   : > { %v601_v46 = vadd.f32 %v599_v45, %v591_v37  ;;  %v600_v47 = vmul.f32 0.044715, %v598_v44 }
  0xfb   : > { %v603_v48 = vmul.f32 0.7978846, %v601_v46  ;;  %v602_v49 = vadd.f32 %v600_v47, %v592_v41 }
  0xfd   : > { %887 = vtanh.f32 %v603_v48  ;;  %v604_v50 = vmul.f32 0.7978846, %v602_v49 }
  0xff   : > { %889 = vtanh.f32 %v604_v50 }
 0x107   : > { %v888_v51 = vpop.eup %887 }
 0x108   : > { %v607_v53 = vadd.f32 1.0, %v888_v51 }
 0x109   : > { %v890_v54 = vpop.eup %889 }
 0x10a   : > { %v609_v55 = vmul.f32 %v607_v53, %v593_v52  ;;  %v608_v57 = vadd.f32 1.0, %v890_v54 }
 0x10c   : > { %v613_v58 = vsel %vm408_vm1, %v609_v55, 0.0  ;;  %v610_v59 = vmul.f32 %v608_v57, %v594_v56 }
 0x10d   : > { %614 = vadd.xlane.f32.xlu0 %v613_v58 }
 0x10e   : > { %v616_v60 = vsel %vm408_vm1, %v610_v59, 0.0 }
 0x111   : > { %617 = vadd.xlane.f32.xlu0 %v616_v60 }
 0x19a   : > { %v615_v61 = vpop.xlane.xlu0 %614 }
 0x19b   : > { %v620_v62 = vmul.f32 0.03125, %v615_v61 }
 0x19d   : > { %v622_v63 = vsub.f32 %v609_v55, %v620_v62 }
 0x19e   : > { %v618_v0 = vpop.xlane.xlu0 %617 }
 0x19f   : > { %v621_v2 = vmul.f32 0.03125, %v618_v0  ;;  %v624_v3 = vmul.f32 %v622_v63, %v622_v63 }
 0x1a1   : > { %v623_v4 = vsub.f32 %v610_v59, %v621_v2  ;;  %v626_v5 = vsel %vm408_vm1, %v624_v3, 0.0 }
 0x1a2   : > { %627 = vadd.xlane.f32.xlu1 %v626_v5 }
 0x1a3   : > { %v625_v6 = vmul.f32 %v623_v4, %v623_v4 }
 0x1a5   : > { %v629_v7 = vsel %vm408_vm1, %v625_v6, 0.0 }
 0x1a6   : > { %630 = vadd.xlane.f32.xlu1 %v629_v7 }
 0x22f   : > { %v628_v10 = vpop.xlane.xlu1 %627 }
 0x230   : > { %v632_v11 = vmul.f32 0.03125, %v628_v10 }
 0x232   : > { %v634_v12 = vadd.f32 1e-05, %v632_v11 }
 0x233   : > { %v631_v13 = vpop.xlane.xlu1 %630 }
 0x234   : > { %891 = vrsqrt.f32 %v634_v12  ;;  %v633_v14 = vmul.f32 0.03125, %v631_v13 }
 0x236   : > { %v635_v15 = vadd.f32 1e-05, %v633_v14 }
 0x238   : > { %893 = vrsqrt.f32 %v635_v15 }
 0x23e   : > { %v892_v16 = vpop.eup %891 }
 0x23f   : > { %v638_v17 = vmul.f32 %v892_v16, %v622_v63 }
 0x241   : > { %v646_v19 = vmul.f32 %v814_v1, %v638_v17 }
 0x242   : > { %v894_v18 = vpop.eup %893 }
 0x243   : > { %v639_v20 = vmul.f32 %v894_v18, %v623_v4  ;;  %v654_v23 = vadd.f32 %v815_v21, %v646_v19 }
 0x245   : > { %v647_v22 = vmul.f32 %v814_v1, %v639_v20 }
 0x247   : > { %v655_v24 = vadd.f32 %v815_v21, %v647_v22 }
 0x249   : > { %v660_v25 = vpack.c.bf16 %v655_v24, %v654_v23 }
 0x24b   : > { %865 = vmatmul.mubr.msk.bf16.vlgmr.msra.gmra.mrb[4].mxu1 %vm408_vm1, %v660_v25 }
 0x31e   : > { %v717_v27 = vpop.f32.mrb[4].mxu1 }
 0x31f   : > { %v718_v28 = vadd.f32 %v816_v26, %v717_v27  ;;  %v866_v29 = vpop.f32.mrb[5].mxu1 }
 0x320   : > { %v720_v30 = vpop.f32.mrb[6].mxu1 }
 0x321   : > { %725 = vst.msk [vmem:[%s379_s12] sm:$0xff] %vm724_vm3, %v718_v28  ;;  %v721_v31 = vadd.f32 %v816_v26, %v720_v30  ;;  %v867_v32 = vpop.f32.mrb[7].mxu1 }
 0x323   : > { %726 = vst.msk [vmem:[%s379_s12 + $0x8] sm:$0xff] %vm724_vm3, %v721_v31 }
 0x324 PF: > { %s20_s13 = sadd.s32 1, %s901_s13  }
 0x325   : > { %p17_p4 = scmp.ge.s32.totalorder %s20_s13, 4  }
 0x327   :  { %19 = sbr.rel (!%p17_p4) target bundleno = 1 (0x1), region = 93 }

// kernel: wav2vec2_encoder_forward.7
= control target key start
LH: loop header
LB: loop body
LE: loop exit
PB: predicated region body
PF: predicated region fallthrough
CT: control target
= control target key end

     0   :  { %s3823_s24 = smov 0   ;;  %s3825_s25 = smov 0   ;;  %s4297_s0 = inlined_call_operand.vmem [shape: f32[2,16,64], index: 0, kind: input, shape index: {}]   ;;  %s4298_s1 = inlined_call_operand.vmem [shape: bf16[2,4,64,16], index: 1, kind: input, shape index: {}]   ;;  %s4299_s2 = inlined_call_operand.vmem [shape: bf16[2,4,64,16], index: 2, kind: input, shape index: {}]   ;;  %s4300_s3 = inlined_call_operand.vmem [shape: bf16[2,4,64,16], index: 3, kind: input, shape index: {}]   ;;  %s4301_s4 = inlined_call_operand.vmem [shape: f32[2,4,1,16], index: 4, kind: input, shape index: {}]   ;;  %s4302_s5 = inlined_call_operand.vmem [shape: f32[2,4,1,16], index: 5, kind: input, shape index: {}]   ;;  %s4303_s6 = inlined_call_operand.vmem [shape: f32[2,4,1,16], index: 6, kind: input, shape index: {}]   ;;  %s4304_s7 = inlined_call_operand.vmem [shape: bf16[2,4,16,64], index: 7, kind: input, shape index: {}]   ;;  %s4305_s8 = inlined_call_operand.vmem [shape: f32[2,1,64], index: 8, kind: input, shape index: {}]   ;;  %s4306_s9 = inlined_call_operand.vmem [shape: f32[2,1,64], index: 9, kind: input, shape index: {}]   ;;  %s4307_s10 = inlined_call_operand.vmem [shape: f32[2,1,64], index: 10, kind: input, shape index: {}]   ;;  %s4308_s11 = inlined_call_operand.vmem [shape: bf16[2,64,128], index: 11, kind: input, shape index: {}]   ;;  %s4309_s12 = inlined_call_operand.vmem [shape: f32[2,1,128], index: 12, kind: input, shape index: {}]   ;;  %s4310_s13 = inlined_call_operand.vmem [shape: bf16[2,128,64], index: 13, kind: input, shape index: {}]   ;;  %s4311_s14 = inlined_call_operand.vmem [shape: f32[2,1,64], index: 14, kind: input, shape index: {}]   ;;  %s4312_s15 = inlined_call_operand.vmem [shape: f32[2,1,64], index: 15, kind: input, shape index: {}]   ;;  %s4313_s16 = inlined_call_operand.vmem [shape: f32[2,1,64], index: 16, kind: input, shape index: {}]   ;;  %s4314_s17 = inlined_call_operand.vmem [shape: f32[2,16,64], index: 17, kind: output, shape index: {}]  }
   0x1   :  { %4323 = sst [smem:[#allocation13_spill]] %s4297_s0  ;;  %s3827_s26 = smov 0  }
   0x2   :  { %4324 = sst [smem:[#allocation14_spill]] %s4298_s1  ;;  %s3829_s27 = smov 0  }
   0x3   :  { %4325 = sst [smem:[#allocation15_spill]] %s4299_s2  ;;  %s3831_s28 = smov 0  }
   0x4   :  { %4326 = sst [smem:[#allocation16_spill]] %s4300_s3 }
   0x5   :  { %4327 = sst [smem:[#allocation17_spill]] %s4301_s4 }
   0x6   :  { %4328 = sst [smem:[#allocation18_spill]] %s4302_s5 }
   0x7   :  { %4329 = sst [smem:[#allocation19_spill]] %s4303_s6 }
   0x8   :  { %4330 = sst [smem:[#allocation20_spill]] %s4304_s7 }
   0x9   :  { %4331 = sst [smem:[#allocation21_spill]] %s4308_s11 }
   0xa   :  { %4332 = sst [smem:[#allocation22_spill]] %s4309_s12 }
   0xb   :  { %4333 = sst [smem:[#allocation23_spill]] %s4313_s16 }
   0xc   :  { %4334 = sst [smem:[#allocation24_spill]] %s4314_s17 }
   0xd LB: > { %4335 = sst [smem:[#allocation3_spill]] %s3713_s24  ;;  %s36_s29 = sadd.s32 1, %s3721_s26  ;;  %s3729_s28 = sphi %s3831_s28, %s27_s28   ;;  %s3725_s27 = sphi %s3829_s27, %s4372_s27   ;;  %s3721_s26 = sphi %s3827_s26, %s4371_s26   ;;  %s3717_s25 = sphi %s3825_s25, %s4370_s25   ;;  %s3713_s24 = sphi %s3823_s24, %s4369_s24  }
   0xe   : > { %4336 = sst [smem:[#allocation4_spill]] %s3721_s26  ;;  %s39_s0 = sadd.s32 1, %s3725_s27 }
   0xf   : > { %4337 = sst [smem:[#allocation5_spill]] %s3725_s27  ;;  %p37_p0 = scmp.ge.s32.totalorder %s36_s29, 2 }
  0x10   : > { %4338 = sst [smem:[#allocation6_spill]] %s3729_s28  ;;  %p3054_p1 = scmp.ge.s32.totalorder %s3729_s28, 1 }
  0x11   : > { %p642_p2 = scmp.lt.s32.totalorder %s3729_s28, 5  ;;  %s4374_s29 = smov (%p37_p0, %s36_s29), 0 }
  0x12   : > { %4339 = sst [smem:[#allocation7_spill]] %s4374_s29  ;;  %s4376_s0 = smov (!%p37_p0, %s39_s0), %s3725_s27 }
  0x13   : > { %p643_p3 = pnand %p3054_p1, %p642_p2  ;;  %p41_p4 = scmp.ge.s32.totalorder %s4376_s0, 2 }
  0x15   : > { %s4378_s0 = smov (%p41_p4, %s4376_s0), 0  ;;  %646 = sbr.rel (%p643_p3) target bundleno = 5098 (0x13ea), region = 88 }
  0x16   : > { %4340 = sst [smem:[#allocation8_spill]] %s4378_s0 }
  0x1c   : > { %p757_p5 = scmp.lt.s32.totalorder %s3717_s25, 1  ;;  %p762_p6 = scmp.lt.s32.totalorder %s3713_s24, 1 }
  0x1d   : > { %s4341_s20 = sld [smem:[#allocation13_spill]]  ;;  %s4342_s29 = sld [smem:[#allocation14_spill]] }
  0x1e   : > { %s4380_s25 = smov (!%p757_p5, %s3717_s25), 1  ;;  %s4344_s2 = sld [smem:[#allocation15_spill]] }
  0x1f   : > { %s3857_s30 = scalar_select %p762_p6, %s3713_s24, 1 }
  0x20   : > { %s3185_s18 = sshll.u32 %s4380_s25, 4  ;;  %s4345_s3 = sld [smem:[#allocation16_spill]] }
  0x21   : > { %s3186_s22 = sshll.u32 %s3857_s30, 7  ;;  %s3063_s1 = sshll.u32 %s3857_s30, 2 }
  0x22   : > { %s4347_s4 = sld [smem:[#allocation17_spill]]  ;;  %s4349_s5 = sld [smem:[#allocation18_spill]] }
  0x23   : > { %s761_s21 = scalar_lea.vmem %s4341_s20, %s3185_s18  ;;  %s3866_s27 = scalar_lea.vmem %s4342_s29, %s3186_s22 }
  0x24   : > { %4343 = sst [smem:[#allocation9_spill]] %s3866_s27  ;;  %s3871_s24 = scalar_lea.vmem %s4344_s2, %s3186_s22 }
  0x25   : > { %s4350_s6 = sld [smem:[#allocation19_spill]]  ;;  %s3189_s17 = sshll.u32 %s3857_s30, 5 }
  0x26   : > { %s3876_s19 = scalar_lea.vmem %s4345_s3, %s3186_s22  ;;  %s4351_s7 = sld [smem:[#allocation20_spill]] }
  0x27   : > { %4346 = sst [smem:[#allocation10_spill]] %s3876_s19  ;;  %s4353_s11 = sld [smem:[#allocation21_spill]] }
  0x28   : > { %s3882_s0 = scalar_lea.vmem %s4347_s4, %s3063_s1  ;;  %s3887_s27 = scalar_lea.vmem %s4349_s5, %s3063_s1 }
  0x29   : > { %4348 = sst [smem:[#allocation11_spill]] %s3882_s0  ;;  %s818_s20 = scalar_lea.vmem %s4311_s14, %s3857_s30 }
  0x2a   : > { %s4355_s26 = sld [smem:[#allocation23_spill]]  ;;  %s4357_s19 = sld [smem:[#allocation3_spill]] }
  0x2b   : > { %s3892_s2 = scalar_lea.vmem %s4350_s6, %s3063_s1  ;;  %s821_s1 = scalar_lea.vmem %s4312_s15, %s3857_s30 }
  0x2c   : > { %s3898_s3 = scalar_lea.vmem %s4351_s7, %s3189_s17  ;;  %s4356_s7 = sld [smem:[#allocation24_spill]] }
  0x2d   : > { %4352 = sst [smem:[#allocation12_spill]] %s3898_s3  ;;  %s3915_s6 = scalar_lea.vmem %s4353_s11, %s3189_s17 }
  0x2e   : > { %s3191_s3 = sshll.u32 %s3857_s30, 6 }
  0x2f   : > { %s3929_s29 = scalar_lea.vmem %s4310_s13, %s3191_s3 }
  0x30   : > { %s824_s11 = scalar_lea.vmem %s4355_s26, %s3857_s30  ;;  %p3074_p7 = scmp.ne.s32.totalorder %s4357_s19, 0 }
  0x31   : > { %v835_v0 = vld [vmem:[%s761_s21] sm:$0xff] (!%p3074_p7)  ;;  %vm837_vm0 = vcmask (!%p3074_p7), 523264   ;;  %v836_v1 = vld [vmem:[%s761_s21 + $0x8] sm:$0xff] (!%p3074_p7) }
  0x32   : > { %s3942_s12 = scalar_lea.vmem %s4356_s7, %s3185_s18  ;;  %834 = sbr.rel (%p3074_p7) target bundleno = 57 (0x39), region = 92  ;;  %838 = vst.msk [vmem:[#allocation2] sm:$0xff] (!%p3074_p7), %vm837_vm0, %v835_v0  ;;  %839 = vst.msk [vmem:[#allocation2 + $0x8] sm:$0xff] (!%p3074_p7), %vm837_vm0, %v836_v1 }
  0x39 PF: > { %s4358_s3 = sld [smem:[#allocation9_spill]]  ;;  %v3581_v2 = vld [vmem:[%s3871_s24] sm:$0xff]   ;;  %v3731_v3 = vmov 0.0   ;;  %v3582_v4 = vld [vmem:[%s3871_s24 + $0x8] sm:$0xff]   ;;  %vm3732_vm1 = vmmov 0   ;;  %v3584_v7 = vld [vmem:[%s3871_s24 + $0x10] sm:$0xff]   ;;  %s4363_s4 = scalar_lea.vmem %s4306_s9, %s3857_s30 }
  0x3a   : > { %3303 = vmatprep.subr.bf16.mxu1 %v3731_v3  ;;  %3291 = vmatprep.subr.bf16.mxu0 %v3731_v3  ;;  %s4359_s7 = sld [smem:[#allocation10_spill]]  ;;  %v3586_v8 = vld [vmem:[%s3871_s24 + $0x18] sm:$0xff]   ;;  %v840_v10 = vld [vmem:[#allocation2] sm:$0xff]  ;;  %v841_v11 = vld [vmem:[#allocation2 + $0x8] sm:$0xff]  ;;  %vm989_vm2 = vcmask 523264   ;;  %s4360_s18 = sld [smem:[#allocation11_spill]] }
  0x3b   : > { %3304 = vmatpush3.bf16.msra.mxu1 %v3581_v2  ;;  %3311 = vmatprep.mubr.msk.bf16.mxu1 %vm3732_vm1, %v3731_v3  ;;  %v3964_v13 = vpack.c.bf16 %v841_v11, %v840_v10  ;;  %v3081_v18 = vld [vmem:[%s3887_s27] ss:$0 sm:$0xff]  ;;  %vm1178_vm3 = vcmask 130048   ;;  %v3598_v10 = vld [vmem:[%s3871_s24 + $0x38] sm:$0xff]   ;;  %s4361_s21 = sld [smem:[#allocation12_spill]]  ;;  %s4364_s5 = scalar_lea.vmem %s4307_s10, %s3857_s30 }
  0x3c   : > { %3305 = vmatprep.subr.bf16.mxu1 %v3731_v3  ;;  %3299 = vmatprep.mubr.msk.bf16.mxu0 %vm3732_vm1, %v3731_v3  ;;  %v3087_v35 = vld [vmem:[%s3892_s2] ss:$0 sm:$0xff]  ;;  %s4365_s28 = sld [smem:[#allocation22_spill]] }
  0x3f   : > { %v3583_v5 = vld [vmem:[%s4358_s3] sm:$0xff]   ;;  %v3585_v6 = vld [vmem:[%s4358_s3 + $0x8] sm:$0xff]   ;;  %3306 = vmatpush3.bf16.msra.mxu1 %v3582_v4  ;;  %v3587_v9 = vld [vmem:[%s4358_s3 + $0x10] sm:$0xff]  }
  0x40   : > { %3292 = vmatpush3.bf16.msra.mxu0 %v3583_v5  ;;  %3307 = vmatprep.subr.bf16.mxu1 %v3731_v3  ;;  %v3588_v12 = vld [vmem:[%s4358_s3 + $0x18] sm:$0xff]   ;;  %v3589_v14 = vld [vmem:[%s4359_s7] sm:$0xff]   ;;  %v3590_v15 = vld [vmem:[%s4359_s7 + $0x8] sm:$0xff]  }
  0x41   : > { %3293 = vmatprep.subr.bf16.mxu0 %v3731_v3  ;;  %v3591_v16 = vld [vmem:[%s4359_s7 + $0x10] sm:$0xff]   ;;  %v3592_v17 = vld [vmem:[%s4359_s7 + $0x18] sm:$0xff]   ;;  %v3075_v20 = vld [vmem:[%s4360_s18] ss:$0 sm:$0xff] }
  0x42   : > { %v3595_v59 = vld [vmem:[%s4358_s3 + $0x20] sm:$0xff]   ;;  %v3597_v60 = vld [vmem:[%s4358_s3 + $0x28] sm:$0xff]   ;;  %v3599_v61 = vld [vmem:[%s4358_s3 + $0x30] sm:$0xff]   ;;  %s4366_s22 = scalar_lea.vmem %s4365_s28, %s3857_s30 }
  0x43   : > { %3308 = vmatpush3.bf16.msra.mxu1 %v3584_v7  ;;  %v3600_v62 = vld [vmem:[%s4358_s3 + $0x38] sm:$0xff]   ;;  %v3095_v11 = vld [vmem:[%s4360_s18 + $0x1] ss:$0 sm:$0xff] }
  0x44   : > { %3294 = vmatpush3.bf16.msra.mxu0 %v3585_v6  ;;  %3309 = vmatprep.subr.bf16.mxu1 %v3731_v3  ;;  %v3593_v6 = vld [vmem:[%s3871_s24 + $0x20] sm:$0xff]  }
  0x45   : > { %3295 = vmatprep.subr.bf16.mxu0 %v3731_v3 }
  0x47   : > { %3310 = vmatpush3.bf16.msra.mxu1 %v3586_v8  ;;  %v3594_v8 = vld [vmem:[%s3871_s24 + $0x28] sm:$0xff]  }
  0x48   : > { %3296 = vmatpush3.bf16.msra.mxu0 %v3587_v9  ;;  %3333 = vmatprep.subr.bf16.mxu1 %v3731_v3  ;;  %v3596_v9 = vld [vmem:[%s3871_s24 + $0x30] sm:$0xff]  }
  0x49   : > { %3297 = vmatprep.subr.bf16.mxu0 %v3731_v3 }
  0x4a   : > { %3312 = vmatmul.mubr.msk.bf16.vlgmr.msra.gmra.mrb[0].mxu1 %vm989_vm2, %v3964_v13 }
  0x4b   : > { %3335 = vmatprep.mubr.msk.bf16.mxu1 %vm3732_vm1, %v3731_v3 }
  0x4c   : > { %3298 = vmatpush3.bf16.msra.mxu0 %v3588_v12 }
  0x4d   : > { %3315 = vmatprep.subr.bf16.mxu0 %v3731_v3 }
  0x4f   : > { %3300 = vmatmul.mubr.msk.bf16.vlgmr.msra.gmra.mrb[0].mxu0 %vm989_vm2, %v3964_v13 }
  0x50   : > { %3316 = vmatpush3.bf16.msra.mxu0 %v3589_v14  ;;  %3323 = vmatprep.mubr.msk.bf16.mxu0 %vm3732_vm1, %v3731_v3 }
  0x51   : > { %3317 = vmatprep.subr.bf16.mxu0 %v3731_v3 }
  0x54   : > { %3318 = vmatpush3.bf16.msra.mxu0 %v3590_v15 }
  0x55   : > { %3319 = vmatprep.subr.bf16.mxu0 %v3731_v3 }
  0x58   : > { %3320 = vmatpush3.bf16.msra.mxu0 %v3591_v16 }
  0x59   : > { %3321 = vmatprep.subr.bf16.mxu0 %v3731_v3 }
  0x5c   : > { %3322 = vmatpush3.bf16.msra.mxu0 %v3592_v17 }
  0x5d   : > { %3327 = vmatprep.subr.bf16.mxu0 %v3731_v3 }
  0x5f   : > { %3324 = vmatmul.mubr.msk.bf16.vlgmr.msra.gmra.mrb[4].mxu0 %vm989_vm2, %v3964_v13 }
  0x60   : > { %3329 = vmatprep.mubr.msk.bf16.mxu0 %vm3732_vm1, %v3731_v3 }
 0x11d   : > { %v1098_v19 = vpop.f32.mrb[0].mxu1 }
 0x11e   : > { %v3313_v21 = vpop.f32.mrb[1].mxu1  ;;  %v1099_v24 = vadd.f32 %v3081_v18, %v1098_v19 }
 0x11f   : > { %v1101_v22 = vpop.f32.mrb[2].mxu1 }
 0x120   : > { %v1102_v25 = vadd.f32 %v3081_v18, %v1101_v22  ;;  %v3314_v26 = vpop.f32.mrb[3].mxu1 }
 0x122   : > { %v1027_v23 = vpop.f32.mrb[0].mxu0  ;;  %v1177_v30 = vpack.c.bf16 %v1102_v25, %v1099_v24  ;;  %v3101_v25 = vld [vmem:[%s3887_s27 + $0x1] ss:$0 sm:$0xff] }
 0x123   : > { %v1028_v27 = vadd.f32 %v3075_v20, %v1027_v23  ;;  %v3301_v28 = vpop.f32.mrb[1].mxu0 }
 0x124   : > { %v1030_v29 = vpop.f32.mrb[2].mxu0  ;;  %v1183_v34 = vsel %vm1178_vm3, %v1177_v30, 0 }
 0x125   : > { %v1031_v31 = vadd.f32 %v3075_v20, %v1030_v29  ;;  %v3302_v32 = vpop.f32.mrb[3].mxu0  ;;  %3328 = vmatpush3.bf16.xpose.msra.mxu0 %v1183_v34  ;;  %v3601_v34 = vld [vmem:[%s4359_s7 + $0x20] sm:$0xff]  }
 0x126   : > { %3339 = vmatprep.subr.bf16.mxu0 %v3731_v3 }
 0x127   : > { %v1176_v33 = vpack.c.bf16 %v1031_v31, %v1028_v27 }
 0x12c   : > { %3330 = vmatmul.mubr.msk.bf16.vlgmr.msra.gmra.mrb[8].mxu0 %vm1178_vm3, %v1176_v33 }
 0x12d   : > { %3347 = vmatprep.mubr.msk.bf16.mxu0 %vm3732_vm1, %v3731_v3  ;;  %3340 = vmatpush3.bf16.msra.mxu0 %v3595_v59 }
 0x12e   : > { %3341 = vmatprep.subr.bf16.mxu0 %v3731_v3 }
 0x131   : > { %3342 = vmatpush3.bf16.msra.mxu0 %v3597_v60 }
 0x132   : > { %v1169_v36 = vpop.f32.mrb[4].mxu0  ;;  %3343 = vmatprep.subr.bf16.mxu0 %v3731_v3 }
 0x133   : > { %v1170_v37 = vadd.f32 %v3087_v35, %v1169_v36  ;;  %v3325_v38 = vpop.f32.mrb[5].mxu0  ;;  %v3603_v36 = vld [vmem:[%s4359_s7 + $0x30] sm:$0xff]  }
 0x134   : > { %v1172_v39 = vpop.f32.mrb[6].mxu0 }
 0x135   : > { %v1173_v40 = vadd.f32 %v3087_v35, %v1172_v39  ;;  %v3326_v41 = vpop.f32.mrb[7].mxu0  ;;  %3344 = vmatpush3.bf16.msra.mxu0 %v3599_v61  ;;  %v3602_v35 = vld [vmem:[%s4359_s7 + $0x28] sm:$0xff]  }
 0x136   : > { %3345 = vmatprep.subr.bf16.mxu0 %v3731_v3 }
 0x137   : > { %v1249_v42 = vpack.c.bf16 %v1173_v40, %v1170_v37  ;;  %v3604_v37 = vld [vmem:[%s4359_s7 + $0x38] sm:$0xff]  }
 0x139   : > { %3334 = vmatpush3.bf16.msra.mxu1 %v1249_v42  ;;  %3346 = vmatpush3.bf16.msra.mxu0 %v3600_v62  ;;  %v3607_v62 = vld [vmem:[%s4361_s21 + $0x8] sm:$0xff]  }
 0x13a   : > { %3351 = vmatprep.subr.bf16.mxu1 %v3731_v3  ;;  %3363 = vmatprep.subr.bf16.mxu0 %v3731_v3 }
 0x13c   : > { %3348 = vmatmul.mubr.msk.bf16.vlgmr.msra.gmra.mrb[12].mxu0 %vm989_vm2, %v3964_v13 }
 0x13d   : > { %3371 = vmatprep.mubr.msk.bf16.mxu0 %vm3732_vm1, %v3731_v3  ;;  %3364 = vmatpush3.bf16.msra.mxu0 %v3601_v34 }
 0x13e   : > { %3365 = vmatprep.subr.bf16.mxu0 %v3731_v3 }
 0x141   : > { %3366 = vmatpush3.bf16.msra.mxu0 %v3602_v35 }
 0x142   : > { %3367 = vmatprep.subr.bf16.mxu0 %v3731_v3 }
 0x145   : > { %3368 = vmatpush3.bf16.msra.mxu0 %v3603_v36 }
 0x146   : > { %3369 = vmatprep.subr.bf16.mxu0 %v3731_v3 }
 0x149   : > { %3370 = vmatpush3.bf16.msra.mxu0 %v3604_v37 }
 0x14a   : > { %3387 = vmatprep.subr.bf16.mxu0 %v3731_v3 }
 0x14c   : > { %3372 = vmatmul.mubr.msk.bf16.vlgmr.msra.gmra.mrb[16].mxu0 %vm989_vm2, %v3964_v13 }
 0x14d   : > { %3389 = vmatprep.mubr.msk.bf16.mxu0 %vm3732_vm1, %v3731_v3  ;;  %3388 = vmatpush3.bf16.msra.mxu0 %v3607_v62 }
 0x14e   : > { %3399 = vmatprep.subr.bf16.mxu0 %v3731_v3 }
 0x1ff   : > { %v1219_v43 = vpop.f32.mrb[8].mxu0 }
 0x200   : > { %v3331_v44 = vpop.f32.mrb[9].mxu0  ;;  %v1226_v45 = vsel %vm1178_vm3, %v1219_v43, -inf }
 0x201   : > { %1227 = vmax.xlane.f32.xlu0 %v1226_v45  ;;  %v1222_v46 = vpop.f32.mrb[10].mxu0 }
 0x202   : > { %v3332_v47 = vpop.f32.mrb[11].mxu0  ;;  %v1229_v48 = vsel %vm1178_vm3, %v1222_v46, -inf }
 0x205   : > { %1230 = vmax.xlane.f32.xlu0 %v1229_v48 }
 0x20f   : > { %v1359_v12 = vpop.f32.mrb[12].mxu0 }
 0x210   : > { %v1360_v14 = vadd.f32 %v3095_v11, %v1359_v12  ;;  %v3349_v15 = vpop.f32.mrb[13].mxu0 }
 0x211   : > { %v1362_v16 = vpop.f32.mrb[14].mxu0 }
 0x212   : > { %v1363_v17 = vadd.f32 %v3095_v11, %v1362_v16  ;;  %v3350_v18 = vpop.f32.mrb[15].mxu0  ;;  %v3611_v11 = vld [vmem:[%s3871_s24 + $0x58] sm:$0xff]   ;;  %v3610_v16 = vld [vmem:[%s4358_s3 + $0x40] sm:$0xff]  }
 0x214   : > { %v1508_v19 = vpack.c.bf16 %v1363_v17, %v1360_v14 }
 0x28e   : > { %v1228_v49 = vpop.xlane.xlu0 %1227 }
 0x28f   : > { %v1232_v50 = vsub.f32 %v1219_v43, %v1228_v49 }
 0x291   : > { %v1234_v51 = vmul.f32 1.442695, %v1232_v50 }
 0x292   : > { %v1231_v52 = vpop.xlane.xlu0 %1230 }
 0x293   : > { %3645 = vpow2.f32 %v1234_v51  ;;  %v1233_v53 = vsub.f32 %v1222_v46, %v1231_v52 }
 0x295   : > { %v1236_v54 = vmul.f32 1.442695, %v1233_v53 }
 0x297   : > { %3647 = vpow2.f32 %v1236_v54  ;;  %v1501_v54 = vpop.f32.mrb[16].mxu0 }
 0x29d   : > { %v3646_v55 = vpop.eup %3645 }
 0x29e   : > { %v1238_v56 = vsel %vm1178_vm3, %v3646_v55, 0.0 }
 0x29f   : > { %1239 = vadd.xlane.f32.xlu1 %v1238_v56 }
 0x2a1   : > { %v3648_v57 = vpop.eup %3647 }
 0x2a2   : > { %v1241_v58 = vsel %vm1178_vm3, %v3648_v57, 0.0 }
 0x2a3   : > { %1242 = vadd.xlane.f32.xlu1 %v1241_v58 }
 0x32c   : > { %v1240_v63 = vpop.xlane.xlu1 %1239 }
 0x32d   : > { %3649 = vrcp.f32 %v1240_v63 }
 0x330   : > { %v1243_v0 = vpop.xlane.xlu1 %1242 }
 0x331   : > { %3651 = vrcp.f32 %v1243_v0 }
 0x337   : > { %v3650_v1 = vpop.eup %3649 }
 0x338   : > { %v1246_v4 = vmul.f32 %v3650_v1, %v3646_v55  ;;  %v3373_v55 = vpop.f32.mrb[17].mxu0 }
 0x339   : > { %v1504_v56 = vpop.f32.mrb[18].mxu0 }
 0x33a   : > { %v3374_v58 = vpop.f32.mrb[19].mxu0 }
 0x33b   : > { %v3652_v2 = vpop.eup %3651 }
 0x33c   : > { %v1247_v5 = vmul.f32 %v3652_v2, %v3648_v57  ;;  %v3107_v57 = vld [vmem:[%s3892_s2 + $0x1] ss:$0 sm:$0xff] }
 0x33d   : > { %v1502_v59 = vadd.f32 %v3107_v57, %v1501_v54  ;;  %v1505_v60 = vadd.f32 %v3107_v57, %v1504_v56 }
 0x33e   : > { %v1248_v7 = vpack.c.bf16 %v1247_v5, %v1246_v4 }
 0x33f   : > { %v1580_v61 = vpack.c.bf16 %v1505_v60, %v1502_v59 }
 0x340   : > { %3336 = vmatmul.mubr.msk.bf16.vlgmr.msra.gmra.mrb[4].mxu1 %vm1178_vm3, %v1248_v7 }
 0x341   : > { %3352 = vmatpush3.bf16.msra.mxu1 %v3593_v6  ;;  %3359 = vmatprep.mubr.msk.bf16.mxu1 %vm3732_vm1, %v3731_v3  ;;  %v3605_v6 = vld [vmem:[%s4361_s21] sm:$0xff]  }
 0x342   : > { %3353 = vmatprep.subr.bf16.mxu1 %v3731_v3 }
 0x345   : > { %3354 = vmatpush3.bf16.msra.mxu1 %v3594_v8  ;;  %v3606_v8 = vld [vmem:[%s3871_s24 + $0x40] sm:$0xff]  }
 0x346   : > { %3355 = vmatprep.subr.bf16.mxu1 %v3731_v3 }
 0x349   : > { %3356 = vmatpush3.bf16.msra.mxu1 %v3596_v9  ;;  %v3608_v9 = vld [vmem:[%s3871_s24 + $0x48] sm:$0xff]  }
 0x34a   : > { %3357 = vmatprep.subr.bf16.mxu1 %v3731_v3 }
 0x34d   : > { %3358 = vmatpush3.bf16.msra.mxu1 %v3598_v10  ;;  %v3609_v10 = vld [vmem:[%s3871_s24 + $0x50] sm:$0xff]  }
 0x34e   : > { %3375 = vmatprep.subr.bf16.mxu1 %v3731_v3 }
 0x350   : > { %3360 = vmatmul.mubr.msk.bf16.vlgmr.msra.gmra.mrb[8].mxu1 %vm989_vm2, %v3964_v13 }
 0x351   : > { %3377 = vmatprep.mubr.msk.bf16.mxu1 %vm3732_vm1, %v3731_v3 }
 0x413   : > { %v4030_v20 = vpop.f32.mrb[4].mxu1 }
 0x414   : > { %v3337_v21 = vpop.f32.mrb[5].mxu1 }
 0x415   : > { %v4032_v22 = vpop.f32.mrb[6].mxu1 }
 0x416   : > { %v1294_v23 = vpack.c.bf16 %v4032_v22, %v4030_v20  ;;  %v3338_v24 = vpop.f32.mrb[7].mxu1 }
 0x423   : > { %v1430_v26 = vpop.f32.mrb[8].mxu1 }
 0x424   : > { %v3361_v27 = vpop.f32.mrb[9].mxu1  ;;  %v1431_v29 = vadd.f32 %v3101_v25, %v1430_v26  ;;  %v3125_v26 = vld [vmem:[%s3887_s27 + $0x2] ss:$0 sm:$0xff] }
 0x425   : > { %v1433_v28 = vpop.f32.mrb[10].mxu1 }
 0x426   : > { %v1434_v30 = vadd.f32 %v3101_v25, %v1433_v28  ;;  %v3362_v31 = vpop.f32.mrb[11].mxu1  ;;  %v3614_v25 = vld [vmem:[%s4358_s3 + $0x58] sm:$0xff]  }
 0x428   : > { %v1509_v32 = vpack.c.bf16 %v1434_v30, %v1431_v29 }
 0x42a   : > { %v1514_v33 = vsel %vm1178_vm3, %v1509_v32, 0 }
 0x42b   : > { %3376 = vmatpush3.bf16.xpose.msra.mxu1 %v1514_v33 }
 0x42c   : > { %3381 = vmatprep.subr.bf16.mxu1 %v3731_v3 }
 0x432   : > { %3378 = vmatmul.mubr.msk.bf16.vlgmr.msra.gmra.mrb[12].mxu1 %vm1178_vm3, %v1508_v19  ;;  %v3612_v19 = vld [vmem:[%s4358_s3 + $0x48] sm:$0xff]  }
 0x433   : > { %3383 = vmatprep.mubr.msk.bf16.mxu1 %vm3732_vm1, %v3731_v3  ;;  %3382 = vmatpush3.bf16.msra.mxu1 %v1580_v61 }
 0x434   : > { %3393 = vmatprep.subr.bf16.mxu1 %v3731_v3 }
 0x505   : > { %v1550_v38 = vpop.f32.mrb[12].mxu1 }
 0x506   : > { %v3379_v39 = vpop.f32.mrb[13].mxu1  ;;  %v1557_v40 = vsel %vm1178_vm3, %v1550_v38, -inf }
 0x507   : > { %1558 = vmax.xlane.f32.xlu0 %v1557_v40  ;;  %v1553_v41 = vpop.f32.mrb[14].mxu1 }
 0x508   : > { %v3380_v42 = vpop.f32.mrb[15].mxu1  ;;  %v1560_v43 = vsel %vm1178_vm3, %v1553_v41, -inf }
 0x509   : > { %1561 = vmax.xlane.f32.xlu1 %v1560_v43 }
 0x594   : > { %v1559_v44 = vpop.xlane.xlu0 %1558 }
 0x595   : > { %v1563_v45 = vsub.f32 %v1550_v38, %v1559_v44 }
 0x596   : > { %v1562_v46 = vpop.xlane.xlu1 %1561 }
 0x597   : > { %v1565_v47 = vmul.f32 1.442695, %v1563_v45  ;;  %v1564_v48 = vsub.f32 %v1553_v41, %v1562_v46  ;;  %v3119_v41 = vld [vmem:[%s4360_s18 + $0x2] ss:$0 sm:$0xff] }
 0x599   : > { %3653 = vpow2.f32 %v1565_v47  ;;  %v1567_v49 = vmul.f32 1.442695, %v1564_v48 }
 0x59b   : > { %3655 = vpow2.f32 %v1567_v49  ;;  %v3615_v49 = vld [vmem:[%s4359_s7 + $0x40] sm:$0xff]  }
 0x5a3   : > { %v3654_v50 = vpop.eup %3653 }
 0x5a4   : > { %v1569_v51 = vsel %vm1178_vm3, %v3654_v50, 0.0 }
 0x5a5   : > { %v3656_v52 = vpop.eup %3655  ;;  %1570 = vadd.xlane.f32.xlu0 %v1569_v51  ;;  %v3617_v51 = vld [vmem:[%s4359_s7 + $0x50] sm:$0xff]  }
 0x5a6   : > { %v1572_v53 = vsel %vm1178_vm3, %v3656_v52, 0.0 }
 0x5a7   : > { %1573 = vadd.xlane.f32.xlu1 %v1572_v53 }
 0x632   : > { %v1571_v63 = vpop.xlane.xlu0 %1570 }
 0x633   : > { %3657 = vrcp.f32 %v1571_v63 }
 0x634   : > { %v1574_v0 = vpop.xlane.xlu1 %1573 }
 0x635   : > { %3659 = vrcp.f32 %v1574_v0 }
 0x63d   : > { %v3658_v1 = vpop.eup %3657 }
 0x63e   : > { %v1577_v4 = vmul.f32 %v3658_v1, %v3654_v50  ;;  %v3616_v50 = vld [vmem:[%s4359_s7 + $0x48] sm:$0xff]  }
 0x63f   : > { %v3660_v2 = vpop.eup %3659 }
 0x640   : > { %v1578_v5 = vmul.f32 %v3660_v2, %v3656_v52  ;;  %v3618_v52 = vld [vmem:[%s4359_s7 + $0x58] sm:$0xff]  }
 0x642   : > { %v1579_v7 = vpack.c.bf16 %v1578_v5, %v1577_v4 }
 0x644   : > { %3384 = vmatmul.mubr.msk.bf16.vlgmr.msra.gmra.mrb[16].mxu1 %vm1178_vm3, %v1579_v7 }
 0x645   : > { %3394 = vmatpush3.bf16.msra.mxu1 %v3605_v6  ;;  %3395 = vmatprep.mubr.msk.bf16.mxu1 %vm3732_vm1, %v3731_v3 }
 0x646   : > { %3411 = vmatprep.subr.bf16.mxu1 %v3731_v3 }
 0x64c   : > { %3396 = vmatmul.mubr.msk.bf16.vlgmr.msra.gmra.mrb[20].mxu1 %vm1178_vm3, %v1294_v23  ;;  %v3613_v23 = vld [vmem:[%s4358_s3 + $0x50] sm:$0xff]  }
 0x64d   : > { %3412 = vmatpush3.bf16.msra.mxu1 %v3606_v8  ;;  %3419 = vmatprep.mubr.msk.bf16.mxu1 %vm3732_vm1, %v3731_v3 }
 0x64e   : > { %3413 = vmatprep.subr.bf16.mxu1 %v3731_v3 }
 0x651   : > { %3414 = vmatpush3.bf16.msra.mxu1 %v3608_v9  ;;  %v3131_v9 = vld [vmem:[%s3892_s2 + $0x2] ss:$0 sm:$0xff] }
 0x652   : > { %3415 = vmatprep.subr.bf16.mxu1 %v3731_v3 }
 0x655   : > { %3416 = vmatpush3.bf16.msra.mxu1 %v3609_v10 }
 0x656   : > { %3417 = vmatprep.subr.bf16.mxu1 %v3731_v3 }
 0x659   : > { %3418 = vmatpush3.bf16.msra.mxu1 %v3611_v11 }
 0x65a   : > { %3435 = vmatprep.subr.bf16.mxu1 %v3731_v3 }
 0x65c   : > { %3420 = vmatmul.mubr.msk.bf16.vlgmr.msra.gmra.mrb[24].mxu1 %vm989_vm2, %v3964_v13 }
 0x65d   : > { %3437 = vmatprep.mubr.msk.bf16.mxu1 %vm3732_vm1, %v3731_v3 }
 0x717   : > { %v1618_v12 = vpop.f32.mrb[16].mxu1 }
 0x718   : > { %v3385_v14 = vpop.f32.mrb[17].mxu1 }
 0x719   : > { %v1621_v15 = vpop.f32.mrb[18].mxu1 }
 0x71a   : > { %v1625_v17 = vpack.c.bf16 %v1621_v15, %v1618_v12  ;;  %v3386_v18 = vpop.f32.mrb[19].mxu1  ;;  %v3619_v15 = vld [vmem:[%s4361_s21 + $0x10] sm:$0xff]  }
 0x71c   : > { %3390 = vmatmul.mubr.msk.bf16.vlgmr.msra.gmra.mrb[20].mxu0 %vm1178_vm3, %v1625_v17 }
 0x71d   : > { %3400 = vmatpush3.bf16.msra.mxu0 %v3610_v16  ;;  %3407 = vmatprep.mubr.msk.bf16.mxu0 %vm3732_vm1, %v3731_v3 }
 0x71e   : > { %3401 = vmatprep.subr.bf16.mxu0 %v3731_v3 }
 0x71f   : > { %v1719_v20 = vpop.f32.mrb[20].mxu1 }
 0x720   : > { %v3397_v21 = vpop.f32.mrb[21].mxu1 }
 0x721   : > { %3402 = vmatpush3.bf16.msra.mxu0 %v3612_v19  ;;  %v1722_v22 = vpop.f32.mrb[22].mxu1 }
 0x722   : > { %v3398_v24 = vpop.f32.mrb[23].mxu1  ;;  %3403 = vmatprep.subr.bf16.mxu0 %v3731_v3 }
 0x723   : > { %v3624_v24 = vld [vmem:[%s4358_s3 + $0x68] sm:$0xff]  }
 0x725   : > { %3404 = vmatpush3.bf16.msra.mxu0 %v3613_v23  ;;  %v3622_v23 = vld [vmem:[%s4358_s3 + $0x60] sm:$0xff]  }
 0x726   : > { %3405 = vmatprep.subr.bf16.mxu0 %v3731_v3 }
 0x729   : > { %3406 = vmatpush3.bf16.msra.mxu0 %v3614_v25  ;;  %v3626_v25 = vld [vmem:[%s4358_s3 + $0x70] sm:$0xff]  }
 0x72a   : > { %3423 = vmatprep.subr.bf16.mxu0 %v3731_v3 }
 0x72c   : > { %3408 = vmatmul.mubr.msk.bf16.vlgmr.msra.gmra.mrb[24].mxu0 %vm989_vm2, %v3964_v13 }
 0x72d   : > { %3431 = vmatprep.mubr.msk.bf16.mxu0 %vm3732_vm1, %v3731_v3  ;;  %3424 = vmatpush3.bf16.msra.mxu0 %v3615_v49 }
 0x72e   : > { %3425 = vmatprep.subr.bf16.mxu0 %v3731_v3 }
 0x72f   : > { %v1861_v27 = vpop.f32.mrb[24].mxu1 }
 0x730   : > { %v1862_v28 = vadd.f32 %v3125_v26, %v1861_v27  ;;  %v3421_v29 = vpop.f32.mrb[25].mxu1 }
 0x731   : > { %v1864_v30 = vpop.f32.mrb[26].mxu1  ;;  %3426 = vmatpush3.bf16.msra.mxu0 %v3616_v50 }
 0x732   : > { %v1865_v31 = vadd.f32 %v3125_v26, %v1864_v30  ;;  %v3422_v32 = vpop.f32.mrb[27].mxu1  ;;  %3427 = vmatprep.subr.bf16.mxu0 %v3731_v3  ;;  %v3627_v26 = vld [vmem:[%s4358_s3 + $0x78] sm:$0xff]   ;;  %v3620_v30 = vld [vmem:[%s3871_s24 + $0x60] sm:$0xff]  }
 0x734   : > { %v1940_v33 = vpack.c.bf16 %v1865_v31, %v1862_v28 }
 0x735   : > { %3428 = vmatpush3.bf16.msra.mxu0 %v3617_v51 }
 0x736   : > { %v1945_v34 = vsel %vm1178_vm3, %v1940_v33, 0  ;;  %3429 = vmatprep.subr.bf16.mxu0 %v3731_v3  ;;  %v3621_v33 = vld [vmem:[%s3871_s24 + $0x68] sm:$0xff]  }
 0x737   : > { %3436 = vmatpush3.bf16.xpose.msra.mxu1 %v1945_v34  ;;  %v3623_v34 = vld [vmem:[%s3871_s24 + $0x70] sm:$0xff]  }
 0x738   : > { %3441 = vmatprep.subr.bf16.mxu1 %v3731_v3 }
 0x739   : > { %3430 = vmatpush3.bf16.msra.mxu0 %v3618_v52  ;;  %v3147_v52 = vld [vmem:[%s3887_s27 + $0x3] ss:$0 sm:$0xff]  ;;  %s4362_s27 = scalar_lea.vmem %s4305_s8, %s3857_s30 }
 0x73a   : > { %3447 = vmatprep.subr.bf16.mxu0 %v3731_v3 }
 0x73c   : > { %3432 = vmatmul.mubr.msk.bf16.vlgmr.msra.gmra.mrb[28].mxu0 %vm989_vm2, %v3964_v13 }
 0x73d   : > { %3449 = vmatprep.mubr.msk.bf16.mxu0 %vm3732_vm1, %v3731_v3  ;;  %3448 = vmatpush3.bf16.msra.mxu0 %v3619_v15 }
 0x73e   : > { %3465 = vmatprep.subr.bf16.mxu0 %v3731_v3 }
 0x7ef   : > { %v1669_v35 = vpop.f32.mrb[20].mxu0 }
 0x7f0   : > { %v4103_v36 = vadd.f32 %v1719_v20, %v1669_v35  ;;  %v3391_v37 = vpop.f32.mrb[21].mxu0  ;;  %v3625_v35 = vld [vmem:[%s3871_s24 + $0x78] sm:$0xff]  }
 0x7f1   : > { %v1672_v38 = vpop.f32.mrb[22].mxu0  ;;  %v3141_v37 = vld [vmem:[%s4360_s18 + $0x3] ss:$0 sm:$0xff] }
 0x7f2   : > { %v4105_v39 = vadd.f32 %v1722_v22, %v1672_v38  ;;  %v3392_v40 = vpop.f32.mrb[23].mxu0 }
 0x7ff   : > { %v1790_v42 = vpop.f32.mrb[24].mxu0 }
 0x800   : > { %v3409_v43 = vpop.f32.mrb[25].mxu0  ;;  %v1791_v45 = vadd.f32 %v3119_v41, %v1790_v42 }
 0x801   : > { %v1793_v44 = vpop.f32.mrb[26].mxu0 }
 0x802   : > { %v1794_v46 = vadd.f32 %v3119_v41, %v1793_v44  ;;  %v3410_v47 = vpop.f32.mrb[27].mxu0 }
 0x804   : > { %v1939_v48 = vpack.c.bf16 %v1794_v46, %v1791_v45 }
 0x806   : > { %3438 = vmatmul.mubr.msk.bf16.vlgmr.msra.gmra.mrb[28].mxu1 %vm1178_vm3, %v1939_v48 }
 0x807   : > { %3443 = vmatprep.mubr.msk.bf16.mxu1 %vm3732_vm1, %v3731_v3 }
 0x80f   : > { %v1932_v6 = vpop.f32.mrb[28].mxu0 }
 0x810   : > { %v3433_v7 = vpop.f32.mrb[29].mxu0  ;;  %v1933_v11 = vadd.f32 %v3131_v9, %v1932_v6 }
 0x811   : > { %v1935_v8 = vpop.f32.mrb[30].mxu0 }
 0x812   : > { %v3434_v10 = vpop.f32.mrb[31].mxu0  ;;  %v1936_v12 = vadd.f32 %v3131_v9, %v1935_v8 }
 0x814   : > { %v2011_v14 = vpack.c.bf16 %v1936_v12, %v1933_v11 }
 0x816   : > { %3442 = vmatpush3.bf16.msra.mxu1 %v2011_v14 }
 0x817   : > { %3453 = vmatprep.subr.bf16.mxu1 %v3731_v3 }
 0x8d9   : > { %v1981_v53 = vpop.f32.mrb[28].mxu1 }
 0x8da   : > { %v3439_v54 = vpop.f32.mrb[29].mxu1  ;;  %v1988_v55 = vsel %vm1178_vm3, %v1981_v53, -inf }
 0x8db   : > { %1989 = vmax.xlane.f32.xlu0 %v1988_v55  ;;  %v1984_v56 = vpop.f32.mrb[30].mxu1 }
 0x8dc   : > { %v3440_v57 = vpop.f32.mrb[31].mxu1  ;;  %v1991_v58 = vsel %vm1178_vm3, %v1984_v56, -inf }
 0x8dd   : > { %1992 = vmax.xlane.f32.xlu1 %v1991_v58 }
 0x968   : > { %v1990_v59 = vpop.xlane.xlu0 %1989 }
 0x969   : > { %v1994_v60 = vsub.f32 %v1981_v53, %v1990_v59 }
 0x96a   : > { %v1993_v61 = vpop.xlane.xlu1 %1992 }
 0x96b   : > { %v1996_v62 = vmul.f32 1.442695, %v1994_v60  ;;  %v1995_v63 = vsub.f32 %v1984_v56, %v1993_v61  ;;  %v3629_v60 = vld [vmem:[%s4359_s7 + $0x68] sm:$0xff]   ;;  %v3630_v61 = vld [vmem:[%s4359_s7 + $0x70] sm:$0xff]  }
 0x96d   : > { %3661 = vpow2.f32 %v1996_v62  ;;  %v1998_v0 = vmul.f32 1.442695, %v1995_v63  ;;  %v3631_v62 = vld [vmem:[%s4359_s7 + $0x78] sm:$0xff]  }
 0x96f   : > { %3663 = vpow2.f32 %v1998_v0 }
 0x977   : > { %v3662_v1 = vpop.eup %3661 }
 0x978   : > { %v2000_v2 = vsel %vm1178_vm3, %v3662_v1, 0.0 }
 0x979   : > { %v3664_v4 = vpop.eup %3663  ;;  %2001 = vadd.xlane.f32.xlu0 %v2000_v2 }
 0x97a   : > { %v2003_v5 = vsel %vm1178_vm3, %v3664_v4, 0.0 }
 0x97b   : > { %2004 = vadd.xlane.f32.xlu1 %v2003_v5 }
 0xa06   : > { %v2002_v16 = vpop.xlane.xlu0 %2001 }
 0xa07   : > { %3665 = vrcp.f32 %v2002_v16 }
 0xa08   : > { %v2005_v17 = vpop.xlane.xlu1 %2004 }
 0xa09   : > { %3667 = vrcp.f32 %v2005_v17 }
 0xa11   : > { %v3666_v18 = vpop.eup %3665 }
 0xa12   : > { %v2008_v20 = vmul.f32 %v3666_v18, %v3662_v1 }
 0xa13   : > { %v3668_v19 = vpop.eup %3667 }
 0xa14   : > { %v2009_v21 = vmul.f32 %v3668_v19, %v3664_v4  ;;  %v3153_v19 = vld [vmem:[%s3892_s2 + $0x3] ss:$0 sm:$0xff] }
 0xa16   : > { %v2010_v22 = vpack.c.bf16 %v2009_v21, %v2008_v20 }
 0xa18   : > { %3444 = vmatmul.mubr.msk.bf16.vlgmr.msra.gmra.mrb[32].mxu1 %vm1178_vm3, %v2010_v22 }
 0xa19   : > { %3461 = vmatprep.mubr.msk.bf16.mxu1 %vm3732_vm1, %v3731_v3  ;;  %3454 = vmatpush3.bf16.msra.mxu1 %v3622_v23 }
 0xa1a   : > { %3455 = vmatprep.subr.bf16.mxu1 %v3731_v3 }
 0xa1d   : > { %3456 = vmatpush3.bf16.msra.mxu1 %v3624_v24  ;;  %v3632_v24 = vld [vmem:[%s4361_s21 + $0x18] sm:$0xff]  }
 0xa1e   : > { %3457 = vmatprep.subr.bf16.mxu1 %v3731_v3 }
 0xa21   : > { %3458 = vmatpush3.bf16.msra.mxu1 %v3626_v25 }
 0xa22   : > { %3459 = vmatprep.subr.bf16.mxu1 %v3731_v3 }
 0xa25   : > { %3460 = vmatpush3.bf16.msra.mxu1 %v3627_v26 }
 0xa26   : > { %3477 = vmatprep.subr.bf16.mxu1 %v3731_v3 }
 0xa28   : > { %3462 = vmatmul.mubr.msk.bf16.vlgmr.msra.gmra.mrb[36].mxu1 %vm989_vm2, %v3964_v13 }
 0xa29   : > { %3485 = vmatprep.mubr.msk.bf16.mxu1 %vm3732_vm1, %v3731_v3 }
 0xaeb   : > { %v2049_v27 = vpop.f32.mrb[32].mxu1 }
 0xaec   : > { %v3445_v28 = vpop.f32.mrb[33].mxu1 }
 0xaed   : > { %v2052_v29 = vpop.f32.mrb[34].mxu1 }
 0xaee   : > { %v2056_v31 = vpack.c.bf16 %v2052_v29, %v2049_v27  ;;  %v3446_v32 = vpop.f32.mrb[35].mxu1 }
 0xaf0   : > { %3450 = vmatmul.mubr.msk.bf16.vlgmr.msra.gmra.mrb[32].mxu0 %vm1178_vm3, %v2056_v31 }
 0xaf1   : > { %3466 = vmatpush3.bf16.msra.mxu0 %v3620_v30  ;;  %3473 = vmatprep.mubr.msk.bf16.mxu0 %vm3732_vm1, %v3731_v3 }
 0xaf2   : > { %3467 = vmatprep.subr.bf16.mxu0 %v3731_v3 }
 0xaf5   : > { %3468 = vmatpush3.bf16.msra.mxu0 %v3621_v33 }
 0xaf6   : > { %3469 = vmatprep.subr.bf16.mxu0 %v3731_v3 }
 0xaf9   : > { %3470 = vmatpush3.bf16.msra.mxu0 %v3623_v34 }
 0xafa   : > { %3471 = vmatprep.subr.bf16.mxu0 %v3731_v3 }
 0xafb   : > { %v2173_v38 = vpop.f32.mrb[36].mxu1 }
 0xafc   : > { %v2174_v40 = vadd.f32 %v3141_v37, %v2173_v38  ;;  %v3463_v41 = vpop.f32.mrb[37].mxu1 }
 0xafd   : > { %3472 = vmatpush3.bf16.msra.mxu0 %v3625_v35  ;;  %v2176_v42 = vpop.f32.mrb[38].mxu1 }
 0xafe   : > { %3489 = vmatprep.subr.bf16.mxu0 %v3731_v3  ;;  %v2177_v43 = vadd.f32 %v3141_v37, %v2176_v42  ;;  %v3464_v44 = vpop.f32.mrb[39].mxu1 }
 0xaff   : > { %v3689_v44 = vld [vmem:[#allocation2] sm:$0xff] }
 0xb00   : > { %3474 = vmatmul.mubr.msk.bf16.vlgmr.msra.gmra.mrb[36].mxu0 %vm989_vm2, %v3964_v13  ;;  %v2322_v45 = vpack.c.bf16 %v2177_v43, %v2174_v40  ;;  %v3163_v43 = vld [vmem:[%s4362_s27] ss:$0 sm:$0xff] }
 0xb01   : > { %3491 = vmatprep.mubr.msk.bf16.mxu0 %vm3732_vm1, %v3731_v3 }
 0xbc3   : > { %v2100_v46 = vpop.f32.mrb[32].mxu0 }
 0xbc4   : > { %v4163_v47 = vadd.f32 %v2100_v46, %v4103_v36  ;;  %v3451_v48 = vpop.f32.mrb[33].mxu0 }
 0xbc5   : > { %v2103_v49 = vpop.f32.mrb[34].mxu0 }
 0xbc6   : > { %v4166_v50 = vadd.f32 %v2103_v49, %v4105_v39  ;;  %v3452_v51 = vpop.f32.mrb[35].mxu0  ;;  %v3628_v39 = vld [vmem:[%s4359_s7 + $0x60] sm:$0xff]   ;;  %v3690_v49 = vld [vmem:[#allocation2 + $0x8] sm:$0xff] }
 0xbc7   : > { %3478 = vmatpush3.bf16.msra.mxu1 %v3628_v39 }
 0xbc8   : > { %3479 = vmatprep.subr.bf16.mxu1 %v3731_v3 }
 0xbcb   : > { %3480 = vmatpush3.bf16.msra.mxu1 %v3629_v60 }
 0xbcc   : > { %3481 = vmatprep.subr.bf16.mxu1 %v3731_v3 }
 0xbcf   : > { %3482 = vmatpush3.bf16.msra.mxu1 %v3630_v61 }
 0xbd0   : > { %3483 = vmatprep.subr.bf16.mxu1 %v3731_v3 }
 0xbd3   : > { %v2244_v53 = vpop.f32.mrb[36].mxu0  ;;  %3484 = vmatpush3.bf16.msra.mxu1 %v3631_v62  ;;  %v3633_v62 = vld [vmem:[%s3915_s6] sm:$0xff]  }
 0xbd4   : > { %v3475_v54 = vpop.f32.mrb[37].mxu0  ;;  %v2245_v56 = vadd.f32 %v3147_v52, %v2244_v53  ;;  %3501 = vmatprep.subr.bf16.mxu1 %v3731_v3 }
 0xbd5   : > { %v2247_v55 = vpop.f32.mrb[38].mxu0 }
 0xbd6   : > { %v2248_v57 = vadd.f32 %v3147_v52, %v2247_v55  ;;  %v3476_v58 = vpop.f32.mrb[39].mxu0  ;;  %3486 = vmatmul.mubr.msk.bf16.vlgmr.msra.gmra.mrb[40].mxu1 %vm989_vm2, %v3964_v13 }
 0xbd7   : > { %3503 = vmatprep.mubr.msk.bf16.mxu1 %vm3732_vm1, %v3731_v3  ;;  %3502 = vmatpush3.bf16.msra.mxu1 %v3632_v24  ;;  %v3641_v24 = vld [vmem:[%s3929_s29 + $0x20] sm:$0xff]  }
 0xbd8   : > { %v2323_v59 = vpack.c.bf16 %v2248_v57, %v2245_v56  ;;  %3519 = vmatprep.subr.bf16.mxu1 %v3731_v3 }
 0xbda   : > { %v2328_v36 = vsel %vm1178_vm3, %v2323_v59, 0 }
 0xbdb   : > { %3490 = vmatpush3.bf16.xpose.msra.mxu0 %v2328_v36 }
 0xbdc   : > { %3495 = vmatprep.subr.bf16.mxu0 %v3731_v3 }
 0xbe2   : > { %3492 = vmatmul.mubr.msk.bf16.vlgmr.msra.gmra.mrb[40].mxu0 %vm1178_vm3, %v2322_v45 }
 0xbe3   : > { %3497 = vmatprep.mubr.msk.bf16.mxu0 %vm3732_vm1, %v3731_v3 }
 0xca9   : > { %v2315_v16 = vpop.f32.mrb[40].mxu1 }
 0xcaa   : > { %v3487_v17 = vpop.f32.mrb[41].mxu1  ;;  %v2316_v21 = vadd.f32 %v3153_v19, %v2315_v16 }
 0xcab   : > { %v2318_v18 = vpop.f32.mrb[42].mxu1 }
 0xcac   : > { %v3488_v20 = vpop.f32.mrb[43].mxu1  ;;  %v2319_v22 = vadd.f32 %v3153_v19, %v2318_v18 }
 0xcad   : > { %v3637_v20 = vld [vmem:[%s3929_s29] sm:$0xff]  }
 0xcae   : > { %v2394_v23 = vpack.c.bf16 %v2319_v22, %v2316_v21  ;;  %v3638_v21 = vld [vmem:[%s3929_s29 + $0x8] sm:$0xff]   ;;  %v3639_v22 = vld [vmem:[%s3929_s29 + $0x10] sm:$0xff]  }
 0xcb0   : > { %3496 = vmatpush3.bf16.msra.mxu0 %v2394_v23  ;;  %v3640_v23 = vld [vmem:[%s3929_s29 + $0x18] sm:$0xff]  }
 0xcb1   : > { %3507 = vmatprep.subr.bf16.mxu0 %v3731_v3 }
 0xcb5   : > { %v2364_v63 = vpop.f32.mrb[40].mxu0 }
 0xcb6   : > { %v3493_v0 = vpop.f32.mrb[41].mxu0  ;;  %v2371_v1 = vsel %vm1178_vm3, %v2364_v63, -inf }
 0xcb7   : > { %2372 = vmax.xlane.f32.xlu0 %v2371_v1  ;;  %v2367_v2 = vpop.f32.mrb[42].mxu0  ;;  %v3635_v0 = vld [vmem:[%s3915_s6 + $0x10] sm:$0xff]   ;;  %v3636_v1 = vld [vmem:[%s3915_s6 + $0x18] sm:$0xff]  }
 0xcb8   : > { %v3494_v4 = vpop.f32.mrb[43].mxu0  ;;  %v2374_v5 = vsel %vm1178_vm3, %v2367_v2, -inf }
 0xcb9   : > { %2375 = vmax.xlane.f32.xlu1 %v2374_v5 }
 0xd44   : > { %v2373_v6 = vpop.xlane.xlu0 %2372 }
 0xd45   : > { %v2377_v7 = vsub.f32 %v2364_v63, %v2373_v6  ;;  %v3634_v63 = vld [vmem:[%s3915_s6 + $0x8] sm:$0xff]  }
 0xd46   : > { %v2376_v8 = vpop.xlane.xlu1 %2375 }
 0xd47   : > { %v2379_v9 = vmul.f32 1.442695, %v2377_v7  ;;  %v2378_v10 = vsub.f32 %v2367_v2, %v2376_v8 }
 0xd49   : > { %3669 = vpow2.f32 %v2379_v9  ;;  %v2381_v13 = vmul.f32 1.442695, %v2378_v10  ;;  %v3164_v10 = vld [vmem:[%s4363_s4] ss:$0 sm:$0xff] }
 0xd4b   : > { %3671 = vpow2.f32 %v2381_v13 }
 0xd53   : > { %v3670_v11 = vpop.eup %3669 }
 0xd54   : > { %v2383_v12 = vsel %vm1178_vm3, %v3670_v11, 0.0 }
 0xd55   : > { %v3672_v14 = vpop.eup %3671  ;;  %2384 = vadd.xlane.f32.xlu0 %v2383_v12 }
 0xd56   : > { %v2386_v15 = vsel %vm1178_vm3, %v3672_v14, 0.0 }
 0xd57   : > { %2387 = vadd.xlane.f32.xlu1 %v2386_v15  ;;  %v3165_v15 = vld [vmem:[%s4364_s5] ss:$0 sm:$0xff] }
 0xde2   : > { %v2385_v25 = vpop.xlane.xlu0 %2384 }
 0xde3   : > { %3673 = vrcp.f32 %v2385_v25  ;;  %v3642_v25 = vld [vmem:[%s3929_s29 + $0x28] sm:$0xff]  }
 0xde4   : > { %v2388_v26 = vpop.xlane.xlu1 %2387 }
 0xde5   : > { %3675 = vrcp.f32 %v2388_v26  ;;  %v3643_v26 = vld [vmem:[%s3929_s29 + $0x30] sm:$0xff]  }
 0xded   : > { %v3674_v27 = vpop.eup %3673 }
 0xdee   : > { %v2391_v29 = vmul.f32 %v3674_v27, %v3670_v11  ;;  %v3644_v27 = vld [vmem:[%s3929_s29 + $0x38] sm:$0xff]  }
 0xdef   : > { %v3676_v28 = vpop.eup %3675 }
 0xdf0   : > { %v2392_v30 = vmul.f32 %v3676_v28, %v3672_v14  ;;  %v3166_v28 = vld [vmem:[%s4366_s22] ss:$0 sm:$0xff] }
 0xdf2   : > { %v2393_v31 = vpack.c.bf16 %v2392_v30, %v2391_v29 }
 0xdf4   : > { %3498 = vmatmul.mubr.msk.bf16.vlgmr.msra.gmra.mrb[44].mxu0 %vm1178_vm3, %v2393_v31 }
 0xdf5   : > { %3515 = vmatprep.mubr.msk.bf16.mxu0 %vm3732_vm1, %v3731_v3  ;;  %3508 = vmatpush3.bf16.msra.mxu0 %v3633_v62 }
 0xdf6   : > { %3509 = vmatprep.subr.bf16.mxu0 %v3731_v3 }
 0xdf9   : > { %3510 = vmatpush3.bf16.msra.mxu0 %v3634_v63 }
 0xdfa   : > { %3511 = vmatprep.subr.bf16.mxu0 %v3731_v3 }
 0xdfd   : > { %3512 = vmatpush3.bf16.msra.mxu0 %v3635_v0 }
 0xdfe   : > { %3513 = vmatprep.subr.bf16.mxu0 %v3731_v3 }
 0xe01   : > { %3514 = vmatpush3.bf16.msra.mxu0 %v3636_v1 }
 0xec7   : > { %v2432_v32 = vpop.f32.mrb[44].mxu0 }
 0xec8   : > { %v3499_v33 = vpop.f32.mrb[45].mxu0 }
 0xec9   : > { %v2435_v34 = vpop.f32.mrb[46].mxu0 }
 0xeca   : > { %v2439_v35 = vpack.c.bf16 %v2435_v34, %v2432_v32  ;;  %v3500_v37 = vpop.f32.mrb[47].mxu0 }
 0xecc   : > { %3504 = vmatmul.mubr.msk.bf16.vlgmr.msra.gmra.mrb[44].mxu1 %vm1178_vm3, %v2439_v35 }
 0xecd   : > { %3535 = vmatprep.mubr.msk.bf16.mxu1 %vm3732_vm1, %v3731_v3  ;;  %3520 = vmatpush3.bf16.msra.mxu1 %v3637_v20 }
 0xece   : > { %3521 = vmatprep.subr.bf16.mxu1 %v3731_v3 }
 0xed1   : > { %3522 = vmatpush3.bf16.msra.mxu1 %v3638_v21  ;;  %v3182_v21 = vld [vmem:[%s824_s11] ss:$0 sm:$0xff] }
 0xed2   : > { %3523 = vmatprep.subr.bf16.mxu1 %v3731_v3 }
 0xed5   : > { %3524 = vmatpush3.bf16.msra.mxu1 %v3639_v22 }
 0xed6   : > { %3525 = vmatprep.subr.bf16.mxu1 %v3731_v3 }
 0xed9   : > { %3526 = vmatpush3.bf16.msra.mxu1 %v3640_v23 }
 0xeda   : > { %3527 = vmatprep.subr.bf16.mxu1 %v3731_v3 }
 0xedd   : > { %3528 = vmatpush3.bf16.msra.mxu1 %v3641_v24 }
 0xede   : > { %3529 = vmatprep.subr.bf16.mxu1 %v3731_v3 }
 0xee1   : > { %3530 = vmatpush3.bf16.msra.mxu1 %v3642_v25 }
 0xee2   : > { %3531 = vmatprep.subr.bf16.mxu1 %v3731_v3 }
 0xee5   : > { %3532 = vmatpush3.bf16.msra.mxu1 %v3643_v26 }
 0xee6   : > { %3533 = vmatprep.subr.bf16.mxu1 %v3731_v3 }
 0xee9   : > { %3534 = vmatpush3.bf16.msra.mxu1 %v3644_v27 }
 0xf9f   : > { %v2483_v38 = vpop.f32.mrb[44].mxu1 }
 0xfa0   : > { %v2490_v40 = vadd.f32 %v2483_v38, %v4163_v47  ;;  %v3505_v41 = vpop.f32.mrb[45].mxu1 }
 0xfa1   : > { %v2486_v42 = vpop.f32.mrb[46].mxu1 }
 0xfa2   : > { %v2492_v45 = vadd.f32 %v3689_v44, %v2490_v40  ;;  %v2491_v46 = vadd.f32 %v2486_v42, %v4166_v50  ;;  %v3506_v48 = vpop.f32.mrb[47].mxu1 }
 0xfa4   : > { %v2493_v51 = vadd.f32 %v3690_v49, %v2491_v46  ;;  %v2501_v52 = vadd.f32 %v3163_v43, %v2492_v45 }
 0xfa6   : > { %v2505_v53 = vsel %vm989_vm2, %v2501_v52, 0.0  ;;  %v2502_v54 = vadd.f32 %v3163_v43, %v2493_v51 }
 0xfa7   : > { %2506 = vadd.xlane.f32.xlu0 %v2505_v53 }
 0xfa8   : > { %v2508_v47 = vsel %vm989_vm2, %v2502_v54, 0.0 }
 0xfa9   : > { %2509 = vadd.xlane.f32.xlu1 %v2508_v47 }
0x1034   : > { %v2507_v55 = vpop.xlane.xlu0 %2506 }
0x1035   : > { %v2512_v56 = vmul.f32 0.015625, %v2507_v55 }
0x1036   : > { %v2510_v57 = vpop.xlane.xlu1 %2509 }
0x1037   : > { %v2514_v58 = vsub.f32 %v2501_v52, %v2512_v56  ;;  %v2513_v59 = vmul.f32 0.015625, %v2510_v57  ;;  %v3172_v56 = vld [vmem:[%s818_s20] ss:$0 sm:$0xff] }
0x1039   : > { %v2515_v50 = vsub.f32 %v2502_v54, %v2513_v59  ;;  %v2516_v36 = vmul.f32 %v2514_v58, %v2514_v58 }
0x103b   : > { %v2518_v39 = vsel %vm989_vm2, %v2516_v36, 0.0  ;;  %v2517_v60 = vmul.f32 %v2515_v50, %v2515_v50 }
0x103c   : > { %2519 = vadd.xlane.f32.xlu0 %v2518_v39 }
0x103d   : > { %v2521_v61 = vsel %vm989_vm2, %v2517_v60, 0.0 }
0x103e   : > { %2522 = vadd.xlane.f32.xlu1 %v2521_v61 }
0x10c9   : > { %v2520_v2 = vpop.xlane.xlu0 %2519 }
0x10ca   : > { %v2524_v4 = vmul.f32 0.015625, %v2520_v2 }
0x10cb   : > { %v2523_v5 = vpop.xlane.xlu1 %2522 }
0x10cc   : > { %v2526_v6 = vadd.f32 1e-05, %v2524_v4  ;;  %v2525_v7 = vmul.f32 0.015625, %v2523_v5 }
0x10ce   : > { %3677 = vrsqrt.f32 %v2526_v6  ;;  %v2527_v8 = vadd.f32 1e-05, %v2525_v7 }
0x10d0   : > { %3679 = vrsqrt.f32 %v2527_v8 }
0x10d8   : > { %v3678_v9 = vpop.eup %3677 }
0x10d9   : > { %v2530_v13 = vmul.f32 %v3678_v9, %v2514_v58 }
0x10da   : > { %v3680_v11 = vpop.eup %3679 }
0x10db   : > { %v2538_v12 = vmul.f32 %v3164_v10, %v2530_v13  ;;  %v2531_v14 = vmul.f32 %v3680_v11, %v2515_v50 }
0x10dd   : > { %v2539_v16 = vmul.f32 %v3164_v10, %v2531_v14  ;;  %v4228_v17 = vadd.f32 %v3165_v15, %v2538_v12 }
0x10df   : > { %v4230_v18 = vadd.f32 %v3165_v15, %v2539_v16 }
0x10e1   : > { %v2556_v19 = vpack.c.bf16 %v4230_v18, %v4228_v17 }
0x10e3   : > { %3516 = vmatmul.mubr.msk.bf16.vlgmr.msra.gmra.mrb[48].mxu0 %vm989_vm2, %v2556_v19 }
0x11b6   : > { %v2625_v29 = vpop.f32.mrb[48].mxu0 }
0x11b7   : > { %v2626_v30 = vadd.f32 %v3166_v28, %v2625_v29  ;;  %v3517_v31 = vpop.f32.mrb[49].mxu0 }
0x11b8   : > { %v2628_v32 = vpop.f32.mrb[50].mxu0 }
0x11b9   : > { %v2634_v33 = vmul.f32 %v2626_v30, %v2626_v30  ;;  %v2629_v34 = vadd.f32 %v3166_v28, %v2628_v32  ;;  %v3518_v35 = vpop.f32.mrb[51].mxu0  ;;  %v2632_v51 = vmul.f32 0.5, %v2626_v30 }
0x11bb   : > { %v2636_v37 = vmul.f32 %v2634_v33, %v2626_v30  ;;  %v2635_v38 = vmul.f32 %v2629_v34, %v2629_v34  ;;  %v2633_v52 = vmul.f32 0.5, %v2629_v34 }
0x11bd   : > { %v2638_v40 = vmul.f32 0.044715, %v2636_v37  ;;  %v2637_v41 = vmul.f32 %v2635_v38, %v2629_v34 }
0x11bf   : > { %v2640_v42 = vadd.f32 %v2638_v40, %v2626_v30  ;;  %v2639_v43 = vmul.f32 0.044715, %v2637_v41 }
0x11c1   : > { %v2642_v3 = vmul.f32 0.7978846, %v2640_v42  ;;  %v2641_v44 = vadd.f32 %v2639_v43, %v2629_v34 }
0x11c3   : > { %3681 = vtanh.f32 %v2642_v3  ;;  %v2643_v45 = vmul.f32 0.7978846, %v2641_v44 }
0x11c5   : > { %3683 = vtanh.f32 %v2643_v45 }
0x11cd   : > { %v3682_v46 = vpop.eup %3681 }
0x11ce   : > { %v2646_v48 = vadd.f32 1.0, %v3682_v46 }
0x11cf   : > { %v3684_v49 = vpop.eup %3683 }
0x11d0   : > { %v2647_v53 = vadd.f32 1.0, %v3684_v49  ;;  %v2648_v54 = vmul.f32 %v2646_v48, %v2632_v51 }
0x11d2   : > { %v2649_v47 = vmul.f32 %v2647_v53, %v2633_v52 }
0x11d4   : > { %v2666_v55 = vpack.c.bf16 %v2649_v47, %v2648_v54 }
0x11d6   : > { %3536 = vmatmul.mubr.bf16.vlgmr.msra.gmra.mrb[48].mxu1 %v2666_v55 }
0x12a9   : > { %v2756_v57 = vpop.f32.mrb[48].mxu1 }
0x12aa   : > { %v2757_v58 = vadd.f32 %v3172_v56, %v2756_v57  ;;  %v3537_v59 = vpop.f32.mrb[49].mxu1 }
0x12ab   : > { %v2759_v50 = vpop.f32.mrb[50].mxu1 }
0x12ac   : > { %2763 = vst.msk [vmem:[%s3942_s12] sm:$0xff] %vm989_vm2, %v2757_v58  ;;  %v2760_v36 = vadd.f32 %v3172_v56, %v2759_v50  ;;  %v3538_v39 = vpop.f32.mrb[51].mxu1  ;;  %v2765_v60 = vadd.f32 %v2757_v58, %v4228_v17 }
0x12ae   : > { %2764 = vst.msk [vmem:[%s3942_s12 + $0x8] sm:$0xff] %vm989_vm2, %v2760_v36  ;;  %v2769_v61 = vsel %vm989_vm2, %v2765_v60, 0.0  ;;  %v2766_v62 = vadd.f32 %v2760_v36, %v4230_v18  ;;  %v3181_v18 = vld [vmem:[%s821_s1] ss:$0 sm:$0xff] }
0x12af   : > { %2770 = vadd.xlane.f32.xlu0 %v2769_v61 }
0x12b0   : > { %v2772_v63 = vsel %vm989_vm2, %v2766_v62, 0.0 }
0x12b1   : > { %2773 = vadd.xlane.f32.xlu1 %v2772_v63 }
0x133c   : > { %v2771_v0 = vpop.xlane.xlu0 %2770 }
0x133d   : > { %v2775_v1 = vmul.f32 0.015625, %v2771_v0 }
0x133e   : > { %v2774_v2 = vpop.xlane.xlu1 %2773 }
0x133f   : > { %v2777_v4 = vsub.f32 %v2765_v60, %v2775_v1  ;;  %v2776_v5 = vmul.f32 0.015625, %v2774_v2 }
0x1341   : > { %v2778_v6 = vsub.f32 %v2766_v62, %v2776_v5  ;;  %v2779_v7 = vmul.f32 %v2777_v4, %v2777_v4 }
0x1343   : > { %v2781_v8 = vsel %vm989_vm2, %v2779_v7, 0.0  ;;  %v2780_v9 = vmul.f32 %v2778_v6, %v2778_v6 }
0x1344   : > { %2782 = vadd.xlane.f32.xlu0 %v2781_v8 }
0x1345   : > { %v2784_v10 = vsel %vm989_vm2, %v2780_v9, 0.0 }
0x1346   : > { %2785 = vadd.xlane.f32.xlu1 %v2784_v10 }
0x13d1   : > { %v2783_v13 = vpop.xlane.xlu0 %2782 }
0x13d2   : > { %v2787_v11 = vmul.f32 0.015625, %v2783_v13 }
0x13d3   : > { %v2786_v12 = vpop.xlane.xlu1 %2785 }
0x13d4   : > { %v2789_v14 = vadd.f32 1e-05, %v2787_v11  ;;  %v2788_v15 = vmul.f32 0.015625, %v2786_v12 }
0x13d6   : > { %3685 = vrsqrt.f32 %v2789_v14  ;;  %v2790_v16 = vadd.f32 1e-05, %v2788_v15 }
0x13d8   : > { %3687 = vrsqrt.f32 %v2790_v16 }
0x13e0   : > { %v3686_v17 = vpop.eup %3685 }
0x13e1   : > { %v2793_v19 = vmul.f32 %v3686_v17, %v2777_v4 }
0x13e2   : > { %v3688_v20 = vpop.eup %3687 }
0x13e3   : > { %v2801_v22 = vmul.f32 %v3181_v18, %v2793_v19  ;;  %v2794_v23 = vmul.f32 %v3688_v20, %v2778_v6 }
0x13e5   : > { %v2809_v24 = vadd.f32 %v3182_v21, %v2801_v22  ;;  %v2802_v25 = vmul.f32 %v3181_v18, %v2794_v23 }
0x13e7   : > { %2811 = vst.msk [vmem:[#allocation2] sm:$0xff] %vm989_vm2, %v2809_v24  ;;  %v2810_v26 = vadd.f32 %v3182_v21, %v2802_v25 }
0x13e9   : > { %2812 = vst.msk [vmem:[#allocation2 + $0x8] sm:$0xff] %vm989_vm2, %v2810_v26 }
0x13ea PF: > { %s4368_s18 = sld [smem:[#allocation6_spill]]  ;;  %s4369_s24 = sld [smem:[#allocation4_spill]] }
0x13eb   : > { %s4370_s25 = sld [smem:[#allocation5_spill]]  ;;  %s4371_s26 = sld [smem:[#allocation7_spill]] }
0x13ec   : > { %s4372_s27 = sld [smem:[#allocation8_spill]] }
0x13f0   : > { %s27_s28 = sadd.s32 1, %s4368_s18  }
0x13f1   : > { %p24_p8 = scmp.ge.s32.totalorder %s27_s28, 6  }
0x13f3   :  { %26 = sbr.rel (!%p24_p8) target bundleno = 13 (0xd), region = 170 }

</bundles_post_ra>
